<compile_context>
chip_gen: v7x
topology: tpu7x:2x2x1
jax: 0.10.0
libtpu: 0.0.40
codegen_flags: <defaults>
</compile_context>

<pallas_src>
import jax
import jax.numpy as jnp
from jax.experimental import pallas as pl
from jax.experimental.pallas import tpu as pltpu


def _leaky_relu(x, slope=0.2):
    return jnp.where(x > 0, x, slope * x)


def _round_up(n, m):
    return ((n + m - 1) // m) * m


def discriminator_kernel(x_ref,
                         w1_ref, b1_ref,
                         w2_ref, b2_ref,
                         w3_ref, b3_ref,
                         w4t_ref, b4_ref,
                         o_ref):
    """Whole MLP hot path: 3 bf16 MXU matmuls (f32 acc) + VPU/XLU final layer."""
    # Layer 1: cast x to bf16 in-kernel (hidden under the pipeline), MXU matmul,
    # f32 accumulate, f32 bias + activation.
    x = x_ref[...].astype(jnp.bfloat16)
    h = jnp.dot(x, w1_ref[...].astype(jnp.bfloat16),
                preferred_element_type=jnp.float32) + b1_ref[...]
    h = _leaky_relu(h).astype(jnp.bfloat16)
    # Dropout(0.3): identity in eval mode (no-op here).

    # Layer 2.
    h = jnp.dot(h, w2_ref[...].astype(jnp.bfloat16),
                preferred_element_type=jnp.float32) + b2_ref[...]
    h = _leaky_relu(h).astype(jnp.bfloat16)

    # Layer 3.
    h = jnp.dot(h, w3_ref[...].astype(jnp.bfloat16),
                preferred_element_type=jnp.float32) + b3_ref[...]
    h = _leaky_relu(h)  # keep f32 for the epilogue

    # Final 64->1 layer: VPU multiply + cross-lane reduce (keeps an N=1 tile off
    # the MXU).  w4t is the (1, 64) transposed weight row.
    logits = jnp.sum(h * w4t_ref[...], axis=-1, keepdims=True) + b4_ref[...]  # (bb, 1)

    # Relayout once to lane-dense (1, bb) so the sigmoid epilogue and the store
    # operate on dense vregs (the one-time XLU relayout is a few vregs of work).
    logits = logits.reshape(1, -1)                                            # (1, bb)

    # Numerically-stable sigmoid: exp + approx reciprocal both land on the EUP.
    z = jnp.exp(-jnp.abs(logits))
    inv = pl.reciprocal(1.0 + z, approx=True)
    o_ref[0] = jnp.where(logits >= 0.0, inv, z * inv)                         # (1, bb)


def _detect_num_tensorcores():
    """Best-effort TensorCore-per-chip count (2 on v7x, 1 on v5e/v6e)."""
    try:
        info = pltpu.get_tpu_info()
        for name in ("num_tensorcores", "tensorcores_per_chip",
                     "num_cores_per_chip", "num_cores"):
            n = getattr(info, name, None)
            if isinstance(n, int) and 1 <= n <= 8:
                return n
    except Exception:
        pass
    try:
        kind = jax.devices()[0].device_kind.lower()
        if "v7" in kind or "7x" in kind:
            return 2
    except Exception:
        pass
    return 1


def _choose_tiling(B, block_b, num_tensorcores):
    """Batch tile bb (multiple of 8) and grid length; B is padded up to grid*bb."""
    bb = min(max(8, (block_b // 8) * 8), _round_up(B, 8))
    grid = pl.cdiv(B, bb)
    # v7x megacore: keep the parallel grid length a multiple of the TC count so
    # both cores get equal work.  Single-TC v5e/v6e: keep the grid minimal
    # (the grid is a serial loop there; splitting only adds per-step overhead).
    if num_tensorcores > 1 and grid > 1 and grid % num_tensorcores:
        grid = _round_up(grid, num_tensorcores)
        bb = max(8, _round_up(pl.cdiv(B, grid), 8))
    return bb, grid


def tabular_discriminator(x, params, *, block_b=1024, vmem_limit_bytes=None,
                          num_tensorcores=None):
    """x: (B, D) float32. params: list of (W_(in,out), b_(1,out)). Returns (B, 1)."""
    B, D = x.shape
    (w1, b1), (w2, b2), (w3, b3), (w4, b4) = params

    if num_tensorcores is None:
        num_tensorcores = _detect_num_tensorcores()
    bb, grid = _choose_tiling(B, block_b, num_tensorcores)
    Bp = grid * bb
    if Bp != B:
        # Pad with zero rows instead of shrinking bb (keeps tall MXU tiles for
        # awkward batch sizes); padded rows are sliced off below.
        x = jnp.pad(x, ((0, Bp - B), (0, 0)))

    # Final layer weight pre-transposed to (1, 64) for the VPU/XLU epilogue.
    w4t = w4.reshape(1, -1).astype(jnp.float32)

    def batch_spec(ncols):
        # Tile only the batch axis; each grid step handles bb rows.
        return pl.BlockSpec((bb, ncols), lambda i: (i, 0))

    def full_spec(shape):
        # Weights/biases are small: keep the full array resident in VMEM.
        # (pipeline_mode=pl.Buffered(1) could halve their VMEM on v7x for very
        #  large D; left at the default for compile robustness — D here is tiny.)
        return pl.BlockSpec(shape, lambda i: tuple(0 for _ in shape))

    in_specs = [
        batch_spec(D),
        full_spec(w1.shape), full_spec(b1.shape),
        full_spec(w2.shape), full_spec(b2.shape),
        full_spec(w3.shape), full_spec(b3.shape),
        full_spec(w4t.shape), full_spec(b4.shape),
    ]
    # Lane-dense output: one (1, 1, bb) row per grid step.
    out_spec = pl.BlockSpec((1, 1, bb), lambda i: (i, 0, 0))
    out_shape = jax.ShapeDtypeStruct((grid, 1, bb), jnp.float32)

    # Advisory cost estimate so XLA schedules surrounding ops sensibly.
    h1, h2, h3 = w1.shape[1], w2.shape[1], w3.shape[1]
    flops = 2 * Bp * (D * h1 + h1 * h2 + h2 * h3 + h3)
    bytes_accessed = (
        Bp * D * 4
        + (w1.size + w2.size + w3.size + w4t.size) * 4
        + (b1.size + b2.size + b3.size + b4.size) * 4
        + Bp * 4
    )
    cost = pl.CostEstimate(flops=flops, transcendentals=2 * Bp,
                           bytes_accessed=bytes_accessed)

    # Rough per-step VMEM footprint (double-buffered x/out + resident weights +
    # intermediate headroom); set an explicit limit only when it gets large.
    est_vmem = (
        2 * bb * D * 4 + 2 * bb * 4
        + 2 * 4 * (w1.size + b1.size + w2.size + b2.size
                   + w3.size + b3.size + w4t.size + b4.size)
        + 4 * bb * (h1 + h1 + h2 + h3)
    )
    if vmem_limit_bytes is None and est_vmem > 12 * 2**20:
        vmem_limit_bytes = min(int(2 * est_vmem), 120 * 2**20)

    cp_kwargs = dict(dimension_semantics=("parallel",))
    if vmem_limit_bytes is not None:
        cp_kwargs["vmem_limit_bytes"] = vmem_limit_bytes

    out = pl.pallas_call(
        discriminator_kernel,
        grid=(grid,),
        in_specs=in_specs,
        out_specs=out_spec,
        out_shape=out_shape,
        compiler_params=pltpu.CompilerParams(**cp_kwargs),
        cost_estimate=cost,
    )(x, w1, b1, w2, b2, w3, b3, w4t, b4)

    # (grid, 1, bb) -> (Bp, 1) -> (B, 1)
    return out.reshape(-1, 1)[:B]


def init_params(key, input_dim, layers=(256, 128, 64)):
    """Deterministic PyTorch-style Linear init: U(-1/sqrt(fan_in), 1/sqrt(fan_in))."""
    dims = [input_dim] + list(layers) + [1]
    params = []
    for i in range(len(dims) - 1):
        fan_in, fan_out = dims[i], dims[i + 1]
        key, kw, kb = jax.random.split(key, 3)
        bound = 1.0 / float(fan_in) ** 0.5
        w = jax.random.uniform(kw, (fan_in, fan_out), jnp.float32, -bound, bound)
        b = jax.random.uniform(kb, (1, fan_out), jnp.float32, -bound, bound)
        params.append((w, b))
    return params


def reference_forward(x, params):
    """Pure-JAX f32 reference for correctness checking."""
    h = x
    for i, (w, b) in enumerate(params):
        h = h @ w + b
        if i < len(params) - 1:
            h = _leaky_relu(h)
    return jax.nn.sigmoid(h)


if __name__ == "__main__":
    key = jax.random.PRNGKey(0)
    key, kx, kp = jax.random.split(key, 3)

    B, D = 256, 32  # batch=256 (one full-height MXU tile), input_dim=32
    x = jax.random.normal(kx, (B, D), dtype=jnp.float32)
    params = init_params(kp, D, layers=(256, 128, 64))

    out = tabular_discriminator(x, params)
    out = jax.block_until_ready(out)

    ref = reference_forward(x, params)
    assert out.shape == (B, 1), out.shape
    # bf16 MXU inputs + approx reciprocal: compare against the f32 reference
    # with a relaxed tolerance (outputs are sigmoid-bounded in [0, 1]).
    max_err = float(jnp.max(jnp.abs(out - ref)))
    assert max_err < 2e-2, f"max abs err {max_err}"

    # Exercise the padding path (B not a multiple of the tile) for correctness.
    Bo = 100
    out2 = jax.block_until_ready(tabular_discriminator(x[:Bo], params))
    ref2 = reference_forward(x[:Bo], params)
    assert out2.shape == (Bo, 1), out2.shape
    assert float(jnp.max(jnp.abs(out2 - ref2))) < 2e-2

    print("KERNEL_OK")
</pallas_src>

<mosaic_0001>
module attributes {stable_mosaic.version = 11 : i64} {
  func.func @discriminator_kernel(%arg0: i32, %arg1: memref<256x32xf32, #tpu.memory_space<vmem>>, %arg2: memref<32x256xf32, #tpu.memory_space<vmem>>, %arg3: memref<1x256xf32, #tpu.memory_space<vmem>>, %arg4: memref<256x128xf32, #tpu.memory_space<vmem>>, %arg5: memref<1x128xf32, #tpu.memory_space<vmem>>, %arg6: memref<128x64xf32, #tpu.memory_space<vmem>>, %arg7: memref<1x64xf32, #tpu.memory_space<vmem>>, %arg8: memref<1x64xf32, #tpu.memory_space<vmem>>, %arg9: memref<1x1xf32, #tpu.memory_space<vmem>>, %arg10: memref<1x1x256xf32, #tpu.memory_space<vmem>>) attributes {dimension_semantics = [#tpu.dimension_semantics<parallel>], iteration_bounds = array<i64: 1>, scalar_prefetch = 0 : i64, scratch_operands = 0 : i64, tpu.core_type = #tpu.core_type<tc>, window_params = [{transform_indices = @transform_0, window_bounds = array<i64: 256, 32>}, {pipeline_mode = #tpu.pipeline_mode<synchronous>, transform_indices = @transform_1, window_bounds = array<i64: 32, 256>}, {pipeline_mode = #tpu.pipeline_mode<synchronous>, transform_indices = @transform_2, window_bounds = array<i64: 1, 256>}, {pipeline_mode = #tpu.pipeline_mode<synchronous>, transform_indices = @transform_3, window_bounds = array<i64: 256, 128>}, {pipeline_mode = #tpu.pipeline_mode<synchronous>, transform_indices = @transform_4, window_bounds = array<i64: 1, 128>}, {pipeline_mode = #tpu.pipeline_mode<synchronous>, transform_indices = @transform_5, window_bounds = array<i64: 128, 64>}, {pipeline_mode = #tpu.pipeline_mode<synchronous>, transform_indices = @transform_6, window_bounds = array<i64: 1, 64>}, {pipeline_mode = #tpu.pipeline_mode<synchronous>, transform_indices = @transform_7, window_bounds = array<i64: 1, 64>}, {pipeline_mode = #tpu.pipeline_mode<synchronous>, transform_indices = @transform_8, window_bounds = array<i64: 1, 1>}, {transform_indices = @transform_9, window_bounds = array<i64: 1, 1, 256>}]} {
    %c0 = arith.constant 0 : index
    %c0_0 = arith.constant 0 : index
    %0 = vector.load %arg1[%c0, %c0_0] : memref<256x32xf32, #tpu.memory_space<vmem>>, vector<256x32xf32>
    %1 = arith.truncf %0 : vector<256x32xf32> to vector<256x32xbf16>
    %c0_1 = arith.constant 0 : index
    %c0_2 = arith.constant 0 : index
    %2 = vector.load %arg2[%c0_1, %c0_2] : memref<32x256xf32, #tpu.memory_space<vmem>>, vector<32x256xf32>
    %3 = arith.truncf %2 : vector<32x256xf32> to vector<32x256xbf16>
    %cst = arith.constant dense<0.000000e+00> : vector<256x256xf32>
    %4 = tpu.matmul %1, %3, %cst {dimension_numbers = #tpu.dot_dimension_numbers<[1], [0], [0], [1], [0, 0, 1, 1], [], []>} : vector<256x32xbf16>, vector<32x256xbf16>, vector<256x256xf32> -> vector<256x256xf32>
    %c0_3 = arith.constant 0 : index
    %c0_4 = arith.constant 0 : index
    %5 = vector.load %arg3[%c0_3, %c0_4] : memref<1x256xf32, #tpu.memory_space<vmem>>, vector<1x256xf32>
    %6 = vector.broadcast %5 : vector<1x256xf32> to vector<256x256xf32>
    %7 = arith.addf %4, %6 : vector<256x256xf32>
    %cst_5 = arith.constant 0.000000e+00 : f32
    %8 = vector.broadcast %cst_5 : f32 to vector<256x256xf32>
    %9 = arith.cmpf ogt, %7, %8 : vector<256x256xf32>
    %cst_6 = arith.constant 2.000000e-01 : f32
    %10 = vector.broadcast %cst_6 : f32 to vector<256x256xf32>
    %11 = arith.mulf %10, %7 : vector<256x256xf32>
    %12 = arith.select %9, %7, %11 : vector<256x256xi1>, vector<256x256xf32>
    %13 = arith.truncf %12 : vector<256x256xf32> to vector<256x256xbf16>
    %c0_7 = arith.constant 0 : index
    %c0_8 = arith.constant 0 : index
    %14 = vector.load %arg4[%c0_7, %c0_8] : memref<256x128xf32, #tpu.memory_space<vmem>>, vector<256x128xf32>
    %15 = arith.truncf %14 : vector<256x128xf32> to vector<256x128xbf16>
    %cst_9 = arith.constant dense<0.000000e+00> : vector<256x128xf32>
    %16 = tpu.matmul %13, %15, %cst_9 {dimension_numbers = #tpu.dot_dimension_numbers<[1], [0], [0], [1], [0, 0, 1, 1], [], []>} : vector<256x256xbf16>, vector<256x128xbf16>, vector<256x128xf32> -> vector<256x128xf32>
    %c0_10 = arith.constant 0 : index
    %c0_11 = arith.constant 0 : index
    %17 = vector.load %arg5[%c0_10, %c0_11] : memref<1x128xf32, #tpu.memory_space<vmem>>, vector<1x128xf32>
    %18 = vector.broadcast %17 : vector<1x128xf32> to vector<256x128xf32>
    %19 = arith.addf %16, %18 : vector<256x128xf32>
    %cst_12 = arith.constant 0.000000e+00 : f32
    %20 = vector.broadcast %cst_12 : f32 to vector<256x128xf32>
    %21 = arith.cmpf ogt, %19, %20 : vector<256x128xf32>
    %cst_13 = arith.constant 2.000000e-01 : f32
    %22 = vector.broadcast %cst_13 : f32 to vector<256x128xf32>
    %23 = arith.mulf %22, %19 : vector<256x128xf32>
    %24 = arith.select %21, %19, %23 : vector<256x128xi1>, vector<256x128xf32>
    %25 = arith.truncf %24 : vector<256x128xf32> to vector<256x128xbf16>
    %c0_14 = arith.constant 0 : index
    %c0_15 = arith.constant 0 : index
    %26 = vector.load %arg6[%c0_14, %c0_15] : memref<128x64xf32, #tpu.memory_space<vmem>>, vector<128x64xf32>
    %27 = arith.truncf %26 : vector<128x64xf32> to vector<128x64xbf16>
    %cst_16 = arith.constant dense<0.000000e+00> : vector<256x64xf32>
    %28 = tpu.matmul %25, %27, %cst_16 {dimension_numbers = #tpu.dot_dimension_numbers<[1], [0], [0], [1], [0, 0, 1, 1], [], []>} : vector<256x128xbf16>, vector<128x64xbf16>, vector<256x64xf32> -> vector<256x64xf32>
    %c0_17 = arith.constant 0 : index
    %c0_18 = arith.constant 0 : index
    %29 = vector.load %arg7[%c0_17, %c0_18] : memref<1x64xf32, #tpu.memory_space<vmem>>, vector<1x64xf32>
    %30 = vector.broadcast %29 : vector<1x64xf32> to vector<256x64xf32>
    %31 = arith.addf %28, %30 : vector<256x64xf32>
    %cst_19 = arith.constant 0.000000e+00 : f32
    %32 = vector.broadcast %cst_19 : f32 to vector<256x64xf32>
    %33 = arith.cmpf ogt, %31, %32 : vector<256x64xf32>
    %cst_20 = arith.constant 2.000000e-01 : f32
    %34 = vector.broadcast %cst_20 : f32 to vector<256x64xf32>
    %35 = arith.mulf %34, %31 : vector<256x64xf32>
    %36 = arith.select %33, %31, %35 : vector<256x64xi1>, vector<256x64xf32>
    %c0_21 = arith.constant 0 : index
    %c0_22 = arith.constant 0 : index
    %37 = vector.load %arg8[%c0_21, %c0_22] : memref<1x64xf32, #tpu.memory_space<vmem>>, vector<1x64xf32>
    %38 = vector.broadcast %37 : vector<1x64xf32> to vector<256x64xf32>
    %39 = arith.mulf %36, %38 : vector<256x64xf32>
    %cst_23 = arith.constant dense<0.000000e+00> : vector<256xf32>
    %40 = vector.multi_reduction <add>, %39, %cst_23 [1] : vector<256x64xf32> to vector<256xf32>
    %41 = vector.shape_cast %40 : vector<256xf32> to vector<256x1xf32>
    %c0_24 = arith.constant 0 : index
    %c0_25 = arith.constant 0 : index
    %42 = vector.load %arg9[%c0_24, %c0_25] : memref<1x1xf32, #tpu.memory_space<vmem>>, vector<1x1xf32>
    %43 = vector.broadcast %42 : vector<1x1xf32> to vector<256x1xf32>
    %44 = arith.addf %41, %43 : vector<256x1xf32>
    %45 = vector.shape_cast %44 : vector<256x1xf32> to vector<1x256xf32>
    %46 = math.absf %45 : vector<1x256xf32>
    %cst_26 = arith.constant 0.000000e+00 : f32
    %47 = vector.broadcast %cst_26 : f32 to vector<1x256xf32>
    %48 = arith.subf %47, %46 : vector<1x256xf32>
    %49 = math.exp %48 : vector<1x256xf32>
    %cst_27 = arith.constant 1.000000e+00 : f32
    %50 = vector.broadcast %cst_27 : f32 to vector<1x256xf32>
    %51 = arith.addf %50, %49 : vector<1x256xf32>
    %52 = tpu.reciprocal %51 {approx = true} : vector<1x256xf32> -> vector<1x256xf32>
    %cst_28 = arith.constant 0.000000e+00 : f32
    %53 = vector.broadcast %cst_28 : f32 to vector<1x256xf32>
    %54 = arith.cmpf oge, %45, %53 : vector<1x256xf32>
    %55 = arith.mulf %49, %52 : vector<1x256xf32>
    %56 = arith.select %54, %52, %55 : vector<1x256xi1>, vector<1x256xf32>
    %c0_29 = arith.constant 0 : index
    %c0_30 = arith.constant 0 : index
    %c0_31 = arith.constant 0 : index
    %57 = vector.load %arg10[%c0_29, %c0_30, %c0_31] : memref<1x1x256xf32, #tpu.memory_space<vmem>>, vector<1x1x256xf32>
    %58 = vector.shape_cast %57 : vector<1x1x256xf32> to vector<1x256xf32>
    %59 = vector.shape_cast %56 : vector<1x256xf32> to vector<1x1x256xf32>
    tpu.vector_store %arg10[%c0_29, %c0_30, %c0_31], %59 {strides = array<i32>} : memref<1x1x256xf32, #tpu.memory_space<vmem>>, vector<1x1x256xf32>,
    return
  }
  func.func @transform_0(%arg0: i32) -> (i32, i32) {
    %c0_i32 = arith.constant 0 : i32
    %c0_i32_0 = arith.constant 0 : i32
    return %arg0, %c0_i32 : i32, i32
  }
  func.func @transform_1(%arg0: i32) -> (i32, i32) {
    %c0_i32 = arith.constant 0 : i32
    %c0_i32_0 = arith.constant 0 : i32
    %c0_i32_1 = arith.constant 0 : i32
    return %c0_i32, %c0_i32_0 : i32, i32
  }
  func.func @transform_2(%arg0: i32) -> (i32, i32) {
    %c0_i32 = arith.constant 0 : i32
    %c0_i32_0 = arith.constant 0 : i32
    %c0_i32_1 = arith.constant 0 : i32
    return %c0_i32, %c0_i32_0 : i32, i32
  }
  func.func @transform_3(%arg0: i32) -> (i32, i32) {
    %c0_i32 = arith.constant 0 : i32
    %c0_i32_0 = arith.constant 0 : i32
    %c0_i32_1 = arith.constant 0 : i32
    return %c0_i32, %c0_i32_0 : i32, i32
  }
  func.func @transform_4(%arg0: i32) -> (i32, i32) {
    %c0_i32 = arith.constant 0 : i32
    %c0_i32_0 = arith.constant 0 : i32
    %c0_i32_1 = arith.constant 0 : i32
    return %c0_i32, %c0_i32_0 : i32, i32
  }
  func.func @transform_5(%arg0: i32) -> (i32, i32) {
    %c0_i32 = arith.constant 0 : i32
    %c0_i32_0 = arith.constant 0 : i32
    %c0_i32_1 = arith.constant 0 : i32
    return %c0_i32, %c0_i32_0 : i32, i32
  }
  func.func @transform_6(%arg0: i32) -> (i32, i32) {
    %c0_i32 = arith.constant 0 : i32
    %c0_i32_0 = arith.constant 0 : i32
    %c0_i32_1 = arith.constant 0 : i32
    return %c0_i32, %c0_i32_0 : i32, i32
  }
  func.func @transform_7(%arg0: i32) -> (i32, i32) {
    %c0_i32 = arith.constant 0 : i32
    %c0_i32_0 = arith.constant 0 : i32
    %c0_i32_1 = arith.constant 0 : i32
    return %c0_i32, %c0_i32_0 : i32, i32
  }
  func.func @transform_8(%arg0: i32) -> (i32, i32) {
    %c0_i32 = arith.constant 0 : i32
    %c0_i32_0 = arith.constant 0 : i32
    %c0_i32_1 = arith.constant 0 : i32
    return %c0_i32, %c0_i32_0 : i32, i32
  }
  func.func @transform_9(%arg0: i32) -> (i32, i32, i32) {
    %c0_i32 = arith.constant 0 : i32
    %c0_i32_0 = arith.constant 0 : i32
    %c0_i32_1 = arith.constant 0 : i32
    return %arg0, %c0_i32, %c0_i32_0 : i32, i32, i32
  }
}

</mosaic_0001>

<bundles_post_ra>
// kernel: tpu_custom_call.1
= control target key start
LH: loop header
LB: loop body
LE: loop exit
PB: predicated region body
PF: predicated region fallthrough
CT: control target
= control target key end

     0   :  { %s8016_s0 = inlined_call_operand.vmem [shape: f32[256,32], index: 0, kind: input, shape index: {}]   ;;  %s8017_s1 = inlined_call_operand.vmem [shape: f32[32,256], index: 1, kind: input, shape index: {}]   ;;  %s8018_s2 = inlined_call_operand.vmem [shape: f32[1,256], index: 2, kind: input, shape index: {}]   ;;  %s8019_s3 = inlined_call_operand.vmem [shape: f32[256,128], index: 3, kind: input, shape index: {}]   ;;  %s8020_s4 = inlined_call_operand.vmem [shape: f32[1,128], index: 4, kind: input, shape index: {}]   ;;  %s8021_s5 = inlined_call_operand.vmem [shape: f32[128,64], index: 5, kind: input, shape index: {}]   ;;  %s8022_s6 = inlined_call_operand.vmem [shape: f32[1,64], index: 6, kind: input, shape index: {}]   ;;  %s8023_s7 = inlined_call_operand.vmem [shape: f32[1,64], index: 7, kind: input, shape index: {}]   ;;  %s8024_s8 = inlined_call_operand.<no memory space> [shape: f32[1,1], index: 8, kind: input, shape index: {}]   ;;  %s8025_s9 = inlined_call_operand.hbm [shape: f32[1,1,256], index: 9, kind: output, shape index: {}]  }
   0x1   :  { %v14_v0 = vstv %s8024_s8 }
   0x2   :  { %15 = vst [vmem:[#allocation2] sm:$0x1] %v14_v0 }
   0x3   :  { %v85_v1 = vld [vmem:[%s8017_s1 + $0x8] sm:$0xff]  ;;  %v87_v2 = vld [vmem:[%s8017_s1 + $0x18] sm:$0xff]  ;;  %v84_v3 = vld [vmem:[%s8017_s1] sm:$0xff]  ;;  %v5572_v8 = vmov 0   ;;  %vm108_vm0 = vcmask 261120  }
   0x4   :  { %v93_v4 = vpack.c.bf16 %v87_v2, %v85_v1  ;;  %v86_v5 = vld [vmem:[%s8017_s1 + $0x10] sm:$0xff]  ;;  %v89_v6 = vld [vmem:[%s8017_s1 + $0x28] sm:$0xff]  ;;  %v91_v7 = vld [vmem:[%s8017_s1 + $0x38] sm:$0xff]  ;;  %189 = vmatprep.mubr.bf16.mxu0 %v5572_v8  ;;  %309 = vmatprep.mubr.bf16.mxu1 %v5572_v8 }
   0x5   :  { %v92_v9 = vpack.c.bf16 %v86_v5, %v84_v3  ;;  %v95_v10 = vpack.c.bf16 %v91_v7, %v89_v6  ;;  %v88_v11 = vld [vmem:[%s8017_s1 + $0x20] sm:$0xff]  ;;  %v90_v12 = vld [vmem:[%s8017_s1 + $0x30] sm:$0xff]  ;;  %5417 = vset.pattern.permute.xlu1 %v5572_v8  ;;  %5418 = vset.pattern.permute.xlu0 %v5572_v8  ;;  %v37_v15 = vld [vmem:[%s8016_s0 + $0x8] sm:$0xff] }
   0x6   :  { %157 = vmatprep.subr.bf16.mxu0 %v93_v4  ;;  %5410 = vmatprep.subr.bf16.mxu1 %v93_v4  ;;  %v94_v13 = vpack.c.bf16 %v90_v12, %v88_v11  ;;  %v36_v14 = vld [vmem:[%s8016_s0] sm:$0xff]  ;;  %v61_v18 = vld [vmem:[%s8016_s0 + $0xc8] sm:$0xff]  ;;  %v38_v19 = vld [vmem:[%s8016_s0 + $0x10] sm:$0xff] }
   0x7   :  { %158 = vmatpush1.bf16.msra.mxu0 %v92_v9  ;;  %5412 = vmatpush1.bf16.msra.mxu1 %v92_v9  ;;  %v68_v16 = vpack.c.bf16 %v37_v15, %v36_v14  ;;  %v60_v17 = vld [vmem:[%s8016_s0 + $0xc0] sm:$0xff]  ;;  %v39_v20 = vld [vmem:[%s8016_s0 + $0x18] sm:$0xff]  ;;  %v62_v22 = vld [vmem:[%s8016_s0 + $0xd0] sm:$0xff] }
   0x8   :  { %159 = vmatprep.subr.bf16.mxu0 %v95_v10  ;;  %5411 = vmatprep.subr.bf16.mxu1 %v95_v10  ;;  %v80_v21 = vpack.c.bf16 %v61_v18, %v60_v17  ;;  %v63_v23 = vld [vmem:[%s8016_s0 + $0xd8] sm:$0xff]  ;;  %v590_v24 = vld [vmem:[%s8019_s3 + $0x80] sm:$0xff]  ;;  %v591_v25 = vld [vmem:[%s8019_s3 + $0x88] sm:$0xff]  ;;  %v69_v30 = vpack.c.bf16 %v39_v20, %v38_v19 }
   0x9   :  { %v614_v26 = vpack.c.bf16 %v591_v25, %v590_v24  ;;  %v574_v27 = vld [vmem:[%s8019_s3] sm:$0xff]  ;;  %v575_v28 = vld [vmem:[%s8019_s3 + $0x8] sm:$0xff]  ;;  %v592_v29 = vld [vmem:[%s8019_s3 + $0x90] sm:$0xff]  ;;  %v81_v39 = vpack.c.bf16 %v63_v23, %v62_v22 }
   0xa   :  { %v606_v31 = vpack.c.bf16 %v575_v28, %v574_v27  ;;  %v593_v32 = vld [vmem:[%s8019_s3 + $0x98] sm:$0xff]  ;;  %v576_v33 = vld [vmem:[%s8019_s3 + $0x10] sm:$0xff]  ;;  %v594_v36 = vld [vmem:[%s8019_s3 + $0xa0] sm:$0xff] }
   0xb   :  { %160 = vmatpush1.bf16.msra.mxu0 %v94_v13  ;;  %5413 = vmatpush1.bf16.msra.mxu1 %v94_v13  ;;  %v577_v34 = vld [vmem:[%s8019_s3 + $0x18] sm:$0xff]  ;;  %v615_v35 = vpack.c.bf16 %v593_v32, %v592_v29  ;;  %v595_v37 = vld [vmem:[%s8019_s3 + $0xa8] sm:$0xff]  ;;  %v578_v41 = vld [vmem:[%s8019_s3 + $0x20] sm:$0xff] }
   0xc   :  { %5226 = vmatprep.subr.bf16.mxu1 %v614_v26  ;;  %v607_v38 = vpack.c.bf16 %v577_v34, %v576_v33  ;;  %v616_v40 = vpack.c.bf16 %v595_v37, %v594_v36  ;;  %v579_v42 = vld [vmem:[%s8019_s3 + $0x28] sm:$0xff]  ;;  %v596_v43 = vld [vmem:[%s8019_s3 + $0xb0] sm:$0xff]  ;;  %v597_v44 = vld [vmem:[%s8019_s3 + $0xb8] sm:$0xff] }
   0xd   :  { %v40_v45 = vld [vmem:[%s8016_s0 + $0x20] sm:$0xff]  ;;  %v41_v46 = vld [vmem:[%s8016_s0 + $0x28] sm:$0xff]  ;;  %v608_v47 = vpack.c.bf16 %v579_v42, %v578_v41 }
   0xe   :  { %5142 = vmatmul.mubr.msk.bf16.vlgmr.msra.gmra.mrb[0].mxu0 %vm108_vm0, %v68_v16  ;;  %5154 = vmatmul.mubr.msk.bf16.vlgmr.msra.gmra.mrb[0].mxu1 %vm108_vm0, %v80_v21 }
   0xf   :  { %199 = vmatprep.mubr.bf16.mxu0 %v5572_v8  ;;  %319 = vmatprep.mubr.bf16.mxu1 %v5572_v8 }
  0x10   :  { %5227 = vmatpush3.bf16.msra.mxu1 %v606_v31 }
  0x11   :  { %5228 = vmatprep.subr.bf16.mxu1 %v615_v35 }
  0x14   :  { %5229 = vmatpush3.bf16.msra.mxu1 %v607_v38 }
  0x16   :  { %5143 = vmatmul.mubr.msk.bf16.gmra.mrb[4].mxu0 %vm108_vm0, %v69_v30 }
  0x17   :  { %209 = vmatprep.mubr.bf16.mxu0 %v5572_v8 }
  0x18   :  { %16 = vsyncpa [#allocation4], 0  ;;  %5155 = vmatmul.mubr.msk.bf16.gmra.mrb[4].mxu1 %vm108_vm0, %v81_v39  ;;  %v64_v48 = vld [vmem:[%s8016_s0 + $0xe0] sm:$0xff]  ;;  %5230 = vmatprep.subr.bf16.mxu1 %v616_v40  ;;  %v617_v49 = vpack.c.bf16 %v597_v44, %v596_v43  ;;  %v580_v50 = vld [vmem:[%s8019_s3 + $0x30] sm:$0xff]  ;;  %v70_v52 = vpack.c.bf16 %v41_v46, %v40_v45  ;;  %v8026_v46 = vlaneseq }
  0x19   :  { %v581_v51 = vld [vmem:[%s8019_s3 + $0x38] sm:$0xff]  ;;  %329 = vmatprep.mubr.bf16.mxu1 %v5572_v8  ;;  %v65_v53 = vld [vmem:[%s8016_s0 + $0xe8] sm:$0xff]  ;;  %v598_v54 = vld [vmem:[%s8019_s3 + $0xc0] sm:$0xff]  ;;  %5231 = vmatpush3.bf16.msra.mxu1 %v608_v47 }
  0x1a   :  { %v599_v55 = vld [vmem:[%s8019_s3 + $0xc8] sm:$0xff]  ;;  %v609_v56 = vpack.c.bf16 %v581_v51, %v580_v50  ;;  %v82_v57 = vpack.c.bf16 %v65_v53, %v64_v48  ;;  %5232 = vmatprep.subr.bf16.mxu1 %v617_v49  ;;  %v582_v59 = vld [vmem:[%s8019_s3 + $0x40] sm:$0xff]  ;;  %v600_v61 = vld [vmem:[%s8019_s3 + $0xd0] sm:$0xff]  ;;  %v5879_v47 = vshrl.u32 %v8026_v46, 7 }
  0x1b   :  { %v618_v58 = vpack.c.bf16 %v599_v55, %v598_v54  ;;  %v583_v60 = vld [vmem:[%s8019_s3 + $0x48] sm:$0xff]  ;;  %v601_v62 = vld [vmem:[%s8019_s3 + $0xd8] sm:$0xff]  ;;  %v42_v63 = vld [vmem:[%s8016_s0 + $0x30] sm:$0xff] }
  0x1c   :  { %v43_v0 = vld [vmem:[%s8016_s0 + $0x38] sm:$0xff]  ;;  %v610_v1 = vpack.c.bf16 %v583_v60, %v582_v59  ;;  %v619_v2 = vpack.c.bf16 %v601_v62, %v600_v61  ;;  %v66_v4 = vld [vmem:[%s8016_s0 + $0xf0] sm:$0xff]  ;;  %v44_v7 = vld [vmem:[%s8016_s0 + $0x40] sm:$0xff]  ;;  %8042 = vst [vmem:[#allocation6_spill] sm:$0xff] %v5879_v47  ;;  %v100_v48 = vsub.s32 0, %v5879_v47  ;;  %v104_v50 = vsub.s32 1, %v5879_v47 }
  0x1d   :  { %5233 = vmatpush3.bf16.msra.mxu1 %v609_v56  ;;  %v71_v3 = vpack.c.bf16 %v43_v0, %v42_v63  ;;  %v67_v5 = vld [vmem:[%s8016_s0 + $0xf8] sm:$0xff]  ;;  %v45_v9 = vld [vmem:[%s8016_s0 + $0x48] sm:$0xff]  ;;  %v46_v11 = vld [vmem:[%s8016_s0 + $0x50] sm:$0xff] }
  0x1e   :  { %5144 = vmatmul.mubr.msk.bf16.gmra.mrb[8].mxu0 %vm108_vm0, %v70_v52  ;;  %5234 = vmatprep.subr.bf16.mxu1 %v618_v58  ;;  %v83_v6 = vpack.c.bf16 %v67_v5, %v66_v4  ;;  %v72_v10 = vpack.c.bf16 %v45_v9, %v44_v7  ;;  %v47_v12 = vld [vmem:[%s8016_s0 + $0x58] sm:$0xff]  ;;  %v48_v14 = vld [vmem:[%s8016_s0 + $0x60] sm:$0xff]  ;;  %v49_v15 = vld [vmem:[%s8016_s0 + $0x68] sm:$0xff] }
  0x1f   :  { %219 = vmatprep.mubr.bf16.mxu0 %v5572_v8  ;;  %v73_v13 = vpack.c.bf16 %v47_v12, %v46_v11  ;;  %v74_v16 = vpack.c.bf16 %v49_v15, %v48_v14  ;;  %v50_v17 = vld [vmem:[%s8016_s0 + $0x70] sm:$0xff]  ;;  %v51_v18 = vld [vmem:[%s8016_s0 + $0x78] sm:$0xff]  ;;  %v52_v20 = vld [vmem:[%s8016_s0 + $0x80] sm:$0xff] }
  0x20   :  { %5156 = vmatmul.mubr.msk.bf16.gmra.mrb[8].mxu1 %vm108_vm0, %v82_v57  ;;  %v75_v19 = vpack.c.bf16 %v51_v18, %v50_v17  ;;  %v53_v21 = vld [vmem:[%s8016_s0 + $0x88] sm:$0xff]  ;;  %v54_v23 = vld [vmem:[%s8016_s0 + $0x90] sm:$0xff]  ;;  %v55_v24 = vld [vmem:[%s8016_s0 + $0x98] sm:$0xff] }
  0x21   :  { %339 = vmatprep.mubr.bf16.mxu1 %v5572_v8  ;;  %5235 = vmatpush3.bf16.msra.mxu1 %v610_v1  ;;  %v76_v22 = vpack.c.bf16 %v53_v21, %v52_v20  ;;  %v77_v25 = vpack.c.bf16 %v55_v24, %v54_v23  ;;  %v56_v26 = vld [vmem:[%s8016_s0 + $0xa0] sm:$0xff]  ;;  %v57_v27 = vld [vmem:[%s8016_s0 + $0xa8] sm:$0xff]  ;;  %v58_v29 = vld [vmem:[%s8016_s0 + $0xb0] sm:$0xff] }
  0x22   :  { %5236 = vmatprep.subr.bf16.mxu1 %v619_v2  ;;  %v78_v28 = vpack.c.bf16 %v57_v27, %v56_v26  ;;  %v59_v30 = vld [vmem:[%s8016_s0 + $0xb8] sm:$0xff]  ;;  %v584_v31 = vld [vmem:[%s8019_s3 + $0x50] sm:$0xff]  ;;  %v602_v35 = vld [vmem:[%s8019_s3 + $0xe0] sm:$0xff] }
  0x23   :  { %v585_v32 = vld [vmem:[%s8019_s3 + $0x58] sm:$0xff]  ;;  %v79_v34 = vpack.c.bf16 %v59_v30, %v58_v29  ;;  %v586_v37 = vld [vmem:[%s8019_s3 + $0x60] sm:$0xff]  ;;  %v587_v38 = vld [vmem:[%s8019_s3 + $0x68] sm:$0xff] }
  0x24   :  { %v611_v33 = vpack.c.bf16 %v585_v32, %v584_v31  ;;  %v612_v39 = vpack.c.bf16 %v587_v38, %v586_v37  ;;  %v604_v40 = vld [vmem:[%s8019_s3 + $0xf0] sm:$0xff]  ;;  %v605_v41 = vld [vmem:[%s8019_s3 + $0xf8] sm:$0xff]  ;;  %v96_v49 = vld [vmem:[%s8018_s2] sm:$0x3] }
  0x25   :  { %v621_v42 = vpack.c.bf16 %v605_v41, %v604_v40  ;;  %v588_v43 = vld [vmem:[%s8019_s3 + $0x70] sm:$0xff]  ;;  %v589_v44 = vld [vmem:[%s8019_s3 + $0x78] sm:$0xff]  ;;  %v5886_v51 = vrot.slane %v96_v49, %v100_v48  ;;  %v5888_v52 = vrot.slane %v96_v49, %v104_v50 }
  0x26   :  { %5145 = vmatmul.mubr.msk.bf16.gmra.mrb[12].mxu0 %vm108_vm0, %v71_v3  ;;  %5237 = vmatpush3.bf16.msra.mxu1 %v611_v33  ;;  %v613_v45 = vpack.c.bf16 %v589_v44, %v588_v43 }
  0x27   :  { %229 = vmatprep.mubr.bf16.mxu0 %v5572_v8 }
  0x28   :  { %5157 = vmatmul.mubr.msk.bf16.gmra.mrb[12].mxu1 %vm108_vm0, %v83_v6 }
  0x2e   :  { %5146 = vmatmul.mubr.msk.bf16.gmra.mrb[16].mxu0 %vm108_vm0, %v72_v10 }
  0x2f   :  { %239 = vmatprep.mubr.bf16.mxu0 %v5572_v8 }
  0x36   :  { %5147 = vmatmul.mubr.msk.bf16.gmra.mrb[20].mxu0 %vm108_vm0, %v73_v13 }
  0x37   :  { %249 = vmatprep.mubr.bf16.mxu0 %v5572_v8 }
  0x3e   :  { %5148 = vmatmul.mubr.msk.bf16.gmra.mrb[24].mxu0 %vm108_vm0, %v74_v16 }
  0x3f   :  { %259 = vmatprep.mubr.bf16.mxu0 %v5572_v8 }
  0x46   :  { %5149 = vmatmul.mubr.msk.bf16.gmra.mrb[28].mxu0 %vm108_vm0, %v75_v19 }
  0x47   :  { %269 = vmatprep.mubr.bf16.mxu0 %v5572_v8 }
  0x4e   :  { %5150 = vmatmul.mubr.msk.bf16.gmra.mrb[32].mxu0 %vm108_vm0, %v76_v22 }
  0x4f   :  { %279 = vmatprep.mubr.bf16.mxu0 %v5572_v8 }
  0x56   :  { %5151 = vmatmul.mubr.msk.bf16.gmra.mrb[36].mxu0 %vm108_vm0, %v77_v25 }
  0x57   :  { %289 = vmatprep.mubr.bf16.mxu0 %v5572_v8 }
  0x5e   :  { %5152 = vmatmul.mubr.msk.bf16.gmra.mrb[40].mxu0 %vm108_vm0, %v78_v28 }
  0x5f   :  { %299 = vmatprep.mubr.bf16.mxu0 %v5572_v8  ;;  %v603_v8 = vld [vmem:[%s8019_s3 + $0xe8] sm:$0xff] }
  0x60   :  { %v620_v36 = vpack.c.bf16 %v603_v8, %v602_v35 }
  0x62   :  { %5238 = vmatprep.subr.bf16.mxu1 %v620_v36 }
  0x63   :  { %5239 = vmatpush3.bf16.msra.mxu1 %v612_v39 }
  0x64   :  { %5240 = vmatprep.subr.bf16.mxu1 %v621_v42 }
  0x66   :  { %5153 = vmatmul.mubr.msk.bf16.gmra.mrb[44].mxu0 %vm108_vm0, %v79_v34 }
  0x67   :  { %5241 = vmatpush3.bf16.msra.mxu1 %v613_v45 }
  0xe1   :  { %v191_v53 = vpop.f32.mrb[0].mxu0  ;;  %v311_v61 = vpop.f32.mrb[0].mxu1 }
  0xe2   :  { %v192_v54 = vadd.f32 %v191_v53, %v5886_v51  ;;  %v193_v55 = vpop.f32.mrb[1].mxu0  ;;  %v313_v0 = vpop.f32.mrb[1].mxu1  ;;  %v312_v2 = vadd.f32 %v311_v61, %v5886_v51 }
  0xe3   :  { %v194_v56 = vadd.f32 %v193_v55, %v5888_v52  ;;  %v195_v57 = vpop.f32.mrb[2].mxu0  ;;  %v314_v3 = vadd.f32 %v313_v0, %v5888_v52  ;;  %v315_v4 = vpop.f32.mrb[2].mxu1 }
  0xe4   :  { %v414_v58 = vmul.f32 0.2, %v192_v54  ;;  %v196_v59 = vadd.f32 %v195_v57, %v5886_v51  ;;  %v197_v60 = vpop.f32.mrb[3].mxu0  ;;  %vm350_vm1 = vcmp.gt.f32.partialorder %v192_v54, 0.0  ;;  %v317_v6 = vpop.f32.mrb[3].mxu1  ;;  %v316_v15 = vadd.f32 %v315_v4, %v5886_v51 }
  0xe5   :  { %vm351_vm2 = vcmp.gt.f32.partialorder %v194_v56, 0.0  ;;  %v415_v62 = vmul.f32 0.2, %v194_v56  ;;  %v198_v63 = vadd.f32 %v197_v60, %v5888_v52  ;;  %v463_v11 = vmul.f32 0.2, %v314_v3 }
  0xe6   :  { %vm352_vm3 = vcmp.gt.f32.partialorder %v196_v59, 0.0  ;;  %v416_v1 = vmul.f32 0.2, %v196_v59  ;;  %v478_v7 = vsel %vm350_vm1, %v192_v54, %v414_v58  ;;  %vm399_vm5 = vcmp.gt.f32.partialorder %v314_v3, 0.0 }
  0xe7   :  { %vm353_vm4 = vcmp.gt.f32.partialorder %v198_v63, 0.0  ;;  %v417_v5 = vmul.f32 0.2, %v198_v63  ;;  %v479_v10 = vsel %vm351_vm2, %v194_v56, %v415_v62  ;;  %v462_v19 = vmul.f32 0.2, %v312_v2 }
  0xe8   :  { %v480_v9 = vsel %vm352_vm3, %v196_v59, %v416_v1  ;;  %vm398_vm6 = vcmp.gt.f32.partialorder %v312_v2, 0.0  ;;  %v318_v22 = vadd.f32 %v317_v6, %v5888_v52  ;;  %v464_v26 = vmul.f32 0.2, %v316_v15 }
  0xe9   :  { %v542_v12 = vpack.c.bf16 %v480_v9, %v478_v7  ;;  %v201_v13 = vpop.f32.mrb[4].mxu0  ;;  %v481_v14 = vsel %vm353_vm4, %v198_v63, %v417_v5  ;;  %v5901_v27 = vsel %vm399_vm5, %v314_v3, %v463_v11  ;;  %vm400_vm8 = vcmp.gt.f32.partialorder %v316_v15, 0.0 }
  0xea   :  { %v202_v16 = vadd.f32 %v201_v13, %v5886_v51  ;;  %v203_v17 = vpop.f32.mrb[5].mxu0  ;;  %v543_v18 = vpack.c.bf16 %v481_v14, %v479_v10  ;;  %v5905_v33 = vsel %vm398_vm6, %v312_v2, %v462_v19  ;;  %v465_v35 = vmul.f32 0.2, %v318_v22 }
  0xeb   :  { %v204_v20 = vadd.f32 %v203_v17, %v5888_v52  ;;  %v205_v21 = vpop.f32.mrb[6].mxu0  ;;  %v321_v30 = vpop.f32.mrb[4].mxu1  ;;  %vm401_vm12 = vcmp.gt.f32.partialorder %v318_v22, 0.0  ;;  %v5912_v40 = vsel %vm400_vm8, %v316_v15, %v464_v26 }
  0xec   :  { %v418_v23 = vmul.f32 0.2, %v202_v16  ;;  %v206_v24 = vadd.f32 %v205_v21, %v5886_v51  ;;  %v207_v25 = vpop.f32.mrb[7].mxu0  ;;  %661 = vmatprep.mubr.bf16.mxu1 %v543_v18  ;;  %vm354_vm7 = vcmp.gt.f32.partialorder %v202_v16, 0.0  ;;  %v323_v32 = vpop.f32.mrb[5].mxu1  ;;  %v5908_v8 = vadd.f32 %v321_v30, %v5886_v51 }
  0xed   :  { %v419_v28 = vmul.f32 0.2, %v204_v20  ;;  %v208_v29 = vadd.f32 %v207_v25, %v5888_v52  ;;  %662 = vmatmul.mubr.bf16.vlgmr.msra.gmra.mrb[16].mxu1 %v542_v12  ;;  %vm355_vm9 = vcmp.gt.f32.partialorder %v204_v20, 0.0  ;;  %v325_v36 = vpop.f32.mrb[6].mxu1  ;;  %v5916_v45 = vadd.f32 %v323_v32, %v5888_v52 }
  0xee   :  { %vm356_vm10 = vcmp.gt.f32.partialorder %v206_v24, 0.0  ;;  %v420_v31 = vmul.f32 0.2, %v206_v24  ;;  %v482_v37 = vsel %vm354_vm7, %v202_v16, %v418_v23  ;;  %v327_v39 = vpop.f32.mrb[7].mxu1  ;;  %v5920_v53 = vadd.f32 %v325_v36, %v5886_v51 }
  0xef   :  { %vm357_vm11 = vcmp.gt.f32.partialorder %v208_v29, 0.0  ;;  %v421_v34 = vmul.f32 0.2, %v208_v29  ;;  %v483_v42 = vsel %vm355_vm9, %v204_v20, %v419_v28  ;;  %v5924_v56 = vmul.f32 0.2, %v5908_v8 }
  0xf0   :  { %v484_v38 = vsel %vm356_vm10, %v206_v24, %v420_v31  ;;  %v5926_v57 = vsel %vm401_vm12, %v318_v22, %v465_v35  ;;  %v566_v58 = vpack.c.bf16 %v5912_v40, %v5905_v33  ;;  %vm402_vm14 = vcmp.gt.f32.partialorder %v5908_v8, 0.0  ;;  %v6153_v40 = vld [vmem:[%s8020_s4] ss:$0 sm:$0xff] }
  0xf1   :  { %v211_v41 = vpop.f32.mrb[8].mxu0  ;;  %v485_v43 = vsel %vm357_vm11, %v208_v29, %v421_v34  ;;  %v544_v44 = vpack.c.bf16 %v484_v38, %v482_v37  ;;  %v567_v62 = vpack.c.bf16 %v5926_v57, %v5901_v27  ;;  %vm403_vm15 = vcmp.gt.f32.partialorder %v5916_v45, 0.0  ;;  %v915_v27 = vld [vmem:[%s8021_s5 + $0x68] sm:$0xff] }
  0xf2   :  { %v212_v48 = vadd.f32 %v211_v41, %v5886_v51  ;;  %v213_v49 = vpop.f32.mrb[9].mxu0  ;;  %v545_v50 = vpack.c.bf16 %v485_v43, %v483_v42  ;;  %v467_v2 = vmul.f32 0.2, %v5916_v45  ;;  %vm404_vm2 = vcmp.gt.f32.partialorder %v5920_v53, 0.0 }
  0xf3   :  { %v214_v54 = vadd.f32 %v213_v49, %v5888_v52  ;;  %v215_v55 = vpop.f32.mrb[10].mxu0  ;;  %v331_v63 = vpop.f32.mrb[8].mxu1  ;;  %v328_v5 = vadd.f32 %v327_v39, %v5888_v52  ;;  %v468_v20 = vmul.f32 0.2, %v5920_v53 }
  0xf4   :  { %vm358_vm13 = vcmp.gt.f32.partialorder %v212_v48, 0.0  ;;  %v422_v59 = vmul.f32 0.2, %v212_v48  ;;  %v216_v60 = vadd.f32 %v215_v55, %v5886_v51  ;;  %v217_v61 = vpop.f32.mrb[11].mxu0  ;;  %669 = vmatprep.mubr.bf16.mxu1 %v545_v50  ;;  %v333_v3 = vpop.f32.mrb[9].mxu1  ;;  %v5941_v10 = vadd.f32 %v331_v63, %v5886_v51 }
  0xf5   :  { %v423_v0 = vmul.f32 0.2, %v214_v54  ;;  %v218_v1 = vadd.f32 %v217_v61, %v5888_v52  ;;  %670 = vmatmul.mubr.bf16.gmra.mrb[20].mxu1 %v544_v44  ;;  %vm359_vm0 = vcmp.gt.f32.partialorder %v214_v54, 0.0  ;;  %v335_v6 = vpop.f32.mrb[10].mxu1  ;;  %v5944_v13 = vadd.f32 %v333_v3, %v5888_v52 }
  0xf6   :  { %vm360_vm1 = vcmp.gt.f32.partialorder %v216_v60, 0.0  ;;  %v424_v4 = vmul.f32 0.2, %v216_v60  ;;  %v486_v9 = vsel %vm358_vm13, %v212_v48, %v422_v59  ;;  %v337_v11 = vpop.f32.mrb[11].mxu1  ;;  %v5947_v14 = vadd.f32 %v335_v6, %v5886_v51 }
  0xf7   :  { %vm361_vm3 = vcmp.gt.f32.partialorder %v218_v1, 0.0  ;;  %v425_v7 = vmul.f32 0.2, %v218_v1  ;;  %v5950_v15 = vadd.f32 %v337_v11, %v5888_v52  ;;  %v487_v17 = vsel %vm359_vm0, %v214_v54, %v423_v0 }
  0xf8   :  { %v488_v12 = vsel %vm360_vm1, %v216_v60, %v424_v4  ;;  %v469_v24 = vmul.f32 0.2, %v328_v5  ;;  %v5956_v25 = vmul.f32 0.2, %v5941_v10  ;;  %vm405_vm4 = vcmp.gt.f32.partialorder %v328_v5, 0.0 }
  0xf9   :  { %v221_v16 = vpop.f32.mrb[12].mxu0  ;;  %v489_v18 = vsel %vm361_vm3, %v218_v1, %v425_v7  ;;  %v546_v19 = vpack.c.bf16 %v488_v12, %v486_v9  ;;  %v5960_v29 = vmul.f32 0.2, %v5944_v13  ;;  %v5963_v30 = vmul.f32 0.2, %v5947_v14 }
  0xfa   :  { %v222_v21 = vadd.f32 %v221_v16, %v5886_v51  ;;  %v223_v22 = vpop.f32.mrb[13].mxu0  ;;  %v547_v23 = vpack.c.bf16 %v489_v18, %v487_v17  ;;  %vm407_vm6 = vcmp.gt.f32.partialorder %v5944_v13, 0.0  ;;  %v5968_v35 = vmul.f32 0.2, %v5950_v15 }
  0xfb   :  { %v224_v26 = vadd.f32 %v223_v22, %v5888_v52  ;;  %v225_v28 = vpop.f32.mrb[14].mxu0  ;;  %vm409_vm8 = vcmp.gt.f32.partialorder %v5950_v15, 0.0  ;;  %v5975_v38 = vsel %vm403_vm15, %v5916_v45, %v467_v2  ;;  %v341_v39 = vpop.f32.mrb[12].mxu1  ;;  %vm406_vm10 = vcmp.gt.f32.partialorder %v5941_v10, 0.0 }
  0xfc   :  { %vm362_vm5 = vcmp.gt.f32.partialorder %v222_v21, 0.0  ;;  %v426_v31 = vmul.f32 0.2, %v222_v21  ;;  %v226_v32 = vadd.f32 %v225_v28, %v5886_v51  ;;  %v227_v34 = vpop.f32.mrb[15].mxu0  ;;  %677 = vmatprep.mubr.bf16.mxu1 %v547_v23  ;;  %v5980_v43 = vsel %vm405_vm4, %v328_v5, %v469_v24  ;;  %v343_v44 = vpop.f32.mrb[13].mxu1 }
  0xfd   :  { %vm363_vm7 = vcmp.gt.f32.partialorder %v224_v26, 0.0  ;;  %v427_v36 = vmul.f32 0.2, %v224_v26  ;;  %v228_v37 = vadd.f32 %v227_v34, %v5888_v52  ;;  %678 = vmatmul.mubr.bf16.gmra.mrb[24].mxu1 %v546_v19  ;;  %vm408_vm12 = vcmp.gt.f32.partialorder %v5947_v14, 0.0  ;;  %v345_v50 = vpop.f32.mrb[14].mxu1 }
  0xfe   :  { %vm364_vm9 = vcmp.gt.f32.partialorder %v226_v32, 0.0  ;;  %v428_v41 = vmul.f32 0.2, %v226_v32  ;;  %v490_v42 = vsel %vm362_vm5, %v222_v21, %v426_v31  ;;  %v569_v45 = vpack.c.bf16 %v5980_v43, %v5975_v38  ;;  %v347_v61 = vpop.f32.mrb[15].mxu1 }
  0xff   :  { %vm365_vm11 = vcmp.gt.f32.partialorder %v228_v37, 0.0  ;;  %v429_v48 = vmul.f32 0.2, %v228_v37  ;;  %v491_v49 = vsel %vm363_vm7, %v224_v26, %v427_v36  ;;  %v342_v55 = vadd.f32 %v341_v39, %v5886_v51 }
 0x100   :  { %v492_v54 = vsel %vm364_vm9, %v226_v32, %v428_v41  ;;  %v344_v59 = vadd.f32 %v343_v44, %v5888_v52  ;;  %v5991_v60 = vsel %vm402_vm14, %v5908_v8, %v5924_v56  ;;  %v5996_v2 = vsel %vm404_vm2, %v5920_v53, %v468_v20 }
 0x101   :  { %v231_v63 = vpop.f32.mrb[16].mxu0  ;;  %v493_v0 = vsel %vm365_vm11, %v228_v37, %v429_v48  ;;  %v548_v1 = vpack.c.bf16 %v492_v54, %v490_v42  ;;  %v346_v3 = vadd.f32 %v345_v50, %v5886_v51  ;;  %vm410_vm13 = vcmp.gt.f32.partialorder %v342_v55, 0.0 }
 0x102   :  { %v232_v4 = vadd.f32 %v231_v63, %v5886_v51  ;;  %v233_v5 = vpop.f32.mrb[17].mxu0  ;;  %v549_v6 = vpack.c.bf16 %v493_v0, %v491_v49  ;;  %v474_v7 = vmul.f32 0.2, %v342_v55  ;;  %vm411_vm14 = vcmp.gt.f32.partialorder %v344_v59, 0.0 }
 0x103   :  { %v234_v8 = vadd.f32 %v233_v5, %v5888_v52  ;;  %v235_v56 = vpop.f32.mrb[18].mxu0  ;;  %v475_v9 = vmul.f32 0.2, %v344_v59  ;;  %v568_v11 = vpack.c.bf16 %v5996_v2, %v5991_v60  ;;  %vm412_vm0 = vcmp.gt.f32.partialorder %v346_v3, 0.0 }
 0x104   :  { %vm366_vm15 = vcmp.gt.f32.partialorder %v232_v4, 0.0  ;;  %v430_v12 = vmul.f32 0.2, %v232_v4  ;;  %v236_v53 = vadd.f32 %v235_v56, %v5886_v51  ;;  %v237_v16 = vpop.f32.mrb[19].mxu0  ;;  %685 = vmatprep.mubr.bf16.mxu1 %v549_v6  ;;  %v476_v19 = vmul.f32 0.2, %v346_v3 }
 0x105   :  { %vm367_vm1 = vcmp.gt.f32.partialorder %v234_v8, 0.0  ;;  %v431_v17 = vmul.f32 0.2, %v234_v8  ;;  %v238_v18 = vadd.f32 %v237_v16, %v5888_v52  ;;  %686 = vmatmul.mubr.bf16.gmra.mrb[28].mxu1 %v548_v1  ;;  %v348_v22 = vadd.f32 %v347_v61, %v5888_v52  ;;  %v903_v61 = vld [vmem:[%s8021_s5 + $0x8] sm:$0xff]  ;;  %v904_v1 = vld [vmem:[%s8021_s5 + $0x10] sm:$0xff] }
 0x106   :  { %vm368_vm2 = vcmp.gt.f32.partialorder %v236_v53, 0.0  ;;  %v432_v20 = vmul.f32 0.2, %v236_v53  ;;  %v494_v21 = vsel %vm366_vm15, %v232_v4, %v430_v12  ;;  %v6010_v26 = vsel %vm407_vm6, %v5944_v13, %v5960_v29  ;;  %v905_v4 = vld [vmem:[%s8021_s5 + $0x18] sm:$0xff]  ;;  %v906_v12 = vld [vmem:[%s8021_s5 + $0x20] sm:$0xff] }
 0x107   :  { %vm369_vm3 = vcmp.gt.f32.partialorder %v238_v18, 0.0  ;;  %v433_v23 = vmul.f32 0.2, %v238_v18  ;;  %v495_v24 = vsel %vm367_vm1, %v234_v8, %v431_v17  ;;  %vm413_vm4 = vcmp.gt.f32.partialorder %v348_v22, 0.0 }
 0x108   :  { %v496_v28 = vsel %vm368_vm2, %v236_v53, %v432_v20  ;;  %v477_v31 = vmul.f32 0.2, %v348_v22  ;;  %v6016_v32 = vsel %vm409_vm8, %v5950_v15, %v5968_v35  ;;  %v6024_v13 = vsel %vm406_vm10, %v5941_v10, %v5956_v25  ;;  %v907_v53 = vld [vmem:[%s8021_s5 + $0x28] sm:$0xff] }
 0x109   :  { %v241_v34 = vpop.f32.mrb[20].mxu0  ;;  %v497_v36 = vsel %vm369_vm3, %v238_v18, %v433_v23  ;;  %v550_v37 = vpack.c.bf16 %v496_v28, %v494_v21  ;;  %v571_v39 = vpack.c.bf16 %v6016_v32, %v6010_v26  ;;  %v6031_v15 = vsel %vm408_vm12, %v5947_v14, %v5963_v30 }
 0x10a   :  { %v242_v29 = vadd.f32 %v241_v34, %v5886_v51  ;;  %v243_v41 = vpop.f32.mrb[21].mxu0  ;;  %v551_v42 = vpack.c.bf16 %v497_v36, %v495_v24  ;;  %v6034_v35 = vsel %vm411_vm14, %v344_v59, %v475_v9  ;;  %v570_v10 = vpack.c.bf16 %v6031_v15, %v6024_v13  ;;  %v902_v59 = vld [vmem:[%s8021_s5] sm:$0xff] }
 0x10b   :  { %v244_v44 = vadd.f32 %v243_v41, %v5888_v52  ;;  %v245_v48 = vpop.f32.mrb[22].mxu0  ;;  %v6040_v25 = vsel %vm413_vm4, %v348_v22, %v477_v31  ;;  %v6043_v49 = vsel %vm410_vm13, %v342_v55, %v474_v7  ;;  %v6056_v0 = vsel %vm412_vm0, %v346_v3, %v476_v19 }
 0x10c   :  { %v434_v50 = vmul.f32 0.2, %v242_v29  ;;  %v246_v54 = vadd.f32 %v245_v48, %v5886_v51  ;;  %v247_v14 = vpop.f32.mrb[23].mxu0  ;;  %693 = vmatprep.mubr.bf16.mxu1 %v551_v42  ;;  %v573_v30 = vpack.c.bf16 %v6040_v25, %v6034_v35  ;;  %vm370_vm5 = vcmp.gt.f32.partialorder %v242_v29, 0.0 }
 0x10d   :  { %v435_v63 = vmul.f32 0.2, %v244_v44  ;;  %v248_v55 = vadd.f32 %v247_v14, %v5888_v52  ;;  %694 = vmatmul.mubr.bf16.gmra.mrb[32].mxu1 %v550_v37  ;;  %vm371_vm6 = vcmp.gt.f32.partialorder %v244_v44, 0.0  ;;  %v572_v6 = vpack.c.bf16 %v6056_v0, %v6043_v49  ;;  %v908_v37 = vld [vmem:[%s8021_s5 + $0x30] sm:$0xff] }
 0x10e   :  { %vm372_vm7 = vcmp.gt.f32.partialorder %v246_v54, 0.0  ;;  %v436_v5 = vmul.f32 0.2, %v246_v54  ;;  %v918_v8 = vpack.c.bf16 %v903_v61, %v902_v59  ;;  %v498_v56 = vsel %vm370_vm5, %v242_v29, %v434_v50  ;;  %v909_v29 = vld [vmem:[%s8021_s5 + $0x38] sm:$0xff] }
 0x10f   :  { %vm373_vm8 = vcmp.gt.f32.partialorder %v248_v55, 0.0  ;;  %v437_v7 = vmul.f32 0.2, %v248_v55  ;;  %v919_v9 = vpack.c.bf16 %v905_v4, %v904_v1  ;;  %v499_v17 = vsel %vm371_vm6, %v244_v44, %v435_v63 }
 0x110   :  { %v500_v3 = vsel %vm372_vm7, %v246_v54, %v436_v5  ;;  %5362 = vmatprep.subr.bf16.mxu0 %v918_v8  ;;  %v920_v28 = vpack.c.bf16 %v907_v53, %v906_v12  ;;  %v921_v50 = vpack.c.bf16 %v909_v29, %v908_v37 }
 0x111   :  { %v251_v16 = vpop.f32.mrb[24].mxu0  ;;  %v501_v18 = vsel %vm373_vm8, %v248_v55, %v437_v7  ;;  %v552_v19 = vpack.c.bf16 %v500_v3, %v498_v56  ;;  %5363 = vmatpush3.bf16.msra.mxu0 %v918_v8 }
 0x112   :  { %v252_v20 = vadd.f32 %v251_v16, %v5886_v51  ;;  %v253_v21 = vpop.f32.mrb[25].mxu0  ;;  %v553_v22 = vpack.c.bf16 %v501_v18, %v499_v17  ;;  %5364 = vmatprep.subr.bf16.mxu0 %v919_v9 }
 0x113   :  { %v254_v23 = vadd.f32 %v253_v21, %v5888_v52  ;;  %v255_v24 = vpop.f32.mrb[26].mxu0 }
 0x114   :  { %v438_v31 = vmul.f32 0.2, %v252_v20  ;;  %v256_v34 = vadd.f32 %v255_v24, %v5886_v51  ;;  %v257_v36 = vpop.f32.mrb[27].mxu0  ;;  %701 = vmatprep.mubr.bf16.mxu1 %v553_v22  ;;  %vm374_vm9 = vcmp.gt.f32.partialorder %v252_v20, 0.0 }
 0x115   :  { %v439_v41 = vmul.f32 0.2, %v254_v23  ;;  %v258_v42 = vadd.f32 %v257_v36, %v5888_v52  ;;  %702 = vmatmul.mubr.bf16.gmra.mrb[36].mxu1 %v552_v19  ;;  %vm375_vm10 = vcmp.gt.f32.partialorder %v254_v23, 0.0  ;;  %5365 = vmatpush3.bf16.msra.mxu0 %v919_v9 }
 0x116   :  { %vm376_vm11 = vcmp.gt.f32.partialorder %v256_v34, 0.0  ;;  %v440_v44 = vmul.f32 0.2, %v256_v34  ;;  %5366 = vmatprep.subr.bf16.mxu0 %v920_v28  ;;  %v502_v54 = vsel %vm374_vm9, %v252_v20, %v438_v31 }
 0x117   :  { %vm377_vm12 = vcmp.gt.f32.partialorder %v258_v42, 0.0  ;;  %v441_v48 = vmul.f32 0.2, %v258_v42  ;;  %v503_v61 = vsel %vm375_vm10, %v254_v23, %v439_v41 }
 0x118   :  { %v504_v14 = vsel %vm376_vm11, %v256_v34, %v440_v44 }
 0x119   :  { %v261_v59 = vpop.f32.mrb[28].mxu0  ;;  %v505_v63 = vsel %vm377_vm12, %v258_v42, %v441_v48  ;;  %v554_v55 = vpack.c.bf16 %v504_v14, %v502_v54  ;;  %5367 = vmatpush3.bf16.msra.mxu0 %v920_v28 }
 0x11a   :  { %v262_v1 = vadd.f32 %v261_v59, %v5886_v51  ;;  %v263_v4 = vpop.f32.mrb[29].mxu0  ;;  %v555_v5 = vpack.c.bf16 %v505_v63, %v503_v61  ;;  %5368 = vmatprep.subr.bf16.mxu0 %v921_v50 }
 0x11b   :  { %v264_v7 = vadd.f32 %v263_v4, %v5888_v52  ;;  %v265_v8 = vpop.f32.mrb[30].mxu0 }
 0x11c   :  { %v442_v56 = vmul.f32 0.2, %v262_v1  ;;  %v266_v3 = vadd.f32 %v265_v8, %v5886_v51  ;;  %v267_v9 = vpop.f32.mrb[31].mxu0  ;;  %709 = vmatprep.mubr.bf16.mxu1 %v555_v5  ;;  %vm378_vm13 = vcmp.gt.f32.partialorder %v262_v1, 0.0 }
 0x11d   :  { %v443_v12 = vmul.f32 0.2, %v264_v7  ;;  %v268_v53 = vadd.f32 %v267_v9, %v5888_v52  ;;  %710 = vmatmul.mubr.bf16.gmra.mrb[40].mxu1 %v554_v55  ;;  %vm379_vm14 = vcmp.gt.f32.partialorder %v264_v7, 0.0  ;;  %5369 = vmatpush3.bf16.msra.mxu0 %v921_v50 }
 0x11e   :  { %vm380_vm15 = vcmp.gt.f32.partialorder %v266_v3, 0.0  ;;  %v444_v16 = vmul.f32 0.2, %v266_v3  ;;  %v506_v18 = vsel %vm378_vm13, %v262_v1, %v442_v56 }
 0x11f   :  { %vm381_vm0 = vcmp.gt.f32.partialorder %v268_v53, 0.0  ;;  %v445_v17 = vmul.f32 0.2, %v268_v53  ;;  %v507_v21 = vsel %vm379_vm14, %v264_v7, %v443_v12 }
 0x120   :  { %v508_v19 = vsel %vm380_vm15, %v266_v3, %v444_v16 }
 0x121   :  { %v271_v20 = vpop.f32.mrb[32].mxu0  ;;  %v509_v22 = vsel %vm381_vm0, %v268_v53, %v445_v17  ;;  %v556_v23 = vpack.c.bf16 %v508_v19, %v506_v18 }
 0x122   :  { %v272_v24 = vadd.f32 %v271_v20, %v5886_v51  ;;  %v273_v28 = vpop.f32.mrb[33].mxu0  ;;  %v557_v31 = vpack.c.bf16 %v509_v22, %v507_v21 }
 0x123   :  { %v274_v34 = vadd.f32 %v273_v28, %v5888_v52  ;;  %v275_v36 = vpop.f32.mrb[34].mxu0 }
 0x124   :  { %v446_v37 = vmul.f32 0.2, %v272_v24  ;;  %v276_v29 = vadd.f32 %v275_v36, %v5886_v51  ;;  %v277_v41 = vpop.f32.mrb[35].mxu0  ;;  %717 = vmatprep.mubr.bf16.mxu1 %v557_v31  ;;  %vm382_vm1 = vcmp.gt.f32.partialorder %v272_v24, 0.0 }
 0x125   :  { %v447_v42 = vmul.f32 0.2, %v274_v34  ;;  %v278_v44 = vadd.f32 %v277_v41, %v5888_v52  ;;  %718 = vmatmul.mubr.bf16.gmra.mrb[44].mxu1 %v556_v23  ;;  %vm383_vm2 = vcmp.gt.f32.partialorder %v274_v34, 0.0 }
 0x126   :  { %vm384_vm3 = vcmp.gt.f32.partialorder %v276_v29, 0.0  ;;  %v448_v48 = vmul.f32 0.2, %v276_v29  ;;  %v510_v54 = vsel %vm382_vm1, %v272_v24, %v446_v37 }
 0x127   :  { %vm385_vm4 = vcmp.gt.f32.partialorder %v278_v44, 0.0  ;;  %v449_v50 = vmul.f32 0.2, %v278_v44  ;;  %v511_v61 = vsel %vm383_vm2, %v274_v34, %v447_v42 }
 0x128   :  { %v512_v14 = vsel %vm384_vm3, %v276_v29, %v448_v48 }
 0x129   :  { %v281_v59 = vpop.f32.mrb[36].mxu0  ;;  %v513_v63 = vsel %vm385_vm4, %v278_v44, %v449_v50  ;;  %v558_v55 = vpack.c.bf16 %v512_v14, %v510_v54 }
 0x12a   :  { %v282_v1 = vadd.f32 %v281_v59, %v5886_v51  ;;  %v283_v4 = vpop.f32.mrb[37].mxu0  ;;  %v559_v5 = vpack.c.bf16 %v513_v63, %v511_v61 }
 0x12b   :  { %v284_v7 = vadd.f32 %v283_v4, %v5888_v52  ;;  %v285_v8 = vpop.f32.mrb[38].mxu0 }
 0x12c   :  { %v450_v56 = vmul.f32 0.2, %v282_v1  ;;  %v286_v3 = vadd.f32 %v285_v8, %v5886_v51  ;;  %v287_v9 = vpop.f32.mrb[39].mxu0  ;;  %725 = vmatprep.mubr.bf16.mxu1 %v559_v5  ;;  %vm386_vm5 = vcmp.gt.f32.partialorder %v282_v1, 0.0 }
 0x12d   :  { %v451_v12 = vmul.f32 0.2, %v284_v7  ;;  %v288_v53 = vadd.f32 %v287_v9, %v5888_v52  ;;  %726 = vmatmul.mubr.bf16.gmra.mrb[48].mxu1 %v558_v55  ;;  %vm387_vm6 = vcmp.gt.f32.partialorder %v284_v7, 0.0 }
 0x12e   :  { %vm388_vm7 = vcmp.gt.f32.partialorder %v286_v3, 0.0  ;;  %v452_v16 = vmul.f32 0.2, %v286_v3  ;;  %v514_v18 = vsel %vm386_vm5, %v282_v1, %v450_v56 }
 0x12f   :  { %vm389_vm8 = vcmp.gt.f32.partialorder %v288_v53, 0.0  ;;  %v453_v17 = vmul.f32 0.2, %v288_v53  ;;  %v515_v21 = vsel %vm387_vm6, %v284_v7, %v451_v12 }
 0x130   :  { %v516_v19 = vsel %vm388_vm7, %v286_v3, %v452_v16 }
 0x131   :  { %v291_v20 = vpop.f32.mrb[40].mxu0  ;;  %v517_v22 = vsel %vm389_vm8, %v288_v53, %v453_v17  ;;  %v560_v23 = vpack.c.bf16 %v516_v19, %v514_v18 }
 0x132   :  { %v292_v24 = vadd.f32 %v291_v20, %v5886_v51  ;;  %v293_v28 = vpop.f32.mrb[41].mxu0  ;;  %v561_v31 = vpack.c.bf16 %v517_v22, %v515_v21 }
 0x133   :  { %v294_v34 = vadd.f32 %v293_v28, %v5888_v52  ;;  %v295_v36 = vpop.f32.mrb[42].mxu0  ;;  %v912_v28 = vld [vmem:[%s8021_s5 + $0x50] sm:$0xff] }
 0x134   :  { %v454_v37 = vmul.f32 0.2, %v292_v24  ;;  %v296_v29 = vadd.f32 %v295_v36, %v5886_v51  ;;  %v297_v41 = vpop.f32.mrb[43].mxu0  ;;  %733 = vmatprep.mubr.bf16.mxu1 %v561_v31  ;;  %vm390_vm9 = vcmp.gt.f32.partialorder %v292_v24, 0.0  ;;  %v913_v31 = vld [vmem:[%s8021_s5 + $0x58] sm:$0xff]  ;;  %v914_v36 = vld [vmem:[%s8021_s5 + $0x60] sm:$0xff] }
 0x135   :  { %v455_v42 = vmul.f32 0.2, %v294_v34  ;;  %v298_v44 = vadd.f32 %v297_v41, %v5888_v52  ;;  %734 = vmatmul.mubr.bf16.gmra.mrb[52].mxu1 %v560_v23  ;;  %vm391_vm10 = vcmp.gt.f32.partialorder %v294_v34, 0.0  ;;  %v924_v57 = vpack.c.bf16 %v915_v27, %v914_v36 }
 0x136   :  { %vm392_vm11 = vcmp.gt.f32.partialorder %v296_v29, 0.0  ;;  %v456_v48 = vmul.f32 0.2, %v296_v29  ;;  %v518_v54 = vsel %vm390_vm9, %v292_v24, %v454_v37  ;;  %v917_v37 = vld [vmem:[%s8021_s5 + $0x78] sm:$0xff] }
 0x137   :  { %vm393_vm12 = vcmp.gt.f32.partialorder %v298_v44, 0.0  ;;  %v457_v50 = vmul.f32 0.2, %v298_v44  ;;  %v519_v61 = vsel %vm391_vm10, %v294_v34, %v455_v42  ;;  %v923_v34 = vpack.c.bf16 %v913_v31, %v912_v28 }
 0x138   :  { %v520_v14 = vsel %vm392_vm11, %v296_v29, %v456_v48 }
 0x139   :  { %v301_v59 = vpop.f32.mrb[44].mxu0  ;;  %v521_v63 = vsel %vm393_vm12, %v298_v44, %v457_v50  ;;  %v562_v55 = vpack.c.bf16 %v520_v14, %v518_v54 }
 0x13a   :  { %v302_v1 = vadd.f32 %v301_v59, %v5886_v51  ;;  %v303_v4 = vpop.f32.mrb[45].mxu0  ;;  %v563_v5 = vpack.c.bf16 %v521_v63, %v519_v61 }
 0x13b   :  { %v304_v7 = vadd.f32 %v303_v4, %v5888_v52  ;;  %v305_v8 = vpop.f32.mrb[46].mxu0 }
 0x13c   :  { %v458_v56 = vmul.f32 0.2, %v302_v1  ;;  %v306_v3 = vadd.f32 %v305_v8, %v5886_v51  ;;  %v307_v9 = vpop.f32.mrb[47].mxu0  ;;  %741 = vmatprep.mubr.bf16.mxu1 %v563_v5  ;;  %vm394_vm13 = vcmp.gt.f32.partialorder %v302_v1, 0.0  ;;  %v910_v51 = vld [vmem:[%s8021_s5 + $0x40] sm:$0xff] }
 0x13d   :  { %v459_v12 = vmul.f32 0.2, %v304_v7  ;;  %v308_v53 = vadd.f32 %v307_v9, %v5888_v52  ;;  %742 = vmatmul.mubr.bf16.gmra.mrb[56].mxu1 %v562_v55  ;;  %vm395_vm14 = vcmp.gt.f32.partialorder %v304_v7, 0.0  ;;  %v911_v52 = vld [vmem:[%s8021_s5 + $0x48] sm:$0xff] }
 0x13e   :  { %vm396_vm15 = vcmp.gt.f32.partialorder %v306_v3, 0.0  ;;  %v460_v16 = vmul.f32 0.2, %v306_v3  ;;  %v522_v18 = vsel %vm394_vm13, %v302_v1, %v458_v56  ;;  %v922_v24 = vpack.c.bf16 %v911_v52, %v910_v51 }
 0x13f   :  { %vm397_vm0 = vcmp.gt.f32.partialorder %v308_v53, 0.0  ;;  %v461_v17 = vmul.f32 0.2, %v308_v53  ;;  %v523_v20 = vsel %vm395_vm14, %v304_v7, %v459_v12 }
 0x140   :  { %v524_v19 = vsel %vm396_vm15, %v306_v3, %v460_v16  ;;  %5370 = vmatprep.subr.bf16.mxu0 %v922_v24 }
 0x141   :  { %v525_v21 = vsel %vm397_vm0, %v308_v53, %v461_v17  ;;  %v564_v22 = vpack.c.bf16 %v524_v19, %v522_v18  ;;  %5371 = vmatpush3.bf16.msra.mxu0 %v922_v24 }
 0x142   :  { %v565_v23 = vpack.c.bf16 %v525_v21, %v523_v20  ;;  %5372 = vmatprep.subr.bf16.mxu0 %v923_v34 }
 0x144   :  { %749 = vmatprep.mubr.bf16.mxu1 %v565_v23 }
 0x145   :  { %750 = vmatmul.mubr.bf16.gmra.mrb[60].mxu1 %v564_v22  ;;  %5373 = vmatpush3.bf16.msra.mxu0 %v923_v34 }
 0x146   :  { %757 = vmatprep.mubr.bf16.mxu1 %v567_v62  ;;  %5374 = vmatprep.subr.bf16.mxu0 %v924_v57  ;;  %v916_v62 = vld [vmem:[%s8021_s5 + $0x70] sm:$0xff] }
 0x147   :  { %v925_v29 = vpack.c.bf16 %v917_v37, %v916_v62 }
 0x149   :  { %5375 = vmatpush3.bf16.msra.mxu0 %v924_v57 }
 0x14a   :  { %5376 = vmatprep.subr.bf16.mxu0 %v925_v29 }
 0x14d   :  { %758 = vmatmul.mubr.bf16.gmra.mrb[64].mxu1 %v566_v58  ;;  %5377 = vmatpush3.bf16.msra.mxu0 %v925_v29 }
 0x14e   :  { %765 = vmatprep.mubr.bf16.mxu1 %v569_v45 }
 0x155   :  { %766 = vmatmul.mubr.bf16.gmra.mrb[68].mxu1 %v568_v11 }
 0x156   :  { %773 = vmatprep.mubr.bf16.mxu1 %v571_v39 }
 0x15d   :  { %774 = vmatmul.mubr.bf16.gmra.mrb[72].mxu1 %v570_v10 }
 0x15e   :  { %781 = vmatprep.mubr.bf16.mxu1 %v573_v30 }
 0x165   :  { %782 = vmatmul.mubr.bf16.gmra.mrb[76].mxu1 %v572_v6 }
 0x1c0   :  { %v5242_v33 = vpop.f32.mrb[16].mxu1 }
 0x1c1   :  { %v5243_v58 = vpop.f32.mrb[17].mxu1 }
 0x1c2   :  { %v5244_v38 = vadd.f32 %v5243_v58, %v5242_v33  ;;  %v5245_v43 = vpop.f32.mrb[18].mxu1 }
 0x1c3   :  { %v5246_v45 = vpop.f32.mrb[19].mxu1 }
 0x1c4   :  { %v664_v60 = vadd.f32 %v5244_v38, %v6153_v40  ;;  %v5247_v2 = vadd.f32 %v5246_v45, %v5245_v43 }
 0x1c6   :  { %v822_v11 = vmul.f32 0.2, %v664_v60  ;;  %v667_v26 = vadd.f32 %v5247_v2, %v6153_v40  ;;  %vm790_vm1 = vcmp.gt.f32.partialorder %v664_v60, 0.0 }
 0x1c8   :  { %vm791_vm2 = vcmp.gt.f32.partialorder %v667_v26, 0.0  ;;  %v823_v32 = vmul.f32 0.2, %v667_v26  ;;  %v5248_v39 = vpop.f32.mrb[20].mxu1  ;;  %v854_v10 = vsel %vm790_vm1, %v664_v60, %v822_v11 }
 0x1c9   :  { %v5249_v13 = vpop.f32.mrb[21].mxu1 }
 0x1ca   :  { %v5250_v15 = vadd.f32 %v5249_v13, %v5248_v39  ;;  %v5251_v35 = vpop.f32.mrb[22].mxu1  ;;  %v855_v25 = vsel %vm791_vm2, %v667_v26, %v823_v32 }
 0x1cb   :  { %v5252_v49 = vpop.f32.mrb[23].mxu1  ;;  %v886_v30 = vpack.c.bf16 %v855_v25, %v854_v10 }
 0x1cc   :  { %v672_v0 = vadd.f32 %v5250_v15, %v6153_v40  ;;  %v5253_v6 = vadd.f32 %v5252_v49, %v5251_v35 }
 0x1cd   :  { %5378 = vmatprep.mubr.bf16.mxu0 %v886_v30 }
 0x1ce   :  { %v824_v41 = vmul.f32 0.2, %v672_v0  ;;  %v675_v42 = vadd.f32 %v5253_v6, %v6153_v40  ;;  %vm792_vm3 = vcmp.gt.f32.partialorder %v672_v0, 0.0 }
 0x1d0   :  { %vm793_vm4 = vcmp.gt.f32.partialorder %v675_v42, 0.0  ;;  %v825_v44 = vmul.f32 0.2, %v675_v42  ;;  %v5254_v48 = vpop.f32.mrb[24].mxu1  ;;  %v856_v54 = vsel %vm792_vm3, %v672_v0, %v824_v41 }
 0x1d1   :  { %v5255_v50 = vpop.f32.mrb[25].mxu1 }
 0x1d2   :  { %v857_v14 = vsel %vm793_vm4, %v675_v42, %v825_v44  ;;  %v5256_v59 = vadd.f32 %v5255_v50, %v5254_v48  ;;  %v5257_v61 = vpop.f32.mrb[26].mxu1 }
 0x1d3   :  { %v887_v63 = vpack.c.bf16 %v857_v14, %v856_v54  ;;  %v5258_v55 = vpop.f32.mrb[27].mxu1 }
 0x1d4   :  { %v680_v1 = vadd.f32 %v5256_v59, %v6153_v40  ;;  %v5259_v4 = vadd.f32 %v5258_v55, %v5257_v61 }
 0x1d5   :  { %5379 = vmatmul.mubr.bf16.vlgmr.msra.gmra.mrb[48].mxu0 %v887_v63 }
 0x1d6   :  { %v826_v5 = vmul.f32 0.2, %v680_v1  ;;  %v683_v7 = vadd.f32 %v5259_v4, %v6153_v40  ;;  %vm794_vm5 = vcmp.gt.f32.partialorder %v680_v1, 0.0 }
 0x1d8   :  { %vm795_vm6 = vcmp.gt.f32.partialorder %v683_v7, 0.0  ;;  %v827_v8 = vmul.f32 0.2, %v683_v7  ;;  %v5260_v56 = vpop.f32.mrb[28].mxu1  ;;  %v858_v53 = vsel %vm794_vm5, %v680_v1, %v826_v5 }
 0x1d9   :  { %v5261_v3 = vpop.f32.mrb[29].mxu1 }
 0x1da   :  { %v5262_v9 = vadd.f32 %v5261_v3, %v5260_v56  ;;  %v5263_v12 = vpop.f32.mrb[30].mxu1  ;;  %v859_v16 = vsel %vm795_vm6, %v683_v7, %v827_v8 }
 0x1db   :  { %v5264_v17 = vpop.f32.mrb[31].mxu1  ;;  %v888_v18 = vpack.c.bf16 %v859_v16, %v858_v53 }
 0x1dc   :  { %v688_v19 = vadd.f32 %v5262_v9, %v6153_v40  ;;  %v5265_v20 = vadd.f32 %v5264_v17, %v5263_v12 }
 0x1dd   :  { %5382 = vmatprep.mubr.bf16.mxu0 %v888_v18 }
 0x1de   :  { %v828_v21 = vmul.f32 0.2, %v688_v19  ;;  %v691_v22 = vadd.f32 %v5265_v20, %v6153_v40  ;;  %vm796_vm7 = vcmp.gt.f32.partialorder %v688_v19, 0.0 }
 0x1e0   :  { %vm797_vm8 = vcmp.gt.f32.partialorder %v691_v22, 0.0  ;;  %v829_v23 = vmul.f32 0.2, %v691_v22  ;;  %v5266_v51 = vpop.f32.mrb[32].mxu1  ;;  %v860_v31 = vsel %vm796_vm7, %v688_v19, %v828_v21 }
 0x1e1   :  { %v5267_v52 = vpop.f32.mrb[33].mxu1 }
 0x1e2   :  { %v5268_v24 = vadd.f32 %v5267_v52, %v5266_v51  ;;  %v5269_v28 = vpop.f32.mrb[34].mxu1  ;;  %v861_v34 = vsel %vm797_vm8, %v691_v22, %v829_v23 }
 0x1e3   :  { %v5270_v36 = vpop.f32.mrb[35].mxu1  ;;  %v889_v27 = vpack.c.bf16 %v861_v34, %v860_v31 }
 0x1e4   :  { %v696_v57 = vadd.f32 %v5268_v24, %v6153_v40  ;;  %v5271_v62 = vadd.f32 %v5270_v36, %v5269_v28 }
 0x1e5   :  { %5383 = vmatmul.mubr.bf16.gmra.mrb[52].mxu0 %v889_v27 }
 0x1e6   :  { %v830_v37 = vmul.f32 0.2, %v696_v57  ;;  %v699_v29 = vadd.f32 %v5271_v62, %v6153_v40  ;;  %vm798_vm9 = vcmp.gt.f32.partialorder %v696_v57, 0.0 }
 0x1e8   :  { %vm799_vm10 = vcmp.gt.f32.partialorder %v699_v29, 0.0  ;;  %v831_v33 = vmul.f32 0.2, %v699_v29  ;;  %v5272_v58 = vpop.f32.mrb[36].mxu1  ;;  %v862_v60 = vsel %vm798_vm9, %v696_v57, %v830_v37 }
 0x1e9   :  { %v5273_v38 = vpop.f32.mrb[37].mxu1 }
 0x1ea   :  { %v5274_v43 = vadd.f32 %v5273_v38, %v5272_v58  ;;  %v5275_v45 = vpop.f32.mrb[38].mxu1  ;;  %v863_v2 = vsel %vm799_vm10, %v699_v29, %v831_v33 }
 0x1eb   :  { %v5276_v11 = vpop.f32.mrb[39].mxu1  ;;  %v890_v26 = vpack.c.bf16 %v863_v2, %v862_v60 }
 0x1ec   :  { %v704_v32 = vadd.f32 %v5274_v43, %v6153_v40  ;;  %v5277_v39 = vadd.f32 %v5276_v11, %v5275_v45 }
 0x1ed   :  { %5386 = vmatprep.mubr.bf16.mxu0 %v890_v26 }
 0x1ee   :  { %v832_v13 = vmul.f32 0.2, %v704_v32  ;;  %v707_v15 = vadd.f32 %v5277_v39, %v6153_v40  ;;  %vm800_vm11 = vcmp.gt.f32.partialorder %v704_v32, 0.0 }
 0x1f0   :  { %vm801_vm12 = vcmp.gt.f32.partialorder %v707_v15, 0.0  ;;  %v833_v35 = vmul.f32 0.2, %v707_v15  ;;  %v5278_v10 = vpop.f32.mrb[40].mxu1  ;;  %v864_v0 = vsel %vm800_vm11, %v704_v32, %v832_v13 }
 0x1f1   :  { %v5279_v25 = vpop.f32.mrb[41].mxu1 }
 0x1f2   :  { %v5280_v49 = vadd.f32 %v5279_v25, %v5278_v10  ;;  %v5281_v30 = vpop.f32.mrb[42].mxu1  ;;  %v865_v6 = vsel %vm801_vm12, %v707_v15, %v833_v35 }
 0x1f3   :  { %v5282_v41 = vpop.f32.mrb[43].mxu1  ;;  %v891_v42 = vpack.c.bf16 %v865_v6, %v864_v0 }
 0x1f4   :  { %v712_v44 = vadd.f32 %v5280_v49, %v6153_v40  ;;  %v5283_v48 = vadd.f32 %v5282_v41, %v5281_v30 }
 0x1f5   :  { %5387 = vmatmul.mubr.bf16.gmra.mrb[56].mxu0 %v891_v42 }
 0x1f6   :  { %v834_v50 = vmul.f32 0.2, %v712_v44  ;;  %v715_v54 = vadd.f32 %v5283_v48, %v6153_v40  ;;  %vm802_vm13 = vcmp.gt.f32.partialorder %v712_v44, 0.0 }
 0x1f8   :  { %vm803_vm14 = vcmp.gt.f32.partialorder %v715_v54, 0.0  ;;  %v835_v14 = vmul.f32 0.2, %v715_v54  ;;  %v5284_v59 = vpop.f32.mrb[44].mxu1  ;;  %v866_v1 = vsel %vm802_vm13, %v712_v44, %v834_v50 }
 0x1f9   :  { %v5285_v61 = vpop.f32.mrb[45].mxu1 }
 0x1fa   :  { %v5286_v63 = vadd.f32 %v5285_v61, %v5284_v59  ;;  %v5287_v55 = vpop.f32.mrb[46].mxu1  ;;  %v867_v4 = vsel %vm803_vm14, %v715_v54, %v835_v14 }
 0x1fb   :  { %v5288_v5 = vpop.f32.mrb[47].mxu1  ;;  %v892_v7 = vpack.c.bf16 %v867_v4, %v866_v1 }
 0x1fc   :  { %v720_v8 = vadd.f32 %v5286_v63, %v6153_v40  ;;  %v5289_v56 = vadd.f32 %v5288_v5, %v5287_v55 }
 0x1fd   :  { %5390 = vmatprep.mubr.bf16.mxu0 %v892_v7 }
 0x1fe   :  { %v836_v3 = vmul.f32 0.2, %v720_v8  ;;  %v723_v9 = vadd.f32 %v5289_v56, %v6153_v40  ;;  %vm804_vm15 = vcmp.gt.f32.partialorder %v720_v8, 0.0 }
 0x200   :  { %vm805_vm0 = vcmp.gt.f32.partialorder %v723_v9, 0.0  ;;  %v837_v12 = vmul.f32 0.2, %v723_v9  ;;  %v5290_v53 = vpop.f32.mrb[48].mxu1  ;;  %v868_v19 = vsel %vm804_vm15, %v720_v8, %v836_v3 }
 0x201   :  { %v5291_v16 = vpop.f32.mrb[49].mxu1 }
 0x202   :  { %v5292_v17 = vadd.f32 %v5291_v16, %v5290_v53  ;;  %v5293_v18 = vpop.f32.mrb[50].mxu1  ;;  %v869_v20 = vsel %vm805_vm0, %v723_v9, %v837_v12 }
 0x203   :  { %v5294_v21 = vpop.f32.mrb[51].mxu1  ;;  %v893_v22 = vpack.c.bf16 %v869_v20, %v868_v19 }
 0x204   :  { %v728_v23 = vadd.f32 %v5292_v17, %v6153_v40  ;;  %v5295_v51 = vadd.f32 %v5294_v21, %v5293_v18 }
 0x205   :  { %5391 = vmatmul.mubr.bf16.gmra.mrb[60].mxu0 %v893_v22 }
 0x206   :  { %v838_v52 = vmul.f32 0.2, %v728_v23  ;;  %v731_v24 = vadd.f32 %v5295_v51, %v6153_v40  ;;  %vm806_vm1 = vcmp.gt.f32.partialorder %v728_v23, 0.0 }
 0x208   :  { %vm807_vm2 = vcmp.gt.f32.partialorder %v731_v24, 0.0  ;;  %v839_v28 = vmul.f32 0.2, %v731_v24  ;;  %v5296_v31 = vpop.f32.mrb[52].mxu1  ;;  %v870_v57 = vsel %vm806_vm1, %v728_v23, %v838_v52 }
 0x209   :  { %v5297_v34 = vpop.f32.mrb[53].mxu1 }
 0x20a   :  { %v5298_v36 = vadd.f32 %v5297_v34, %v5296_v31  ;;  %v5299_v27 = vpop.f32.mrb[54].mxu1  ;;  %v871_v62 = vsel %vm807_vm2, %v731_v24, %v839_v28 }
 0x20b   :  { %v5300_v37 = vpop.f32.mrb[55].mxu1  ;;  %v894_v29 = vpack.c.bf16 %v871_v62, %v870_v57 }
 0x20c   :  { %v736_v33 = vadd.f32 %v5298_v36, %v6153_v40  ;;  %v5301_v58 = vadd.f32 %v5300_v37, %v5299_v27 }
 0x20d   :  { %5394 = vmatprep.mubr.bf16.mxu0 %v894_v29 }
 0x20e   :  { %v840_v38 = vmul.f32 0.2, %v736_v33  ;;  %v739_v43 = vadd.f32 %v5301_v58, %v6153_v40  ;;  %vm808_vm3 = vcmp.gt.f32.partialorder %v736_v33, 0.0 }
 0x210   :  { %vm809_vm4 = vcmp.gt.f32.partialorder %v739_v43, 0.0  ;;  %v841_v45 = vmul.f32 0.2, %v739_v43  ;;  %v5302_v60 = vpop.f32.mrb[56].mxu1  ;;  %v872_v32 = vsel %vm808_vm3, %v736_v33, %v840_v38  ;;  %vm1229_vm3 = vcmask 523264  }
 0x211   :  { %v5303_v2 = vpop.f32.mrb[57].mxu1 }
 0x212   :  { %v5304_v11 = vadd.f32 %v5303_v2, %v5302_v60  ;;  %v5305_v26 = vpop.f32.mrb[58].mxu1  ;;  %v873_v39 = vsel %vm809_vm4, %v739_v43, %v841_v45 }
 0x213   :  { %v5306_v13 = vpop.f32.mrb[59].mxu1  ;;  %v895_v15 = vpack.c.bf16 %v873_v39, %v872_v32 }
 0x214   :  { %v744_v35 = vadd.f32 %v5304_v11, %v6153_v40  ;;  %v5307_v10 = vadd.f32 %v5306_v13, %v5305_v26 }
 0x215   :  { %5395 = vmatmul.mubr.bf16.gmra.mrb[64].mxu0 %v895_v15 }
 0x216   :  { %v842_v25 = vmul.f32 0.2, %v744_v35  ;;  %v747_v49 = vadd.f32 %v5307_v10, %v6153_v40  ;;  %vm810_vm5 = vcmp.gt.f32.partialorder %v744_v35, 0.0 }
 0x218   :  { %vm811_vm6 = vcmp.gt.f32.partialorder %v747_v49, 0.0  ;;  %v843_v30 = vmul.f32 0.2, %v747_v49  ;;  %v5308_v0 = vpop.f32.mrb[60].mxu1  ;;  %v874_v44 = vsel %vm810_vm5, %v744_v35, %v842_v25 }
 0x219   :  { %v5309_v6 = vpop.f32.mrb[61].mxu1 }
 0x21a   :  { %v5310_v41 = vadd.f32 %v5309_v6, %v5308_v0  ;;  %v5311_v42 = vpop.f32.mrb[62].mxu1  ;;  %v875_v48 = vsel %vm811_vm6, %v747_v49, %v843_v30 }
 0x21b   :  { %v5312_v50 = vpop.f32.mrb[63].mxu1  ;;  %v896_v54 = vpack.c.bf16 %v875_v48, %v874_v44 }
 0x21c   :  { %v752_v14 = vadd.f32 %v5310_v41, %v6153_v40  ;;  %v5313_v59 = vadd.f32 %v5312_v50, %v5311_v42 }
 0x21d   :  { %5398 = vmatprep.mubr.bf16.mxu0 %v896_v54  ;;  %v6190_v54 = vld [vmem:[%s8022_s6] ss:$0 sm:$0xff]  ;;  %s5574_s6 = smov [#allocation3]  }
 0x21e   :  { %v844_v61 = vmul.f32 0.2, %v752_v14  ;;  %v755_v63 = vadd.f32 %v5313_v59, %v6153_v40  ;;  %vm812_vm7 = vcmp.gt.f32.partialorder %v752_v14, 0.0 }
 0x220   :  { %vm813_vm8 = vcmp.gt.f32.partialorder %v755_v63, 0.0  ;;  %v845_v55 = vmul.f32 0.2, %v755_v63  ;;  %v5314_v1 = vpop.f32.mrb[64].mxu1  ;;  %v876_v8 = vsel %vm812_vm7, %v752_v14, %v844_v61 }
 0x221   :  { %v5315_v4 = vpop.f32.mrb[65].mxu1 }
 0x222   :  { %v5316_v5 = vadd.f32 %v5315_v4, %v5314_v1  ;;  %v5317_v7 = vpop.f32.mrb[66].mxu1  ;;  %v877_v56 = vsel %vm813_vm8, %v755_v63, %v845_v55 }
 0x223   :  { %v5318_v3 = vpop.f32.mrb[67].mxu1  ;;  %v897_v9 = vpack.c.bf16 %v877_v56, %v876_v8 }
 0x224   :  { %v760_v12 = vadd.f32 %v5316_v5, %v6153_v40  ;;  %v5319_v53 = vadd.f32 %v5318_v3, %v5317_v7  ;;  %v6198_v5 = vld [vmem:[%s8023_s7] ss:$0 sm:$0xff]  ;;  %s5134_s7 = sshll.u32 %s5574_s6, 4  ;;  %s5135_s7 = int_to_ptr.vmem [resolvable:$true] %s5134_s7 }
 0x225   :  { %5399 = vmatmul.mubr.bf16.gmra.mrb[68].mxu0 %v897_v9  ;;  %s5548_s25 = scalar_lea.vmem %s5135_s7, 32  ;;  %p5553_p1 = scmp.lt.s32.totalorder %s5135_s7, %s5135_s7 }
 0x226   :  { %v846_v16 = vmul.f32 0.2, %v760_v12  ;;  %v763_v17 = vadd.f32 %v5319_v53, %v6153_v40  ;;  %vm814_vm9 = vcmp.gt.f32.partialorder %v760_v12, 0.0  ;;  %p5549_p0 = scmp.ne.s32.totalorder %s5135_s7, %s5548_s25  ;;  %p5554_p2 = scmp.lt.s32.totalorder %s5548_s25, %s5548_s25 }
 0x228   :  { %vm815_vm10 = vcmp.gt.f32.partialorder %v763_v17, 0.0  ;;  %v847_v18 = vmul.f32 0.2, %v763_v17  ;;  %v5320_v19 = vpop.f32.mrb[68].mxu1  ;;  %v878_v23 = vsel %vm814_vm9, %v760_v12, %v846_v16  ;;  %p5555_p3 = por %p5554_p2, %p5553_p1 }
 0x229   :  { %v5321_v20 = vpop.f32.mrb[69].mxu1 }
 0x22a   :  { %v5322_v21 = vadd.f32 %v5321_v20, %v5320_v19  ;;  %v5323_v22 = vpop.f32.mrb[70].mxu1  ;;  %v879_v51 = vsel %vm815_vm10, %v763_v17, %v847_v18  ;;  %p5556_p4 = pnand %p5555_p3, %p5549_p0 }
 0x22b   :  { %v5324_v52 = vpop.f32.mrb[71].mxu1  ;;  %v898_v24 = vpack.c.bf16 %v879_v51, %v878_v23 }
 0x22c   :  { %v768_v28 = vadd.f32 %v5322_v21, %v6153_v40  ;;  %v5325_v31 = vadd.f32 %v5324_v52, %v5323_v22 }
 0x22d   :  { %5402 = vmatprep.mubr.bf16.mxu0 %v898_v24 }
 0x22e   :  { %v848_v34 = vmul.f32 0.2, %v768_v28  ;;  %v771_v36 = vadd.f32 %v5325_v31, %v6153_v40  ;;  %vm816_vm11 = vcmp.gt.f32.partialorder %v768_v28, 0.0 }
 0x230   :  { %vm817_vm12 = vcmp.gt.f32.partialorder %v771_v36, 0.0  ;;  %v849_v27 = vmul.f32 0.2, %v771_v36  ;;  %v5326_v57 = vpop.f32.mrb[72].mxu1  ;;  %v880_v33 = vsel %vm816_vm11, %v768_v28, %v848_v34 }
 0x231   :  { %v5327_v62 = vpop.f32.mrb[73].mxu1 }
 0x232   :  { %v5328_v37 = vadd.f32 %v5327_v62, %v5326_v57  ;;  %v5329_v29 = vpop.f32.mrb[74].mxu1  ;;  %v881_v58 = vsel %vm817_vm12, %v771_v36, %v849_v27 }
 0x233   :  { %v5330_v38 = vpop.f32.mrb[75].mxu1  ;;  %v899_v43 = vpack.c.bf16 %v881_v58, %v880_v33 }
 0x234   :  { %v776_v45 = vadd.f32 %v5328_v37, %v6153_v40  ;;  %v5331_v60 = vadd.f32 %v5330_v38, %v5329_v29 }
 0x235   :  { %5403 = vmatmul.mubr.bf16.gmra.mrb[72].mxu0 %v899_v43 }
 0x236   :  { %v850_v2 = vmul.f32 0.2, %v776_v45  ;;  %v779_v11 = vadd.f32 %v5331_v60, %v6153_v40  ;;  %vm818_vm13 = vcmp.gt.f32.partialorder %v776_v45, 0.0 }
 0x238   :  { %vm819_vm14 = vcmp.gt.f32.partialorder %v779_v11, 0.0  ;;  %v851_v26 = vmul.f32 0.2, %v779_v11  ;;  %v5332_v32 = vpop.f32.mrb[76].mxu1  ;;  %v882_v35 = vsel %vm818_vm13, %v776_v45, %v850_v2 }
 0x239   :  { %v5333_v39 = vpop.f32.mrb[77].mxu1 }
 0x23a   :  { %v5334_v13 = vadd.f32 %v5333_v39, %v5332_v32  ;;  %v5335_v15 = vpop.f32.mrb[78].mxu1  ;;  %v883_v10 = vsel %vm819_vm14, %v779_v11, %v851_v26 }
 0x23b   :  { %v5336_v25 = vpop.f32.mrb[79].mxu1  ;;  %v900_v49 = vpack.c.bf16 %v883_v10, %v882_v35 }
 0x23c   :  { %v784_v30 = vadd.f32 %v5334_v13, %v6153_v40  ;;  %v5337_v0 = vadd.f32 %v5336_v25, %v5335_v15 }
 0x23d   :  { %5406 = vmatprep.mubr.bf16.mxu0 %v900_v49 }
 0x23e   :  { %v852_v6 = vmul.f32 0.2, %v784_v30  ;;  %v787_v41 = vadd.f32 %v5337_v0, %v6153_v40  ;;  %vm820_vm15 = vcmp.gt.f32.partialorder %v784_v30, 0.0 }
 0x240   :  { %vm821_vm0 = vcmp.gt.f32.partialorder %v787_v41, 0.0  ;;  %v853_v42 = vmul.f32 0.2, %v787_v41  ;;  %v884_v44 = vsel %vm820_vm15, %v784_v30, %v852_v6 }
 0x242   :  { %v885_v48 = vsel %vm821_vm0, %v787_v41, %v853_v42 }
 0x243   :  { %v901_v50 = vpack.c.bf16 %v885_v48, %v884_v44 }
 0x245   :  { %5407 = vmatmul.mubr.bf16.gmra.mrb[76].mxu0 %v901_v50 }
 0x2a8   :  { %v5380_v14 = vpop.f32.mrb[48].mxu0 }
 0x2a9   :  { %v976_v59 = vadd.f32 %v5380_v14, %v6190_v54  ;;  %v967_v61 = vpop.f32.mrb[49].mxu0 }
 0x2aa   :  { %v968_v63 = vadd.f32 %v6190_v54, %v967_v61  ;;  %v5381_v55 = vpop.f32.mrb[50].mxu0 }
 0x2ab   :  { %v1128_v40 = vmul.f32 0.2, %v976_v59  ;;  %v979_v1 = vadd.f32 %v5381_v55, %v6190_v54  ;;  %v970_v4 = vpop.f32.mrb[51].mxu0  ;;  %vm1096_vm1 = vcmp.gt.f32.partialorder %v976_v59, 0.0 }
 0x2ac   :  { %vm1094_vm2 = vcmp.gt.f32.partialorder %v968_v63, 0.0  ;;  %v1126_v7 = vmul.f32 0.2, %v968_v63  ;;  %v971_v56 = vadd.f32 %v6190_v54, %v970_v4 }
 0x2ad   :  { %v1129_v8 = vmul.f32 0.2, %v979_v1  ;;  %v1160_v3 = vsel %vm1096_vm1, %v976_v59, %v1128_v40  ;;  %vm1097_vm4 = vcmp.gt.f32.partialorder %v979_v1, 0.0 }
 0x2ae   :  { %v1199_v9 = vmul.f32 %v6198_v5, %v1160_v3  ;;  %v1158_v12 = vsel %vm1094_vm2, %v968_v63, %v1126_v7  ;;  %v1127_v17 = vmul.f32 0.2, %v971_v56  ;;  %vm1095_vm5 = vcmp.gt.f32.partialorder %v971_v56, 0.0 }
 0x2af   :  { %v1197_v16 = vmul.f32 %v6198_v5, %v1158_v12  ;;  %v1161_v18 = vsel %vm1097_vm4, %v979_v1, %v1129_v8 }
 0x2b0   :  { %v1236_v53 = vsel %vm1229_vm3, %v1199_v9, 0.0  ;;  %v1200_v20 = vmul.f32 %v6198_v5, %v1161_v18  ;;  %v1159_v21 = vsel %vm1095_vm5, %v971_v56, %v1127_v17 }
 0x2b1   :  { %1237 = vadd.xlane.f32.xlu0 %v1236_v53  ;;  %v1230_v19 = vsel %vm1229_vm3, %v1197_v16, 0.0  ;;  %v1198_v51 = vmul.f32 %v6198_v5, %v1159_v21 }
 0x2b2   :  { %v1239_v23 = vsel %vm1229_vm3, %v1200_v20, 0.0 }
 0x2b3   :  { %v1233_v62 = vsel %vm1229_vm3, %v1198_v51, 0.0 }
 0x2b5   :  { %1231 = vadd.xlane.f32.xlu0 %v1230_v19 }
 0x2b8   :  { %v5384_v22 = vpop.f32.mrb[52].mxu0 }
 0x2b9   :  { %v992_v52 = vadd.f32 %v5384_v22, %v6190_v54  ;;  %v983_v24 = vpop.f32.mrb[53].mxu0  ;;  %1240 = vadd.xlane.f32.xlu0 %v1239_v23 }
 0x2ba   :  { %v984_v28 = vadd.f32 %v6190_v54, %v983_v24  ;;  %v5385_v31 = vpop.f32.mrb[54].mxu0 }
 0x2bb   :  { %vm1100_vm6 = vcmp.gt.f32.partialorder %v992_v52, 0.0  ;;  %v1132_v34 = vmul.f32 0.2, %v992_v52  ;;  %v995_v36 = vadd.f32 %v5385_v31, %v6190_v54  ;;  %v986_v27 = vpop.f32.mrb[55].mxu0 }
 0x2bc   :  { %vm1098_vm7 = vcmp.gt.f32.partialorder %v984_v28, 0.0  ;;  %v1130_v57 = vmul.f32 0.2, %v984_v28  ;;  %v987_v29 = vadd.f32 %v6190_v54, %v986_v27 }
 0x2bd   :  { %v1133_v37 = vmul.f32 0.2, %v995_v36  ;;  %1234 = vadd.xlane.f32.xlu0 %v1233_v62  ;;  %v1164_v33 = vsel %vm1100_vm6, %v992_v52, %v1132_v34  ;;  %vm1101_vm8 = vcmp.gt.f32.partialorder %v995_v36, 0.0 }
 0x2be   :  { %v1203_v58 = vmul.f32 %v6198_v5, %v1164_v33  ;;  %v1162_v38 = vsel %vm1098_vm7, %v984_v28, %v1130_v57  ;;  %v1131_v60 = vmul.f32 0.2, %v987_v29  ;;  %vm1099_vm9 = vcmp.gt.f32.partialorder %v987_v29, 0.0 }
 0x2bf   :  { %v1201_v45 = vmul.f32 %v6198_v5, %v1162_v38  ;;  %v1165_v2 = vsel %vm1101_vm8, %v995_v36, %v1133_v37 }
 0x2c0   :  { %v1248_v43 = vsel %vm1229_vm3, %v1203_v58, 0.0  ;;  %v1204_v26 = vmul.f32 %v6198_v5, %v1165_v2  ;;  %v1163_v32 = vsel %vm1099_vm9, %v987_v29, %v1131_v60 }
 0x2c1   :  { %1249 = vadd.xlane.f32.xlu0 %v1248_v43  ;;  %v1242_v11 = vsel %vm1229_vm3, %v1201_v45, 0.0  ;;  %v1202_v15 = vmul.f32 %v6198_v5, %v1163_v32 }
 0x2c2   :  { %v1251_v13 = vsel %vm1229_vm3, %v1204_v26, 0.0 }
 0x2c3   :  { %v1245_v42 = vsel %vm1229_vm3, %v1202_v15, 0.0 }
 0x2c5   :  { %1243 = vadd.xlane.f32.xlu0 %v1242_v11 }
 0x2c8   :  { %v5388_v39 = vpop.f32.mrb[56].mxu0 }
 0x2c9   :  { %v1008_v35 = vadd.f32 %v5388_v39, %v6190_v54  ;;  %v999_v10 = vpop.f32.mrb[57].mxu0  ;;  %1252 = vadd.xlane.f32.xlu0 %v1251_v13 }
 0x2ca   :  { %v1000_v25 = vadd.f32 %v6190_v54, %v999_v10  ;;  %v5389_v49 = vpop.f32.mrb[58].mxu0 }
 0x2cb   :  { %vm1104_vm10 = vcmp.gt.f32.partialorder %v1008_v35, 0.0  ;;  %v1136_v30 = vmul.f32 0.2, %v1008_v35  ;;  %v1011_v0 = vadd.f32 %v5389_v49, %v6190_v54  ;;  %v1002_v6 = vpop.f32.mrb[59].mxu0 }
 0x2cc   :  { %vm1102_vm11 = vcmp.gt.f32.partialorder %v1000_v25, 0.0  ;;  %v1134_v41 = vmul.f32 0.2, %v1000_v25  ;;  %v1003_v48 = vadd.f32 %v6190_v54, %v1002_v6 }
 0x2cd   :  { %v1137_v44 = vmul.f32 0.2, %v1011_v0  ;;  %1246 = vadd.xlane.f32.xlu0 %v1245_v42  ;;  %v1168_v50 = vsel %vm1104_vm10, %v1008_v35, %v1136_v30  ;;  %vm1105_vm12 = vcmp.gt.f32.partialorder %v1011_v0, 0.0 }
 0x2ce   :  { %v1207_v14 = vmul.f32 %v6198_v5, %v1168_v50  ;;  %v1166_v59 = vsel %vm1102_vm11, %v1000_v25, %v1134_v41  ;;  %v1135_v55 = vmul.f32 0.2, %v1003_v48  ;;  %vm1103_vm13 = vcmp.gt.f32.partialorder %v1003_v48, 0.0 }
 0x2cf   :  { %v1205_v63 = vmul.f32 %v6198_v5, %v1166_v59  ;;  %v1169_v40 = vsel %vm1105_vm12, %v1011_v0, %v1137_v44 }
 0x2d0   :  { %v1260_v61 = vsel %vm1229_vm3, %v1207_v14, 0.0  ;;  %v1208_v4 = vmul.f32 %v6198_v5, %v1169_v40  ;;  %v1167_v7 = vsel %vm1103_vm13, %v1003_v48, %v1135_v55 }
 0x2d1   :  { %1261 = vadd.xlane.f32.xlu0 %v1260_v61  ;;  %v1254_v1 = vsel %vm1229_vm3, %v1205_v63, 0.0  ;;  %v1206_v3 = vmul.f32 %v6198_v5, %v1167_v7 }
 0x2d2   :  { %v1263_v56 = vsel %vm1229_vm3, %v1208_v4, 0.0 }
 0x2d3   :  { %v1257_v21 = vsel %vm1229_vm3, %v1206_v3, 0.0 }
 0x2d5   :  { %1255 = vadd.xlane.f32.xlu0 %v1254_v1 }
 0x2d8   :  { %v5392_v8 = vpop.f32.mrb[60].mxu0 }
 0x2d9   :  { %v1024_v9 = vadd.f32 %v5392_v8, %v6190_v54  ;;  %v1015_v12 = vpop.f32.mrb[61].mxu0  ;;  %1264 = vadd.xlane.f32.xlu0 %v1263_v56 }
 0x2da   :  { %v1016_v53 = vadd.f32 %v6190_v54, %v1015_v12  ;;  %v5393_v16 = vpop.f32.mrb[62].mxu0 }
 0x2db   :  { %vm1108_vm14 = vcmp.gt.f32.partialorder %v1024_v9, 0.0  ;;  %v1140_v17 = vmul.f32 0.2, %v1024_v9  ;;  %v1018_v18 = vpop.f32.mrb[63].mxu0  ;;  %v1027_v22 = vadd.f32 %v5393_v16, %v6190_v54 }
 0x2dc   :  { %vm1106_vm15 = vcmp.gt.f32.partialorder %v1016_v53, 0.0  ;;  %v1138_v19 = vmul.f32 0.2, %v1016_v53  ;;  %v1019_v20 = vadd.f32 %v6190_v54, %v1018_v18 }
 0x2dd   :  { %1258 = vadd.xlane.f32.xlu0 %v1257_v21  ;;  %v1172_v23 = vsel %vm1108_vm14, %v1024_v9, %v1140_v17  ;;  %v1141_v34 = vmul.f32 0.2, %v1027_v22  ;;  %vm1109_vm1 = vcmp.gt.f32.partialorder %v1027_v22, 0.0 }
 0x2de   :  { %vm1107_vm0 = vcmp.gt.f32.partialorder %v1019_v20, 0.0  ;;  %v1139_v51 = vmul.f32 0.2, %v1019_v20  ;;  %v1211_v52 = vmul.f32 %v6198_v5, %v1172_v23  ;;  %v1170_v24 = vsel %vm1106_vm15, %v1016_v53, %v1138_v19 }
 0x2df   :  { %v1209_v31 = vmul.f32 %v6198_v5, %v1170_v24  ;;  %v1173_v62 = vsel %vm1109_vm1, %v1027_v22, %v1141_v34 }
 0x2e0   :  { %v1272_v28 = vsel %vm1229_vm3, %v1211_v52, 0.0  ;;  %v1171_v36 = vsel %vm1107_vm0, %v1019_v20, %v1139_v51  ;;  %v1212_v33 = vmul.f32 %v6198_v5, %v1173_v62 }
 0x2e1   :  { %1273 = vadd.xlane.f32.xlu0 %v1272_v28  ;;  %v1266_v27 = vsel %vm1229_vm3, %v1209_v31, 0.0  ;;  %v1210_v57 = vmul.f32 %v6198_v5, %v1171_v36 }
 0x2e2   :  { %v1275_v32 = vsel %vm1229_vm3, %v1212_v33, 0.0 }
 0x2e3   :  { %v1269_v29 = vsel %vm1229_vm3, %v1210_v57, 0.0 }
 0x2e5   :  { %1267 = vadd.xlane.f32.xlu0 %v1266_v27 }
 0x2e8   :  { %v5396_v37 = vpop.f32.mrb[64].mxu0 }
 0x2e9   :  { %v1040_v58 = vadd.f32 %v5396_v37, %v6190_v54  ;;  %v1031_v38 = vpop.f32.mrb[65].mxu0  ;;  %1270 = vadd.xlane.f32.xlu0 %v1269_v29 }
 0x2ea   :  { %v1032_v43 = vadd.f32 %v6190_v54, %v1031_v38  ;;  %v5397_v45 = vpop.f32.mrb[66].mxu0 }
 0x2eb   :  { %v1144_v60 = vmul.f32 0.2, %v1040_v58  ;;  %v1043_v2 = vadd.f32 %v5397_v45, %v6190_v54  ;;  %v1034_v11 = vpop.f32.mrb[67].mxu0  ;;  %vm1112_vm2 = vcmp.gt.f32.partialorder %v1040_v58, 0.0 }
 0x2ec   :  { %vm1110_vm4 = vcmp.gt.f32.partialorder %v1032_v43, 0.0  ;;  %v1142_v26 = vmul.f32 0.2, %v1032_v43  ;;  %v1035_v13 = vadd.f32 %v6190_v54, %v1034_v11 }
 0x2ed   :  { %v1145_v39 = vmul.f32 0.2, %v1043_v2  ;;  %1276 = vadd.xlane.f32.xlu0 %v1275_v32  ;;  %v1176_v15 = vsel %vm1112_vm2, %v1040_v58, %v1144_v60  ;;  %vm1113_vm5 = vcmp.gt.f32.partialorder %v1043_v2, 0.0 }
 0x2ee   :  { %v1215_v35 = vmul.f32 %v6198_v5, %v1176_v15  ;;  %v1174_v10 = vsel %vm1110_vm4, %v1032_v43, %v1142_v26  ;;  %v1143_v30 = vmul.f32 0.2, %v1035_v13  ;;  %vm1111_vm6 = vcmp.gt.f32.partialorder %v1035_v13, 0.0 }
 0x2ef   :  { %v1213_v49 = vmul.f32 %v6198_v5, %v1174_v10  ;;  %v1177_v0 = vsel %vm1113_vm5, %v1043_v2, %v1145_v39 }
 0x2f0   :  { %v1284_v25 = vsel %vm1229_vm3, %v1215_v35, 0.0  ;;  %v1216_v41 = vmul.f32 %v6198_v5, %v1177_v0  ;;  %v1175_v42 = vsel %vm1111_vm6, %v1035_v13, %v1143_v30 }
 0x2f1   :  { %1285 = vadd.xlane.f32.xlu1 %v1284_v25  ;;  %v1278_v6 = vsel %vm1229_vm3, %v1213_v49, 0.0  ;;  %v1214_v50 = vmul.f32 %v6198_v5, %v1175_v42 }
 0x2f2   :  { %v1287_v48 = vsel %vm1229_vm3, %v1216_v41, 0.0 }
 0x2f3   :  { %v1281_v7 = vsel %vm1229_vm3, %v1214_v50, 0.0 }
 0x2f5   :  { %1279 = vadd.xlane.f32.xlu1 %v1278_v6 }
 0x2f8   :  { %v5400_v44 = vpop.f32.mrb[68].mxu0 }
 0x2f9   :  { %v1056_v14 = vadd.f32 %v5400_v44, %v6190_v54  ;;  %v1047_v59 = vpop.f32.mrb[69].mxu0  ;;  %1288 = vadd.xlane.f32.xlu1 %v1287_v48 }
 0x2fa   :  { %v1048_v61 = vadd.f32 %v6190_v54, %v1047_v59  ;;  %v5401_v63 = vpop.f32.mrb[70].mxu0 }
 0x2fb   :  { %vm1116_vm7 = vcmp.gt.f32.partialorder %v1056_v14, 0.0  ;;  %v1148_v55 = vmul.f32 0.2, %v1056_v14  ;;  %v1059_v40 = vadd.f32 %v5401_v63, %v6190_v54  ;;  %v1050_v1 = vpop.f32.mrb[71].mxu0 }
 0x2fc   :  { %vm1114_vm8 = vcmp.gt.f32.partialorder %v1048_v61, 0.0  ;;  %v1146_v4 = vmul.f32 0.2, %v1048_v61  ;;  %v1051_v56 = vadd.f32 %v6190_v54, %v1050_v1 }
 0x2fd   :  { %v1149_v8 = vmul.f32 0.2, %v1059_v40  ;;  %1282 = vadd.xlane.f32.xlu1 %v1281_v7  ;;  %v1180_v3 = vsel %vm1116_vm7, %v1056_v14, %v1148_v55  ;;  %vm1117_vm9 = vcmp.gt.f32.partialorder %v1059_v40, 0.0 }
 0x2fe   :  { %v1219_v9 = vmul.f32 %v6198_v5, %v1180_v3  ;;  %v1178_v12 = vsel %vm1114_vm8, %v1048_v61, %v1146_v4  ;;  %v1147_v17 = vmul.f32 0.2, %v1051_v56  ;;  %vm1115_vm10 = vcmp.gt.f32.partialorder %v1051_v56, 0.0  ;;  %v6293_v3 = vld [vmem:[#allocation2] ss:$0 sm:$0xff] }
 0x2ff   :  { %v1217_v16 = vmul.f32 %v6198_v5, %v1178_v12  ;;  %v1181_v18 = vsel %vm1117_vm9, %v1059_v40, %v1149_v8 }
 0x300   :  { %v1296_v53 = vsel %vm1229_vm3, %v1219_v9, 0.0  ;;  %v1220_v20 = vmul.f32 %v6198_v5, %v1181_v18  ;;  %v1179_v21 = vsel %vm1115_vm10, %v1051_v56, %v1147_v17 }
 0x301   :  { %1297 = vadd.xlane.f32.xlu1 %v1296_v53  ;;  %v1290_v19 = vsel %vm1229_vm3, %v1217_v16, 0.0  ;;  %v1218_v51 = vmul.f32 %v6198_v5, %v1179_v21 }
 0x302   :  { %v1299_v23 = vsel %vm1229_vm3, %v1220_v20, 0.0 }
 0x303   :  { %v1293_v62 = vsel %vm1229_vm3, %v1218_v51, 0.0 }
 0x305   :  { %1291 = vadd.xlane.f32.xlu1 %v1290_v19 }
 0x308   :  { %v5404_v22 = vpop.f32.mrb[72].mxu0 }
 0x309   :  { %v1072_v52 = vadd.f32 %v5404_v22, %v6190_v54  ;;  %v1063_v24 = vpop.f32.mrb[73].mxu0  ;;  %1300 = vadd.xlane.f32.xlu1 %v1299_v23 }
 0x30a   :  { %v1064_v28 = vadd.f32 %v6190_v54, %v1063_v24  ;;  %v5405_v31 = vpop.f32.mrb[74].mxu0 }
 0x30b   :  { %vm1120_vm11 = vcmp.gt.f32.partialorder %v1072_v52, 0.0  ;;  %v1152_v34 = vmul.f32 0.2, %v1072_v52  ;;  %v1075_v36 = vadd.f32 %v5405_v31, %v6190_v54  ;;  %v1066_v27 = vpop.f32.mrb[75].mxu0 }
 0x30c   :  { %vm1118_vm12 = vcmp.gt.f32.partialorder %v1064_v28, 0.0  ;;  %v1150_v57 = vmul.f32 0.2, %v1064_v28  ;;  %v1067_v29 = vadd.f32 %v6190_v54, %v1066_v27 }
 0x30d   :  { %v1153_v37 = vmul.f32 0.2, %v1075_v36  ;;  %1294 = vadd.xlane.f32.xlu1 %v1293_v62  ;;  %v1184_v33 = vsel %vm1120_vm11, %v1072_v52, %v1152_v34  ;;  %vm1121_vm13 = vcmp.gt.f32.partialorder %v1075_v36, 0.0 }
 0x30e   :  { %v1223_v58 = vmul.f32 %v6198_v5, %v1184_v33  ;;  %v1182_v38 = vsel %vm1118_vm12, %v1064_v28, %v1150_v57  ;;  %v1151_v60 = vmul.f32 0.2, %v1067_v29  ;;  %vm1119_vm14 = vcmp.gt.f32.partialorder %v1067_v29, 0.0 }
 0x30f   :  { %v1221_v45 = vmul.f32 %v6198_v5, %v1182_v38  ;;  %v1185_v2 = vsel %vm1121_vm13, %v1075_v36, %v1153_v37 }
 0x310   :  { %v1308_v43 = vsel %vm1229_vm3, %v1223_v58, 0.0  ;;  %v1224_v26 = vmul.f32 %v6198_v5, %v1185_v2  ;;  %v1183_v32 = vsel %vm1119_vm14, %v1067_v29, %v1151_v60 }
 0x311   :  { %1309 = vadd.xlane.f32.xlu1 %v1308_v43  ;;  %v1302_v11 = vsel %vm1229_vm3, %v1221_v45, 0.0  ;;  %v1222_v15 = vmul.f32 %v6198_v5, %v1183_v32 }
 0x312   :  { %v1311_v13 = vsel %vm1229_vm3, %v1224_v26, 0.0 }
 0x313   :  { %v1305_v42 = vsel %vm1229_vm3, %v1222_v15, 0.0  ;;  %v5573_v15 = vmov 1966171168  }
 0x315   :  { %1303 = vadd.xlane.f32.xlu1 %v1302_v11 }
 0x318   :  { %v5408_v39 = vpop.f32.mrb[76].mxu0 }
 0x319   :  { %v1088_v35 = vadd.f32 %v5408_v39, %v6190_v54  ;;  %v1079_v10 = vpop.f32.mrb[77].mxu0  ;;  %1312 = vadd.xlane.f32.xlu1 %v1311_v13 }
 0x31a   :  { %v1080_v25 = vadd.f32 %v6190_v54, %v1079_v10  ;;  %v5409_v49 = vpop.f32.mrb[78].mxu0 }
 0x31b   :  { %vm1124_vm15 = vcmp.gt.f32.partialorder %v1088_v35, 0.0  ;;  %v1156_v30 = vmul.f32 0.2, %v1088_v35  ;;  %v1082_v0 = vpop.f32.mrb[79].mxu0  ;;  %v1091_v44 = vadd.f32 %v5409_v49, %v6190_v54 }
 0x31c   :  { %vm1122_vm0 = vcmp.gt.f32.partialorder %v1080_v25, 0.0  ;;  %v1154_v6 = vmul.f32 0.2, %v1080_v25  ;;  %v1083_v41 = vadd.f32 %v6190_v54, %v1082_v0 }
 0x31d   :  { %1306 = vadd.xlane.f32.xlu1 %v1305_v42  ;;  %v1188_v48 = vsel %vm1124_vm15, %v1088_v35, %v1156_v30  ;;  %v1157_v55 = vmul.f32 0.2, %v1091_v44  ;;  %vm1125_vm2 = vcmp.gt.f32.partialorder %v1091_v44, 0.0  ;;  %v1687_v35 = vunpack.c.l.s4 %v5573_v15 }
 0x31e   :  { %vm1123_vm1 = vcmp.gt.f32.partialorder %v1083_v41, 0.0  ;;  %v1155_v50 = vmul.f32 0.2, %v1083_v41  ;;  %v1227_v14 = vmul.f32 %v6198_v5, %v1188_v48  ;;  %v1186_v59 = vsel %vm1122_vm0, %v1080_v25, %v1154_v6 }
 0x31f   :  { %v1225_v63 = vmul.f32 %v6198_v5, %v1186_v59  ;;  %v1189_v54 = vsel %vm1125_vm2, %v1091_v44, %v1157_v55  ;;  %v1688_v42 = vunpack.c.0.s8 %v1687_v35 }
 0x320   :  { %v1320_v61 = vsel %vm1229_vm3, %v1227_v14, 0.0  ;;  %v1187_v40 = vsel %vm1123_vm1, %v1083_v41, %v1155_v50  ;;  %v1228_v8 = vmul.f32 %v6198_v5, %v1189_v54 }
 0x321   :  { %1321 = vadd.xlane.f32.xlu1 %v1320_v61  ;;  %v1314_v1 = vsel %vm1229_vm3, %v1225_v63, 0.0  ;;  %v1226_v4 = vmul.f32 %v6198_v5, %v1187_v40 }
 0x322   :  { %v1323_v56 = vsel %vm1229_vm3, %v1228_v8, 0.0 }
 0x323   :  { %v1317_v7 = vsel %vm1229_vm3, %v1226_v4, 0.0 }
 0x325   :  { %1315 = vadd.xlane.f32.xlu1 %v1314_v1  ;;  %v6332_v1 = vsub.s32 %v1688_v42, %v5879_v47 }
 0x329   :  { %1318 = vadd.xlane.f32.xlu1 %v1317_v7 }
 0x32d   :  { %1324 = vadd.xlane.f32.xlu1 %v1323_v56 }
 0x33e   :  { %v1238_v9 = vpop.xlane.xlu0 %1237 }
 0x33f   :  { %v6296_v12 = vadd.f32 %v6293_v3, %v1238_v9 }
 0x341   :  { %v1367_v53 = vand.u32 2147483647, %v6296_v12  ;;  %vm1559_vm3 = vcmp.ge.f32.partialorder %v6296_v12, 0.0 }
 0x342   :  { %v1232_v16 = vpop.xlane.xlu0 %1231 }
 0x343   :  { %v1399_v17 = vsub.f32 0.0, %v1367_v53  ;;  %v6300_v18 = vadd.f32 %v6293_v3, %v1232_v16 }
 0x345   :  { %v1433_v19 = vmul.f32 1.442695, %v1399_v17  ;;  %v1365_v5 = vand.u32 2147483647, %v6300_v18  ;;  %vm1557_vm4 = vcmp.ge.f32.partialorder %v6300_v18, 0.0 }
 0x346   :  { %v1241_v20 = vpop.xlane.xlu0 %1240 }
 0x347   :  { %5419 = vpow2.f32 %v1433_v19  ;;  %v1397_v21 = vsub.f32 0.0, %v1365_v5  ;;  %v6304_v22 = vadd.f32 %v6293_v3, %v1241_v20 }
 0x349   :  { %v1429_v23 = vmul.f32 1.442695, %v1397_v21  ;;  %v1368_v51 = vand.u32 2147483647, %v6304_v22  ;;  %vm1560_vm5 = vcmp.ge.f32.partialorder %v6304_v22, 0.0 }
 0x34a   :  { %v1235_v52 = vpop.xlane.xlu0 %1234 }
 0x34b   :  { %5421 = vpow2.f32 %v1429_v23  ;;  %v1400_v24 = vsub.f32 0.0, %v1368_v51  ;;  %v6308_v28 = vadd.f32 %v6293_v3, %v1235_v52 }
 0x34d   :  { %v1435_v31 = vmul.f32 1.442695, %v1400_v24  ;;  %v1366_v34 = vand.u32 2147483647, %v6308_v28  ;;  %vm1558_vm6 = vcmp.ge.f32.partialorder %v6308_v28, 0.0 }
 0x34e   :  { %v1250_v36 = vpop.xlane.xlu0 %1249 }
 0x34f   :  { %5423 = vpow2.f32 %v1435_v31  ;;  %v1398_v27 = vsub.f32 0.0, %v1366_v34  ;;  %v6312_v57 = vadd.f32 %v6293_v3, %v1250_v36 }
 0x351   :  { %v5420_v62 = vpop.eup %5419  ;;  %v1431_v37 = vmul.f32 1.442695, %v1398_v27  ;;  %v1371_v29 = vand.u32 2147483647, %v6312_v57  ;;  %vm1563_vm7 = vcmp.ge.f32.partialorder %v6312_v57, 0.0 }
 0x352   :  { %v1495_v33 = vadd.f32 1.0, %v5420_v62  ;;  %v1244_v58 = vpop.xlane.xlu0 %1243 }
 0x353   :  { %5425 = vpow2.f32 %v1431_v37  ;;  %v1403_v38 = vsub.f32 0.0, %v1371_v29  ;;  %v6316_v43 = vadd.f32 %v6293_v3, %v1244_v58 }
 0x354   :  { %5427 = vrcp.f32 %v1495_v33 }
 0x355   :  { %v5422_v45 = vpop.eup %5421  ;;  %v1441_v60 = vmul.f32 1.442695, %v1403_v38  ;;  %v1369_v2 = vand.u32 2147483647, %v6316_v43  ;;  %vm1561_vm8 = vcmp.ge.f32.partialorder %v6316_v43, 0.0 }
 0x356   :  { %v1493_v11 = vadd.f32 1.0, %v5422_v45  ;;  %v1253_v26 = vpop.xlane.xlu0 %1252 }
 0x357   :  { %5429 = vpow2.f32 %v1441_v60  ;;  %v1401_v32 = vsub.f32 0.0, %v1369_v2  ;;  %v6320_v39 = vadd.f32 %v6293_v3, %v1253_v26 }
 0x358   :  { %5431 = vrcp.f32 %v1493_v11 }
 0x359   :  { %v5424_v13 = vpop.eup %5423  ;;  %v1437_v10 = vmul.f32 1.442695, %v1401_v32  ;;  %v1372_v25 = vand.u32 2147483647, %v6320_v39  ;;  %vm1564_vm9 = vcmp.ge.f32.partialorder %v6320_v39, 0.0 }
 0x35a   :  { %v1496_v49 = vadd.f32 1.0, %v5424_v13  ;;  %v1247_v30 = vpop.xlane.xlu0 %1246 }
 0x35b   :  { %5433 = vpow2.f32 %v1437_v10  ;;  %v1404_v0 = vsub.f32 0.0, %v1372_v25  ;;  %v6324_v6 = vadd.f32 %v6293_v3, %v1247_v30 }
 0x35c   :  { %5435 = vrcp.f32 %v1496_v49 }
 0x35d   :  { %v5426_v41 = vpop.eup %5425  ;;  %v1443_v44 = vmul.f32 1.442695, %v1404_v0  ;;  %v1370_v48 = vand.u32 2147483647, %v6324_v6  ;;  %vm1562_vm10 = vcmp.ge.f32.partialorder %v6324_v6, 0.0 }
 0x35e   :  { %v5428_v50 = vpop.eup %5427  ;;  %v1494_v14 = vadd.f32 1.0, %v5426_v41  ;;  %v1262_v59 = vpop.xlane.xlu0 %1261 }
 0x35f   :  { %v1591_v61 = vmul.f32 %v5428_v50, %v5420_v62  ;;  %5437 = vpow2.f32 %v1443_v44  ;;  %v1402_v63 = vsub.f32 0.0, %v1370_v48  ;;  %v6328_v55 = vadd.f32 %v6293_v3, %v1262_v59 }
 0x360   :  { %5439 = vrcp.f32 %v1494_v14 }
 0x361   :  { %v5430_v40 = vpop.eup %5429  ;;  %v1623_v4 = vsel %vm1559_vm3, %v5428_v50, %v1591_v61  ;;  %v1439_v54 = vmul.f32 1.442695, %v1402_v63  ;;  %v1375_v7 = vand.u32 2147483647, %v6328_v55  ;;  %vm1567_vm11 = vcmp.ge.f32.partialorder %v6328_v55, 0.0 }
 0x362   :  { %v5432_v8 = vpop.eup %5431  ;;  %v1499_v56 = vadd.f32 1.0, %v5430_v40  ;;  %v1783_v16 = vcombine.high %v1623_v4, %v1623_v4  ;;  %v1790_v12 = vrot.slane %v1623_v4, %v6332_v1  ;;  %v1256_v24 = vpop.xlane.xlu0 %1255 }
 0x363   :  { %v1589_v9 = vmul.f32 %v5432_v8, %v5422_v45  ;;  %5441 = vpow2.f32 %v1439_v54  ;;  %v1407_v53 = vsub.f32 0.0, %v1375_v7  ;;  %v6344_v29 = vadd.f32 %v6293_v3, %v1256_v24 }
 0x364   :  { %5443 = vrcp.f32 %v1499_v56  ;;  %v1797_v52 = vrot.slane %v1783_v16, %v6332_v1  ;;  %v1798_v34 = vcombine.high %v1790_v12, %v1790_v12  ;;  %v6355_v60 = vrot.slane %v1790_v12, %v6332_v1 }
 0x365   :  { %v5434_v17 = vpop.eup %5433  ;;  %v1621_v19 = vsel %vm1557_vm4, %v5432_v8, %v1589_v9  ;;  %v1449_v5 = vmul.f32 1.442695, %v1407_v53  ;;  %v1373_v28 = vand.u32 2147483647, %v6344_v29  ;;  %vm1565_vm12 = vcmp.ge.f32.partialorder %v6344_v29, 0.0 }
 0x366   :  { %v5436_v20 = vpop.eup %5435  ;;  %v1685_v21 = vcombine.high %v1621_v19, %v1621_v19  ;;  %v1497_v51 = vadd.f32 1.0, %v5434_v17  ;;  %v1692_v18 = vrot.slane %v1621_v19, %v6332_v1  ;;  %v1799_v33 = vcombine.high %v1797_v52, %v1797_v52  ;;  %v1265_v32 = vpop.xlane.xlu0 %1264 }
 0x367   :  { %v1592_v23 = vmul.f32 %v5436_v20, %v5424_v13  ;;  %5445 = vpow2.f32 %v1449_v5  ;;  %v6350_v45 = vrot.slane %v1798_v34, %v6332_v1  ;;  %v6359_v13 = vrot.slane %v1797_v52, %v6332_v1 }
 0x368   :  { %5447 = vrcp.f32 %v1497_v51  ;;  %v1699_v27 = vrot.slane %v1685_v21, %v6332_v1  ;;  %v1700_v2 = vcombine.high %v1692_v18, %v1692_v18  ;;  %v6364_v10 = vrot.slane %v1799_v33, %v6332_v1 }
 0x369   :  { %v6338_v31 = vpop.eup %5437  ;;  %v1624_v62 = vsel %vm1560_vm5, %v5436_v20, %v1592_v23  ;;  %v3351_v30 = vcombine.low %v6355_v60, %v6350_v45  ;;  %v5166_v0 = vcombine.high %v6355_v60, %v6350_v45  ;;  %v6372_v42 = vadd.f32 %v6293_v3, %v1265_v32 }
 0x36a   :  { %v5440_v36 = vpop.eup %5439  ;;  %v1500_v58 = vadd.f32 1.0, %v6338_v31  ;;  %v1832_v11 = vcombine.high %v1624_v62, %v1624_v62  ;;  %v1701_v15 = vcombine.high %v1699_v27, %v1699_v27  ;;  %v1839_v35 = vrot.slane %v1624_v62, %v6332_v1 }
 0x36b   :  { %v1590_v37 = vmul.f32 %v5440_v36, %v5426_v41  ;;  %v6377_v48 = vrot.slane %v1700_v2, %v6332_v1  ;;  %v6383_v61 = vrot.slane %v1692_v18, %v6332_v1  ;;  %v1405_v4 = vsub.f32 0.0, %v1373_v28  ;;  %v1259_v18 = vpop.xlane.xlu0 %1258 }
 0x36c   :  { %5449 = vrcp.f32 %v1500_v58  ;;  %v1846_v50 = vrot.slane %v1832_v11, %v6332_v1  ;;  %v6386_v63 = vrot.slane %v1701_v15, %v6332_v1  ;;  %v3353_v54 = vcombine.low %v6359_v13, %v6364_v10 }
 0x36d   :  { %v6347_v38 = vpop.eup %5441  ;;  %v1622_v26 = vsel %vm1558_vm6, %v5440_v36, %v1590_v37  ;;  %v5167_v7 = vcombine.high %v6359_v13, %v6364_v10  ;;  %v6395_v56 = vrot.slane %v1699_v27, %v6332_v1  ;;  %v1376_v16 = vand.u32 2147483647, %v6372_v42 }
 0x36e   :  { %v5444_v22 = vpop.eup %5443  ;;  %v1498_v49 = vadd.f32 1.0, %v6347_v38  ;;  %v1734_v41 = vcombine.high %v1622_v26, %v1622_v26  ;;  %v1741_v8 = vrot.slane %v1622_v26, %v6332_v1  ;;  %v3253_v12 = vcombine.low %v6383_v61, %v6377_v48 }
 0x36f   :  { %v1595_v25 = vmul.f32 %v5444_v22, %v5430_v40  ;;  %v1847_v40 = vcombine.high %v1839_v35, %v1839_v35  ;;  %v5162_v19 = vcombine.high %v6383_v61, %v6377_v48  ;;  %v1848_v5 = vcombine.high %v1846_v50, %v1846_v50 }
 0x370   :  { %5451 = vrcp.f32 %v1498_v49  ;;  %v1748_v9 = vrot.slane %v1734_v41, %v6332_v1  ;;  %v1445_v51 = vmul.f32 1.442695, %v1405_v4  ;;  %v5163_v52 = vcombine.high %v6395_v56, %v6386_v63 }
 0x371   :  { %v6374_v44 = vpop.eup %5445  ;;  %v1627_v14 = vsel %vm1563_vm7, %v5444_v22, %v1595_v25  ;;  %v6407_v21 = vrot.slane %v1847_v40, %v6332_v1  ;;  %v1749_v24 = vcombine.high %v1741_v8, %v1741_v8  ;;  %v6415_v27 = vrot.slane %v1839_v35, %v6332_v1 }
 0x372   :  { %v5448_v59 = vpop.eup %5447  ;;  %v1979_v53 = vcombine.high %v1627_v14, %v1627_v14  ;;  %v1503_v20 = vadd.f32 1.0, %v6374_v44  ;;  %v1986_v34 = vrot.slane %v1627_v14, %v6332_v1  ;;  %v1750_v62 = vcombine.high %v1748_v9, %v1748_v9 }
 0x373   :  { %v1593_v57 = vmul.f32 %v5448_v59, %v5434_v17  ;;  %v3255_v17 = vcombine.low %v6395_v56, %v6386_v63  ;;  %v1408_v33 = vsub.f32 0.0, %v1376_v16  ;;  %v6420_v58 = vrot.slane %v1846_v50, %v6332_v1 }
 0x374   :  { %v1993_v37 = vrot.slane %v1979_v53, %v6332_v1  ;;  %v6423_v22 = vrot.slane %v1848_v5, %v6332_v1  ;;  %5453 = vrcp.f32 %v1503_v20  ;;  %v3400_v11 = vcombine.low %v6415_v27, %v6407_v21 }
 0x375   :  { %v1625_v23 = vsel %vm1561_vm8, %v5448_v59, %v1593_v57  ;;  %5455 = vpow2.f32 %v1445_v51  ;;  %v6433_v28 = vrot.slane %v1741_v8, %v6332_v1  ;;  %v6436_v25 = vrot.slane %v1749_v24, %v6332_v1  ;;  %v1274_v57 = vpop.xlane.xlu0 %1273 }
 0x376   :  { %v1881_v36 = vcombine.high %v1625_v23, %v1625_v23  ;;  %v5450_v43 = vpop.eup %5449  ;;  %v1888_v2 = vrot.slane %v1625_v23, %v6332_v1  ;;  %v1994_v49 = vcombine.high %v1986_v34, %v1986_v34  ;;  %v6439_v41 = vrot.slane %v1750_v62, %v6332_v1 }
 0x377   :  { %v1596_v32 = vmul.f32 %v5450_v43, %v6338_v31  ;;  %v1995_v50 = vcombine.high %v1993_v37, %v1993_v37  ;;  %v1451_v31 = vmul.f32 1.442695, %v1408_v33  ;;  %v6447_v8 = vadd.f32 %v6293_v3, %v1259_v18 }
 0x378   :  { %v1895_v26 = vrot.slane %v1881_v36, %v6332_v1  ;;  %v1896_v40 = vcombine.high %v1888_v2, %v1888_v2  ;;  %v6450_v53 = vrot.slane %v1748_v9, %v6332_v1  ;;  %v6457_v23 = vrot.slane %v1994_v49, %v6332_v1 }
 0x379   :  { %v1628_v14 = vsel %vm1564_vm9, %v5450_v43, %v1596_v32  ;;  %5457 = vpow2.f32 %v1451_v31  ;;  %v6465_v24 = vrot.slane %v1995_v50, %v6332_v1  ;;  %v1374_v36 = vand.u32 2147483647, %v6447_v8 }
 0x37a   :  { %v5452_v15 = vpop.eup %5451  ;;  %v1897_v16 = vcombine.high %v1895_v26, %v1895_v26  ;;  %v2028_v5 = vcombine.high %v1628_v14, %v1628_v14  ;;  %v6471_v62 = vrot.slane %v1986_v34, %v6332_v1  ;;  %v6474_v33 = vrot.slane %v1896_v40, %v6332_v1 }
 0x37b   :  { %v1594_v4 = vmul.f32 %v5452_v15, %v6347_v38  ;;  %v2035_v38 = vrot.slane %v1628_v14, %v6332_v1  ;;  %v6480_v32 = vrot.slane %v1993_v37, %v6332_v1  ;;  %v1406_v14 = vsub.f32 0.0, %v1374_v36 }
 0x37c   :  { %v6483_v49 = vrot.slane %v1897_v16, %v6332_v1  ;;  %v2042_v50 = vrot.slane %v2028_v5, %v6332_v1  ;;  %v6491_v6 = vrot.slane %v1888_v2, %v6332_v1  ;;  %v6498_v5 = vrot.slane %v1895_v26, %v6332_v1 }
 0x37d   :  { %v1626_v43 = vsel %vm1562_vm10, %v5452_v15, %v1594_v4  ;;  %v2043_v15 = vcombine.high %v2035_v38, %v2035_v38  ;;  %v1268_v4 = vpop.xlane.xlu0 %1267  ;;  %v1447_v46 = vmul.f32 1.442695, %v1406_v14  ;;  %v6515_v34 = vadd.f32 %v6293_v3, %v1274_v57 }
 0x37e   :  { %v5454_v31 = vpop.eup %5453  ;;  %v1930_v36 = vcombine.high %v1626_v43, %v1626_v43  ;;  %v1937_v2 = vrot.slane %v1626_v43, %v6332_v1  ;;  %v2044_v26 = vcombine.high %v2042_v50, %v2042_v50  ;;  %v6518_v43 = vadd.f32 %v6293_v3, %v1268_v4 }
 0x37f   :  { %v6493_v37 = vpop.eup %5455  ;;  %v1599_v51 = vmul.f32 %v5454_v31, %v6374_v44  ;;  %v6512_v14 = vrot.slane %v2043_v15, %v6332_v1  ;;  %v6525_v16 = vrot.slane %v2035_v38, %v6332_v1  ;;  %v6529_v15 = vrot.slane %v2042_v50, %v6332_v1 }
 0x380   :  { %v1501_v18 = vadd.f32 1.0, %v6493_v37  ;;  %v1944_v44 = vrot.slane %v1930_v36, %v6332_v1  ;;  %v1379_v4 = vand.u32 2147483647, %v6515_v34  ;;  %v6534_v39 = vrot.slane %v2044_v26, %v6332_v1 }
 0x381   :  { %v1271_v20 = vpop.xlane.xlu0 %1270  ;;  %v6537_v9 = vrot.slane %v1937_v2, %v6332_v1  ;;  %v1631_v38 = vsel %vm1567_vm11, %v5454_v31, %v1599_v51  ;;  %v3596_v50 = vcombine.low %v6525_v16, %v6512_v14  ;;  %v3361_v55 = vrot.slane %v3351_v30, %v6332_v1 }
 0x382   :  { %5459 = vrcp.f32 %v1501_v18  ;;  %v1945_v18 = vcombine.high %v1937_v2, %v1937_v2  ;;  %v1411_v59 = vsub.f32 0.0, %v1379_v4  ;;  %v1946_v26 = vcombine.high %v1944_v44, %v1944_v44 }
 0x383   :  { %v6520_v40 = vpop.eup %5457  ;;  %5461 = vpow2.f32 %v1447_v46  ;;  %v1377_v46 = vand.u32 2147483647, %v6518_v43  ;;  %v3368_v51 = vrot.slane %v5166_v0, %v6332_v1  ;;  %v6556_v31 = vrot.slane %v1944_v44, %v6332_v1 }
 0x384   :  { %v1504_v57 = vadd.f32 1.0, %v6520_v40  ;;  %v2175_v2 = vcombine.high %v1631_v38, %v1631_v38  ;;  %v1457_v36 = vmul.f32 1.442695, %v1411_v59  ;;  %v6563_v4 = vrot.slane %v1945_v18, %v6332_v1 }
 0x385   :  { %v1409_v35 = vsub.f32 0.0, %v1377_v46  ;;  %v2182_v30 = vrot.slane %v1631_v38, %v6332_v1  ;;  %v3382_v45 = vrot.slane %v5167_v7, %v6332_v1  ;;  %v3383_v60 = vcombine.low %v3361_v55, %v3368_v51  ;;  %v1277_v59 = vpop.xlane.xlu0 %1276 }
 0x386   :  { %5463 = vrcp.f32 %v1504_v57  ;;  %v3375_v57 = vrot.slane %v3353_v54, %v6332_v1  ;;  %v6571_v0 = vadd.f32 %v6293_v3, %v1271_v20  ;;  %v3263_v54 = vrot.slane %v3253_v12, %v6332_v1 }
 0x387   :  { %v1453_v46 = vmul.f32 1.442695, %v1409_v35  ;;  %5465 = vpow2.f32 %v1457_v36  ;;  %v3270_v35 = vrot.slane %v5162_v19, %v6332_v1  ;;  %v3277_v13 = vrot.slane %v3255_v17, %v6332_v1 }
 0x388   :  { %v3384_v44 = vcombine.low %v3375_v57, %v3382_v45  ;;  %v2189_v7 = vrot.slane %v2175_v2, %v6332_v1  ;;  %v3391_v20 = vrot.slane %v3383_v60, %v6332_v1  ;;  %v1378_v12 = vand.u32 2147483647, %v6571_v0 }
 0x389   :  { %5467 = vpow2.f32 %v1453_v46  ;;  %v3284_v18 = vrot.slane %v5163_v52, %v6332_v1  ;;  %v3285_v19 = vcombine.low %v3263_v54, %v3270_v35  ;;  %v6597_v17 = vadd.f32 %v6293_v3, %v1277_v59 }
 0x38a   :  { %v3398_v61 = vrot.slane %v3384_v44, %v6332_v1  ;;  %v6600_v36 = vrot.slane %v1946_v26, %v6332_v1  ;;  %vm1568_vm13 = vcmp.ge.f32.partialorder %v6372_v42, 0.0  ;;  %v1410_v51 = vsub.f32 0.0, %v1378_v12 }
 0x38b   :  { %v3286_v63 = vcombine.low %v3277_v13, %v3284_v18  ;;  %v2190_v56 = vcombine.high %v2182_v30, %v2182_v30  ;;  %v1380_v2 = vand.u32 2147483647, %v6597_v17  ;;  %v2191_v46 = vcombine.high %v2189_v7, %v2189_v7 }
 0x38c   :  { %v5460_v10 = vpop.eup %5459  ;;  %v1455_v60 = vmul.f32 1.442695, %v1410_v51  ;;  %v3293_v54 = vrot.slane %v3285_v19, %v6332_v1  ;;  %vm1566_vm14 = vcmp.ge.f32.partialorder %v6447_v8, 0.0  ;;  %vm1571_vm15 = vcmp.ge.f32.partialorder %v6515_v34, 0.0 }
 0x38d   :  { %v6592_v38 = vpop.eup %5461  ;;  %v1597_v48 = vmul.f32 %v5460_v10, %v6493_v37  ;;  %v3399_v37 = vcombine.low %v3391_v20, %v3398_v61  ;;  %v3300_v59 = vrot.slane %v3286_v63, %v6332_v1  ;;  %v1412_v44 = vsub.f32 0.0, %v1380_v2 }
 0x38e   :  { %v1502_v55 = vadd.f32 1.0, %v6592_v38  ;;  %v6624_v19 = vrot.slane %v2190_v56, %v6332_v1  ;;  %v8043_v56 = vcombine.high %v6415_v27, %v6407_v21  ;;  %v8044_v21 = vcombine.low %v6420_v58, %v6423_v22 }
 0x38f   :  { %v1629_v52 = vsel %vm1565_vm12, %v5460_v10, %v1597_v48  ;;  %4828 = vperm.xlu1 %5417, %v3399_v37   ;;  %v3301_v12 = vcombine.low %v3293_v54, %v3300_v59  ;;  %v1459_v18 = vmul.f32 1.442695, %v1412_v44  ;;  %v1286_v59 = vpop.xlane.xlu1 %1285  ;;  %vm1569_vm0 = vcmp.ge.f32.partialorder %v6518_v43, 0.0 }
 0x390   :  { %v5464_v57 = vpop.eup %5463  ;;  %v2077_v45 = vcombine.high %v1629_v52, %v1629_v52  ;;  %5469 = vrcp.f32 %v1502_v55  ;;  %v2084_v13 = vrot.slane %v1629_v52, %v6332_v1  ;;  %v6627_v55 = vrot.slane %v2191_v46, %v6332_v1 }
 0x391   :  { %5471 = vpow2.f32 %v1455_v60  ;;  %v1600_v20 = vmul.f32 %v5464_v57, %v6520_v40  ;;  %v6619_v48 = vpop.eup %5465  ;;  %4822 = vperm.xlu0 %5418, %v3301_v12   ;;  %v3410_v52 = vrot.slane %v3400_v11, %v6332_v1  ;;  %v3417_v37 = vrot.slane %v8043_v56, %v6332_v1 }
 0x392   :  { %v2091_v51 = vrot.slane %v2077_v45, %v6332_v1  ;;  %v1507_v40 = vadd.f32 1.0, %v6619_v48  ;;  %5473 = vpow2.f32 %v1459_v18  ;;  %v6645_v46 = vrot.slane %v2182_v30, %v6332_v1 }
 0x393   :  { %v6631_v63 = vpop.eup %5467  ;;  %v6648_v45 = vrot.slane %v2189_v7, %v6332_v1  ;;  %v2092_v60 = vcombine.high %v2084_v13, %v2084_v13  ;;  %v1632_v54 = vsel %vm1568_vm13, %v5464_v57, %v1600_v20  ;;  %v3424_v27 = vrot.slane %v8044_v21, %v6332_v1 }
 0x394   :  { %5475 = vrcp.f32 %v1507_v40  ;;  %v1505_v11 = vadd.f32 1.0, %v6631_v63  ;;  %v2093_v42 = vcombine.high %v2091_v51, %v2091_v51  ;;  %v8045_v20 = vcombine.high %v6420_v58, %v6423_v22 }
 0x395   :  { %v3432_v18 = vcombine.low %v3410_v52, %v3417_v37  ;;  %v6670_v56 = vrot.slane %v2084_v13, %v6332_v1  ;;  %v6673_v21 = vrot.slane %v2091_v51, %v6332_v1  ;;  %v2224_v7 = vcombine.high %v1632_v54, %v1632_v54 }
 0x396   :  { %5477 = vrcp.f32 %v1505_v11  ;;  %v3431_v12 = vrot.slane %v8045_v20, %v6332_v1  ;;  %v6676_v44 = vadd.f32 %v6293_v3, %v1286_v59  ;;  %v6679_v57 = vrot.slane %v2092_v60, %v6332_v1 }
 0x397   :  { %v2231_v11 = vrot.slane %v1632_v54, %v6332_v1  ;;  %v6687_v13 = vrot.slane %v2093_v42, %v6332_v1  ;;  %v8046_v37 = vcombine.low %v6433_v28, %v6436_v25  ;;  %v8047_v54 = vcombine.high %v6433_v28, %v6436_v25 }
 0x398   :  { %v3433_v22 = vcombine.low %v3424_v27, %v3431_v12  ;;  %v1383_v51 = vand.u32 2147483647, %v6676_v44  ;;  %v3440_v42 = vrot.slane %v3432_v18, %v6332_v1  ;;  %v2238_v12 = vrot.slane %v2224_v7, %v6332_v1 }
 0x399   :  { %v3312_v60 = vrot.slane %v8046_v37, %v6332_v1  ;;  %v8048_v28 = vcombine.low %v6450_v53, %v6439_v41  ;;  %v8049_v18 = vcombine.high %v6450_v53, %v6439_v41  ;;  %vm1570_vm1 = vcmp.ge.f32.partialorder %v6571_v0, 0.0 }
 0x39a   :  { %v5470_v40 = vpop.eup %5469  ;;  %v3447_v20 = vrot.slane %v3433_v22, %v6332_v1  ;;  %v1415_v37 = vsub.f32 0.0, %v1383_v51  ;;  %v2240_v53 = vcombine.high %v2238_v12, %v2238_v12  ;;  %vm1572_vm2 = vcmp.ge.f32.partialorder %v6597_v17, 0.0 }
 0x39b   :  { %v1598_v58 = vmul.f32 %v5470_v40, %v6592_v38  ;;  %v6684_v52 = vpop.eup %5471  ;;  %v3319_v38 = vrot.slane %v8047_v54, %v6332_v1  ;;  %v3326_v25 = vrot.slane %v8048_v28, %v6332_v1  ;;  %v1280_v54 = vpop.xlane.xlu1 %1279  ;;  %v3333_v7 = vrot.slane %v8049_v18, %v6332_v1 }
 0x39c   :  { %v1506_v59 = vadd.f32 1.0, %v6684_v52  ;;  %v6709_v8 = vpop.eup %5473  ;;  %v1465_v35 = vmul.f32 1.442695, %v1415_v37  ;;  %v8055_v28 = vcombine.high %v6480_v32, %v6465_v24  ;;  %vm1575_vm3 = vcmp.ge.f32.partialorder %v6676_v44, 0.0 }
 0x39d   :  { %v1630_v27 = vsel %vm1566_vm14, %v5470_v40, %v1598_v58  ;;  %v2239_v40 = vcombine.high %v2231_v11, %v2231_v11  ;;  %v3448_v58 = vcombine.low %v3440_v42, %v3447_v20  ;;  %v1508_v2 = vadd.f32 1.0, %v6709_v8 }
 0x39e   :  { %v2126_v30 = vcombine.high %v1630_v27, %v1630_v27  ;;  %5479 = vrcp.f32 %v1506_v59  ;;  %v2133_v22 = vrot.slane %v1630_v27, %v6332_v1  ;;  %v3334_v61 = vcombine.low %v3312_v60, %v3319_v38  ;;  %v5476_v10 = vpop.eup %5475 }
 0x39f   :  { %4831 = vperm.xlu1 %5417, %v3448_v58   ;;  %v3335_v59 = vcombine.low %v3326_v25, %v3333_v7  ;;  %v6721_v42 = vadd.f32 %v6293_v3, %v1280_v54  ;;  %v6726_v27 = vrot.slane %v2231_v11, %v6332_v1  ;;  %v6730_v38 = vrot.slane %v2239_v40, %v6332_v1 }
 0x3a0   :  { %v2140_v51 = vrot.slane %v2126_v30, %v6332_v1  ;;  %v1603_v30 = vmul.f32 %v5476_v10, %v6619_v48  ;;  %v5478_v60 = vpop.eup %5477  ;;  %5481 = vrcp.f32 %v1508_v2  ;;  %v2141_v25 = vcombine.high %v2133_v22, %v2133_v22 }
 0x3a1   :  { %v3349_v20 = vrot.slane %v3335_v59, %v6332_v1  ;;  %v1381_v37 = vand.u32 2147483647, %v6721_v42  ;;  %v3342_v11 = vrot.slane %v3334_v61, %v6332_v1  ;;  %v1601_v40 = vmul.f32 %v5478_v60, %v6631_v63 }
 0x3a2   :  { %v2142_v54 = vcombine.high %v2140_v51, %v2140_v51  ;;  %v1635_v58 = vsel %vm1571_vm15, %v5476_v10, %v1603_v30  ;;  %5483 = vpow2.f32 %v1465_v35  ;;  %v6743_v7 = vrot.slane %v2240_v53, %v6332_v1 }
 0x3a3   :  { %v2371_v18 = vcombine.high %v1635_v58, %v1635_v58  ;;  %v2378_v48 = vrot.slane %v1635_v58, %v6332_v1  ;;  %v3350_v59 = vcombine.low %v3342_v11, %v3349_v20  ;;  %v1413_v41 = vsub.f32 0.0, %v1381_v37 }
 0x3a4   :  { %v6748_v10 = vrot.slane %v2238_v12, %v6332_v1  ;;  %v1633_v63 = vsel %vm1569_vm0, %v5478_v60, %v1601_v40  ;;  %v6754_v35 = vrot.slane %v2141_v25, %v6332_v1  ;;  %v6763_v43 = vrot.slane %v2142_v54, %v6332_v1 }
 0x3a5   :  { %v2385_v61 = vrot.slane %v2371_v18, %v6332_v1  ;;  %v2273_v30 = vcombine.high %v1633_v63, %v1633_v63  ;;  %v2280_v53 = vrot.slane %v1633_v63, %v6332_v1  ;;  %4825 = vperm.xlu1 %5417, %v3350_v59   ;;  %v1461_v20 = vmul.f32 1.442695, %v1413_v41 }
 0x3a6   :  { %v2386_v60 = vcombine.high %v2378_v48, %v2378_v48  ;;  %v6768_v11 = vrot.slane %v2133_v22, %v6332_v1  ;;  %v6773_v40 = vrot.slane %v2140_v51, %v6332_v1  ;;  %v8050_v22 = vcombine.low %v6471_v62, %v6457_v23 }
 0x3a7   :  { %v2287_v18 = vrot.slane %v2273_v30, %v6332_v1  ;;  %v2387_v59 = vcombine.high %v2385_v61, %v2385_v61  ;;  %v2288_v63 = vcombine.high %v2280_v53, %v2280_v53  ;;  %5485 = vpow2.f32 %v1461_v20 }
 0x3a8   :  { %v5480_v37 = vpop.eup %5479  ;;  %v6786_v51 = vrot.slane %v2386_v60, %v6332_v1  ;;  %v3557_v0 = vrot.slane %v8050_v22, %v6332_v1  ;;  %v6802_v60 = vrot.slane %v2378_v48, %v6332_v1  ;;  %v6805_v34 = vrot.slane %v2385_v61, %v6332_v1  ;;  %v1289_v22 = vpop.xlane.xlu1 %1288 }
 0x3a9   :  { %v1602_v41 = vmul.f32 %v5480_v37, %v6684_v52  ;;  %v2289_v20 = vcombine.high %v2287_v18, %v2287_v18  ;;  %v6811_v54 = vrot.slane %v2288_v63, %v6332_v1  ;;  %v6814_v2 = vrot.slane %v2280_v53, %v6332_v1 }
 0x3aa   :  { %v5482_v25 = vpop.eup %5481  ;;  %8052 = vst [vmem:[#allocation7_spill] sm:$0xff] %v6805_v34  ;;  %v8054_v48 = vcombine.low %v6480_v32, %v6465_v24  ;;  %vm1573_vm4 = vcmp.ge.f32.partialorder %v6721_v42, 0.0  ;;  %v8064_v44 = vcombine.high %v6537_v9, %v6563_v4 }
 0x3ab   :  { %v1634_v30 = vsel %vm1570_vm1, %v5480_v37, %v1602_v41  ;;  %v1604_v58 = vmul.f32 %v5482_v25, %v6709_v8  ;;  %v8051_v37 = vcombine.high %v6471_v62, %v6457_v23  ;;  %v6808_v8 = vrot.slane %v2387_v59, %v6332_v1 }
 0x3ac   :  { %v2322_v12 = vcombine.high %v1634_v30, %v1634_v30  ;;  %v6799_v52 = vpop.eup %5483  ;;  %v2329_v23 = vrot.slane %v1634_v30, %v6332_v1  ;;  %v3571_v61 = vrot.slane %v8054_v48, %v6332_v1  ;;  %v3578_v48 = vrot.slane %v8055_v28, %v6332_v1 }
 0x3ad   :  { %v3564_v41 = vrot.slane %v8051_v37, %v6332_v1  ;;  %8053 = vst [vmem:[#allocation8_spill] sm:$0xff] %v6808_v8  ;;  %v1511_v62 = vadd.f32 1.0, %v6799_v52  ;;  %v6825_v37 = vrot.slane %v2289_v20, %v6332_v1  ;;  %v1636_v53 = vsel %vm1572_vm2, %v5482_v25, %v1604_v58  ;;  %v1283_v20 = vpop.xlane.xlu1 %1282 }
 0x3ae   :  { %v2336_v63 = vrot.slane %v2322_v12, %v6332_v1  ;;  %v6841_v12 = vrot.slane %v2287_v18, %v6332_v1  ;;  %v2337_v25 = vcombine.high %v2329_v23, %v2329_v23  ;;  %v3580_v24 = vcombine.low %v3571_v61, %v3578_v48 }
 0x3af   :  { %5487 = vrcp.f32 %v1511_v62  ;;  %v3579_v29 = vcombine.low %v3557_v0, %v3564_v41  ;;  %v2420_v62 = vcombine.high %v1636_v53, %v1636_v53  ;;  %v6852_v41 = vrot.slane %v2329_v23, %v6332_v1 }
 0x3b0   :  { %v2338_v0 = vcombine.high %v2336_v63, %v2336_v63  ;;  %v6855_v18 = vrot.slane %v1636_v53, %v6332_v1  ;;  %v3594_v61 = vrot.slane %v3580_v24, %v6332_v1  ;;  %v6862_v48 = vadd.f32 %v6293_v3, %v1289_v22 }
 0x3b1   :  { %v6847_v32 = vpop.eup %5485  ;;  %v3587_v30 = vrot.slane %v3579_v29, %v6332_v1  ;;  %v6867_v23 = vrot.slane %v2336_v63, %v6332_v1  ;;  %v8056_v53 = vcombine.low %v6491_v6, %v6474_v33  ;;  %v8057_v29 = vcombine.high %v6491_v6, %v6474_v33 }
 0x3b2   :  { %v1509_v59 = vadd.f32 1.0, %v6847_v32  ;;  %v6878_v24 = vrot.slane %v2420_v62, %v6332_v1  ;;  %v8058_v63 = vcombine.low %v6498_v5, %v6483_v49  ;;  %v6885_v26 = vrot.slane %v2337_v25, %v6332_v1 }
 0x3b3   :  { %v3459_v58 = vrot.slane %v8056_v53, %v6332_v1  ;;  %v3466_v17 = vrot.slane %v8057_v29, %v6332_v1  ;;  %v3595_v22 = vcombine.low %v3587_v30, %v3594_v61  ;;  %v6888_v53 = vrot.slane %v2338_v0, %v6332_v1 }
 0x3b4   :  { %5489 = vrcp.f32 %v1509_v59  ;;  %v3473_v28 = vrot.slane %v8058_v63, %v6332_v1  ;;  %v2435_v33 = vcombine.high %v6855_v18, %v6855_v18  ;;  %v1384_v6 = vand.u32 2147483647, %v6862_v48 }
 0x3b5   :  { %4840 = vperm.xlu1 %5417, %v3595_v22   ;;  %v8059_v59 = vcombine.high %v6498_v5, %v6483_v49  ;;  %v3481_v62 = vcombine.low %v3459_v58, %v3466_v17  ;;  %v6898_v61 = vadd.f32 %v6293_v3, %v1283_v20  ;;  %v3606_v25 = vrot.slane %v3596_v50, %v6332_v1  ;;  %v1298_v58 = vpop.xlane.xlu1 %1297 }
 0x3b6   :  { %v1416_v0 = vsub.f32 0.0, %v1384_v6  ;;  %v8060_v29 = vcombine.high %v6525_v16, %v6512_v14  ;;  %v8061_v49 = vcombine.low %v6529_v15, %v6534_v39  ;;  %v8062_v20 = vcombine.high %v6529_v15, %v6534_v39 }
 0x3b7   :  { %v3480_v30 = vrot.slane %v8059_v59, %v6332_v1  ;;  %v2436_v50 = vcombine.high %v6878_v24, %v6878_v24  ;;  %v3489_v59 = vrot.slane %v3481_v62, %v6332_v1  ;;  %v1382_v16 = vand.u32 2147483647, %v6898_v61 }
 0x3b8   :  { %v3613_v22 = vrot.slane %v8060_v29, %v6332_v1  ;;  %v3620_v5 = vrot.slane %v8061_v49, %v6332_v1  ;;  %v3627_v17 = vrot.slane %v8062_v20, %v6332_v1  ;;  %v1467_v29 = vmul.f32 1.442695, %v1416_v0 }
 0x3b9   :  { %v5488_v63 = vpop.eup %5487  ;;  %v3482_v6 = vcombine.low %v3473_v28, %v3480_v30  ;;  %v1414_v15 = vsub.f32 0.0, %v1382_v16  ;;  %v6924_v20 = vadd.f32 %v6293_v3, %v1298_v58  ;;  %v8063_v28 = vcombine.low %v6537_v9, %v6563_v4 }
 0x3ba   :  { %v1607_v14 = vmul.f32 %v5488_v63, %v6799_v52  ;;  %v3628_v47 = vcombine.low %v3606_v25, %v3613_v22  ;;  %v3629_v49 = vcombine.low %v3620_v5, %v3627_v17  ;;  %5491 = vpow2.f32 %v1467_v29 }
 0x3bb   :  { %v3496_v39 = vrot.slane %v3482_v6, %v6332_v1  ;;  %v3508_v30 = vrot.slane %v8063_v28, %v6332_v1  ;;  %v1463_v17 = vmul.f32 1.442695, %v1414_v15  ;;  %v1387_v6 = vand.u32 2147483647, %v6924_v20 }
 0x3bc   :  { %v1639_v62 = vsel %vm1575_vm3, %v5488_v63, %v1607_v14  ;;  %v3636_v52 = vrot.slane %v3628_v47, %v6332_v1  ;;  %v3643_v25 = vrot.slane %v3629_v49, %v6332_v1  ;;  %v3515_v47 = vrot.slane %v8064_v44, %v6332_v1  ;;  %v1292_v63 = vpop.xlane.xlu1 %1291 }
 0x3bd   :  { %v2567_v0 = vcombine.high %v1639_v62, %v1639_v62  ;;  %v2574_v22 = vrot.slane %v1639_v62, %v6332_v1  ;;  %v3497_v5 = vcombine.low %v3489_v59, %v3496_v39  ;;  %5493 = vpow2.f32 %v1463_v17 }
 0x3be   :  { %v5490_v16 = vpop.eup %5489  ;;  %v3644_v59 = vcombine.low %v3636_v52, %v3643_v25  ;;  %v1419_v39 = vsub.f32 0.0, %v1387_v6  ;;  %v8065_v15 = vcombine.low %v6556_v31, %v6600_v36  ;;  %v8066_v9 = vcombine.high %v6556_v31, %v6600_v36  ;;  %v6964_v6 = vld [vmem:[#allocation2] ss:$0 sm:$0xff] }
 0x3bf   :  { %v2581_v14 = vrot.slane %v2567_v0, %v6332_v1  ;;  %v2582_v29 = vcombine.high %v2574_v22, %v2574_v22  ;;  %4834 = vperm.xlu1 %5417, %v3497_v5   ;;  %v1605_v49 = vmul.f32 %v5490_v16, %v6847_v32  ;;  %v6956_v62 = vrot.slane %v6855_v18, %v6332_v1 }
 0x3c0   :  { %v3522_v28 = vrot.slane %v8065_v15, %v6332_v1  ;;  %v3529_v4 = vrot.slane %v8066_v9, %v6332_v1  ;;  %v6959_v0 = vrot.slane %v2435_v33, %v6332_v1  ;;  %v6962_v32 = vrot.slane %v2436_v50, %v6332_v1 }
 0x3c1   :  { %8067 = vst [vmem:[#allocation9_spill] sm:$0xff] %v6956_v62  ;;  %v3530_v52 = vcombine.low %v3508_v30, %v3515_v47  ;;  %v2583_v25 = vcombine.high %v2581_v14, %v2581_v14  ;;  %v1473_v5 = vmul.f32 1.442695, %v1419_v39  ;;  %v6967_v44 = vadd.f32 %v6964_v6, %v1292_v63  ;;  %v1301_v63 = vpop.xlane.xlu1 %1300 }
 0x3c2   :  { %8068 = vst [vmem:[#allocation10_spill] sm:$0xff] %v6959_v0  ;;  %8069 = vst [vmem:[#allocation11_spill] sm:$0xff] %v6962_v32  ;;  %v3531_v17 = vcombine.low %v3522_v28, %v3529_v4  ;;  %v6975_v18 = vrot.slane %v6878_v24, %v6332_v1  ;;  %v6978_v33 = vrot.slane %v2582_v29, %v6332_v1  ;;  %vm1576_vm5 = vcmp.ge.f32.partialorder %v6862_v48, 0.0 }
 0x3c3   :  { %4843 = vperm.xlu1 %5417, %v3644_v59   ;;  %v1637_v50 = vsel %vm1573_vm4, %v5490_v16, %v1605_v49  ;;  %5495 = vpow2.f32 %v1473_v5  ;;  %v3538_v30 = vrot.slane %v3530_v52, %v6332_v1  ;;  %v1385_v59 = vand.u32 2147483647, %v6967_v44 }
 0x3c4   :  { %8070 = vst [vmem:[#allocation12_spill] sm:$0xff] %v6975_v18  ;;  %v3545_v47 = vrot.slane %v3531_v17, %v6332_v1  ;;  %v6991_v15 = vpop.eup %5491  ;;  %v6996_v16 = vrot.slane %v2574_v22, %v6332_v1  ;;  %v6999_v49 = vrot.slane %v2583_v25, %v6332_v1  ;;  %v7002_v9 = vrot.slane %v2581_v14, %v6332_v1 }
 0x3c5   :  { %v2469_v4 = vcombine.high %v1637_v50, %v1637_v50  ;;  %v1512_v52 = vadd.f32 1.0, %v6991_v15  ;;  %v1417_v5 = vsub.f32 0.0, %v1385_v59  ;;  %v8071_v22 = vcombine.low %v6645_v46, %v6624_v19  ;;  %v1295_v39 = vpop.xlane.xlu1 %1294 }
 0x3c6   :  { %v3546_v28 = vcombine.low %v3538_v30, %v3545_v47  ;;  %v8072_v25 = vcombine.high %v6645_v46, %v6624_v19  ;;  %v8073_v14 = vcombine.low %v6648_v45, %v6627_v55  ;;  %v2476_v46 = vrot.slane %v1637_v50, %v6332_v1 }
 0x3c7   :  { %v3753_v42 = vrot.slane %v8071_v22, %v6332_v1  ;;  %v7019_v59 = vpop.eup %5493  ;;  %5497 = vrcp.f32 %v1512_v52  ;;  %v1469_v29 = vmul.f32 1.442695, %v1417_v5  ;;  %v8074_v22 = vcombine.high %v6648_v45, %v6627_v55 }
 0x3c8   :  { %4837 = vperm.xlu1 %5417, %v3546_v28   ;;  %v3760_v30 = vrot.slane %v8072_v25, %v6332_v1  ;;  %v3767_v47 = vrot.slane %v8073_v14, %v6332_v1  ;;  %v1510_v25 = vadd.f32 1.0, %v7019_v59  ;;  %v7034_v52 = vrot.slane %v2469_v4, %v6332_v1 }
 0x3c9   :  { %v3774_v24 = vrot.slane %v8074_v22, %v6332_v1  ;;  %5499 = vpow2.f32 %v1469_v29  ;;  %v7038_v45 = vadd.f32 %v6964_v6, %v1301_v63  ;;  %v8075_v50 = vcombine.low %v6670_v56, %v6679_v57  ;;  %v1310_v36 = vpop.xlane.xlu1 %1309 }
 0x3ca   :  { %v3775_v14 = vcombine.low %v3753_v42, %v3760_v30  ;;  %5501 = vrcp.f32 %v1510_v25  ;;  %v8076_v29 = vcombine.high %v6670_v56, %v6679_v57  ;;  %v8077_v4 = vcombine.low %v6673_v21, %v6687_v13 }
 0x3cb   :  { %v3776_v5 = vcombine.low %v3767_v47, %v3774_v24  ;;  %v3655_v42 = vrot.slane %v8075_v50, %v6332_v1  ;;  %v8078_v47 = vcombine.high %v6673_v21, %v6687_v13  ;;  %v7062_v50 = vadd.f32 %v6964_v6, %v1295_v39 }
 0x3cc   :  { %v3783_v55 = vrot.slane %v3775_v14, %v6332_v1  ;;  %v3662_v24 = vrot.slane %v8076_v29, %v6332_v1  ;;  %v3669_v63 = vrot.slane %v8077_v4, %v6332_v1  ;;  %v2484_v14 = vcombine.high %v2476_v46, %v2476_v46 }
 0x3cd   :  { %v3790_v30 = vrot.slane %v3776_v5, %v6332_v1  ;;  %v3676_v22 = vrot.slane %v8078_v47, %v6332_v1  ;;  %v7058_v25 = vpop.eup %5495  ;;  %v1388_v5 = vand.u32 2147483647, %v7038_v45  ;;  %v8079_v57 = vcombine.low %v6726_v27, %v6730_v38 }
 0x3ce   :  { %v1515_v29 = vadd.f32 1.0, %v7058_v25  ;;  %v3677_v17 = vcombine.low %v3655_v42, %v3662_v24  ;;  %v7070_v21 = vrot.slane %v2476_v46, %v6332_v1  ;;  %vm1574_vm6 = vcmp.ge.f32.partialorder %v6898_v61, 0.0 }
 0x3cf   :  { %v3802_v56 = vrot.slane %v8079_v57, %v6332_v1  ;;  %v3791_v4 = vcombine.low %v3783_v55, %v3790_v30  ;;  %v3678_v19 = vcombine.low %v3669_v63, %v3676_v22  ;;  %v1420_v13 = vsub.f32 0.0, %v1388_v5 }
 0x3d0   :  { %v1386_v47 = vand.u32 2147483647, %v7062_v50  ;;  %v8080_v39 = vcombine.high %v6726_v27, %v6730_v38  ;;  %5503 = vrcp.f32 %v1515_v29  ;;  %v3685_v55 = vrot.slane %v3677_v17, %v6332_v1 }
 0x3d1   :  { %4852 = vperm.xlu1 %5417, %v3791_v4   ;;  %v3692_v42 = vrot.slane %v3678_v19, %v6332_v1  ;;  %v8081_v46 = vcombine.low %v6748_v10, %v6743_v7  ;;  %v1475_v24 = vmul.f32 1.442695, %v1420_v13  ;;  %v8082_v22 = vcombine.high %v6748_v10, %v6743_v7  ;;  %v5498_v5 = vpop.eup %5497 }
 0x3d2   :  { %v3809_v28 = vrot.slane %v8080_v39, %v6332_v1  ;;  %v1418_v63 = vsub.f32 0.0, %v1386_v47  ;;  %v2485_v57 = vcombine.high %v7034_v52, %v7034_v52  ;;  %v7091_v17 = vrot.slane %v2484_v14, %v6332_v1 }
 0x3d3   :  { %v3816_v30 = vrot.slane %v8081_v46, %v6332_v1  ;;  %v3823_v27 = vrot.slane %v8082_v22, %v6332_v1  ;;  %v3693_v19 = vcombine.low %v3685_v55, %v3692_v42  ;;  %v7094_v29 = vadd.f32 %v6964_v6, %v1310_v36  ;;  %v7097_v39 = vpop.eup %5499 }
 0x3d4   :  { %v3824_v38 = vcombine.low %v3802_v56, %v3809_v28  ;;  %v1608_v4 = vmul.f32 %v5498_v5, %v6991_v15  ;;  %5505 = vpow2.f32 %v1475_v24  ;;  %v1471_v13 = vmul.f32 1.442695, %v1418_v63  ;;  %v5502_v56 = vpop.eup %5501 }
 0x3d5   :  { %v3825_v47 = vcombine.low %v3816_v30, %v3823_v27  ;;  %vm1579_vm7 = vcmp.ge.f32.partialorder %v6924_v20, 0.0  ;;  %4846 = vperm.xlu1 %5417, %v3693_v19   ;;  %v1391_v10 = vand.u32 2147483647, %v7094_v29  ;;  %v8083_v28 = vcombine.low %v6768_v11, %v6754_v35 }
 0x3d6   :  { %v3832_v7 = vrot.slane %v3824_v38, %v6332_v1  ;;  %v8084_v15 = vcombine.high %v6768_v11, %v6754_v35  ;;  %v1640_v55 = vsel %vm1576_vm5, %v5498_v5, %v1608_v4  ;;  %v1513_v42 = vadd.f32 1.0, %v7097_v39 }
 0x3d7   :  { %v3704_v36 = vrot.slane %v8083_v28, %v6332_v1  ;;  %5507 = vpow2.f32 %v1471_v13  ;;  %v3839_v46 = vrot.slane %v3825_v47, %v6332_v1  ;;  %v2616_v30 = vcombine.high %v1640_v55, %v1640_v55 }
 0x3d8   :  { %v3711_v14 = vrot.slane %v8084_v15, %v6332_v1  ;;  %v2623_v24 = vrot.slane %v1640_v55, %v6332_v1  ;;  %v1606_v63 = vmul.f32 %v5502_v56, %v7019_v59  ;;  %v1423_v22 = vsub.f32 0.0, %v1391_v10 }
 0x3d9   :  { %v7118_v27 = vrot.slane %v7034_v52, %v6332_v1  ;;  %v7121_v35 = vrot.slane %v2485_v57, %v6332_v1  ;;  %5509 = vrcp.f32 %v1513_v42  ;;  %v3840_v11 = vcombine.low %v3832_v7, %v3839_v46 }
 0x3da   :  { %v2630_v48 = vrot.slane %v2616_v30, %v6332_v1  ;;  %v2631_v38 = vcombine.high %v2623_v24, %v2623_v24  ;;  %v1638_v5 = vsel %vm1574_vm6, %v5502_v56, %v1606_v63  ;;  %v8085_v59 = vcombine.low %v6773_v40, %v6763_v43  ;;  %v5504_v7 = vpop.eup %5503  ;;  %v1304_v56 = vpop.xlane.xlu1 %1303 }
 0x3db   :  { %v2518_v4 = vcombine.high %v1638_v5, %v1638_v5  ;;  %v2525_v52 = vrot.slane %v1638_v5, %v6332_v1  ;;  %4855 = vperm.xlu1 %5417, %v3840_v11   ;;  %v1481_v13 = vmul.f32 1.442695, %v1423_v22  ;;  %v8086_v57 = vcombine.high %v6773_v40, %v6763_v43 }
 0x3dc   :  { %v3718_v19 = vrot.slane %v8085_v59, %v6332_v1  ;;  %v2632_v28 = vcombine.high %v2630_v48, %v2630_v48  ;;  %v3726_v15 = vcombine.low %v3704_v36, %v3711_v14  ;;  %v7142_v42 = vrot.slane %v2631_v38, %v6332_v1 }
 0x3dd   :  { %v3725_v47 = vrot.slane %v8086_v57, %v6332_v1  ;;  %v2532_v46 = vrot.slane %v2518_v4, %v6332_v1  ;;  %v1611_v43 = vmul.f32 %v5504_v7, %v7058_v25  ;;  %vm1577_vm8 = vcmp.ge.f32.partialorder %v6967_v44, 0.0 }
 0x3de   :  { %v7150_v30 = vrot.slane %v2623_v24, %v6332_v1  ;;  %v2533_v36 = vcombine.high %v2525_v52, %v2525_v52  ;;  %5511 = vpow2.f32 %v1481_v13  ;;  %v7152_v14 = vpop.eup %5505  ;;  %v7155_v63 = vrot.slane %v2630_v48, %v6332_v1 }
 0x3df   :  { %v7158_v22 = vrot.slane %v2632_v28, %v6332_v1  ;;  %v1643_v25 = vsel %vm1579_vm7, %v5504_v7, %v1611_v43  ;;  %v3727_v11 = vcombine.low %v3718_v19, %v3725_v47  ;;  %v2534_v38 = vcombine.high %v2532_v46, %v2532_v46 }
 0x3e0   :  { %v2763_v5 = vcombine.high %v1643_v25, %v1643_v25  ;;  %v2770_v59 = vrot.slane %v1643_v25, %v6332_v1  ;;  %v3734_v24 = vrot.slane %v3726_v15, %v6332_v1  ;;  %v7171_v57 = vrot.slane %v2525_v52, %v6332_v1  ;;  %v1313_v15 = vpop.xlane.xlu1 %1312 }
 0x3e1   :  { %v7164_v4 = vpop.eup %5507  ;;  %v1516_v20 = vadd.f32 1.0, %v7152_v14  ;;  %v7175_v19 = vrot.slane %v2532_v46, %v6332_v1  ;;  %v7178_v47 = vrot.slane %v2533_v36, %v6332_v1  ;;  %v3741_v52 = vrot.slane %v3727_v11, %v6332_v1 }
 0x3e2   :  { %v2777_v7 = vrot.slane %v2763_v5, %v6332_v1  ;;  %v1514_v28 = vadd.f32 1.0, %v7164_v4  ;;  %v2778_v48 = vcombine.high %v2770_v59, %v2770_v59  ;;  %v7188_v13 = vrot.slane %v2534_v38, %v6332_v1 }
 0x3e3   :  { %v5510_v43 = vpop.eup %5509  ;;  %5513 = vrcp.f32 %v1516_v20  ;;  %v3742_v40 = vcombine.low %v3734_v24, %v3741_v52  ;;  %v7192_v55 = vadd.f32 %v6964_v6, %v1304_v56  ;;  %v7195_v25 = vadd.f32 %v6964_v6, %v1313_v15 }
 0x3e4   :  { %v2779_v36 = vcombine.high %v2777_v7, %v2777_v7  ;;  %v1609_v5 = vmul.f32 %v5510_v43, %v7097_v39  ;;  %5515 = vrcp.f32 %v1514_v28  ;;  %v7202_v38 = vrot.slane %v2770_v59, %v6332_v1 }
 0x3e5   :  { %v7207_v24 = vrot.slane %v2778_v48, %v6332_v1  ;;  %vm1580_vm9 = vcmp.ge.f32.partialorder %v7038_v45, 0.0  ;;  %4849 = vperm.xlu0 %5418, %v3742_v40   ;;  %v1389_v15 = vand.u32 2147483647, %v7192_v55  ;;  %v1392_v48 = vand.u32 2147483647, %v7195_v25 }
 0x3e6   :  { %v1641_v39 = vsel %vm1577_vm8, %v5510_v43, %v1609_v5  ;;  %v7219_v43 = vrot.slane %v2777_v7, %v6332_v1  ;;  %v7223_v5 = vrot.slane %v2779_v36, %v6332_v1  ;;  %vm1578_vm10 = vcmp.ge.f32.partialorder %v7062_v50, 0.0 }
 0x3e7   :  { %v2665_v56 = vcombine.high %v1641_v39, %v1641_v39  ;;  %v2672_v28 = vrot.slane %v1641_v39, %v6332_v1  ;;  %v1421_v11 = vsub.f32 0.0, %v1389_v15  ;;  %v1424_v59 = vsub.f32 0.0, %v1392_v48  ;;  %v1307_v15 = vpop.xlane.xlu1 %1306 }
 0x3e8   :  { %v7212_v52 = vpop.eup %5511  ;;  %v8087_v44 = vcombine.low %v6814_v2, %v6811_v54  ;;  %v8088_v46 = vcombine.high %v6814_v2, %v6811_v54  ;;  %v8090_v2 = vcombine.high %v6841_v12, %v6825_v37  ;;  %v7257_v3 = vadd.f32 %v6964_v6, %v1307_v15 }
 0x3e9   :  { %v2679_v40 = vrot.slane %v2665_v56, %v6332_v1  ;;  %v2680_v39 = vcombine.high %v2672_v28, %v2672_v28  ;;  %v1519_v20 = vadd.f32 1.0, %v7212_v52  ;;  %v1477_v48 = vmul.f32 1.442695, %v1421_v11 }
 0x3ea   :  { %v3851_v7 = vrot.slane %v8087_v44, %v6332_v1  ;;  %v3858_v36 = vrot.slane %v8088_v46, %v6332_v1  ;;  %v1483_v31 = vmul.f32 1.442695, %v1424_v59  ;;  %v8089_v44 = vcombine.low %v6841_v12, %v6825_v37 }
 0x3eb   :  { %v2681_v61 = vcombine.high %v2679_v40, %v2679_v40  ;;  %5517 = vrcp.f32 %v1519_v20  ;;  %v3872_v54 = vrot.slane %v8090_v2, %v6332_v1  ;;  %v7253_v11 = vrot.slane %v2680_v39, %v6332_v1 }
 0x3ec   :  { %v3865_v58 = vrot.slane %v8089_v44, %v6332_v1  ;;  %v3873_v59 = vcombine.low %v3851_v7, %v3858_v36  ;;  %5519 = vpow2.f32 %v1477_v48  ;;  %v7260_v12 = vrot.slane %v2672_v28, %v6332_v1 }
 0x3ed   :  { %v5514_v46 = vpop.eup %5513  ;;  %v7263_v2 = vrot.slane %v2681_v61, %v6332_v1  ;;  %vm1583_vm11 = vcmp.ge.f32.partialorder %v7094_v29, 0.0  ;;  %5521 = vpow2.f32 %v1483_v31  ;;  %v1390_v36 = vand.u32 2147483647, %v7257_v3 }
 0x3ee   :  { %v1612_v10 = vmul.f32 %v5514_v46, %v7152_v14  ;;  %v3874_v44 = vcombine.low %v3865_v58, %v3872_v54  ;;  %v5516_v37 = vpop.eup %5515  ;;  %v3881_v39 = vrot.slane %v3873_v59, %v6332_v1  ;;  %v7273_v28 = vrot.slane %v2679_v40, %v6332_v1  ;;  %v1322_v54 = vpop.xlane.xlu1 %1321 }
 0x3ef   :  { %v1610_v58 = vmul.f32 %v5516_v37, %v7164_v4  ;;  %v1422_v4 = vsub.f32 0.0, %v1390_v36  ;;  %v8091_v50 = vcombine.low %v6852_v41, %v6885_v26  ;;  %v7358_v32 = vadd.f32 %v6964_v6, %v1322_v54 }
 0x3f0   :  { %v1644_v14 = vsel %vm1580_vm9, %v5514_v46, %v1612_v10  ;;  %v3888_v7 = vrot.slane %v3874_v44, %v6332_v1  ;;  %v8096_v54 = vcombine.high %v6996_v16, %v6978_v33  ;;  %vm1581_vm12 = vcmp.ge.f32.partialorder %v7192_v55, 0.0 }
 0x3f1   :  { %v2812_v15 = vcombine.high %v1644_v14, %v1644_v14  ;;  %v2819_v31 = vrot.slane %v1644_v14, %v6332_v1  ;;  %v1642_v45 = vsel %vm1578_vm10, %v5516_v37, %v1610_v58  ;;  %v1479_v48 = vmul.f32 1.442695, %v1422_v4 }
 0x3f2   :  { %v3889_v10 = vcombine.low %v3881_v39, %v3888_v7  ;;  %v2714_v44 = vcombine.high %v1642_v45, %v1642_v45  ;;  %v2721_v14 = vrot.slane %v1642_v45, %v6332_v1  ;;  %v3900_v37 = vrot.slane %v8091_v50, %v6332_v1 }
 0x3f3   :  { %v2826_v40 = vrot.slane %v2812_v15, %v6332_v1  ;;  %v2827_v59 = vcombine.high %v2819_v31, %v2819_v31  ;;  %v8092_v15 = vcombine.high %v6852_v41, %v6885_v26  ;;  %v7301_v45 = vrot.slane %v2819_v31, %v6332_v1 }
 0x3f4   :  { %4858 = vperm.xlu1 %5417, %v3889_v10   ;;  %v2728_v36 = vrot.slane %v2714_v44, %v6332_v1  ;;  %v2729_v10 = vcombine.high %v2721_v14, %v2721_v14  ;;  %5523 = vpow2.f32 %v1479_v48  ;;  %v8094_v26 = vcombine.high %v6867_v23, %v6888_v53 }
 0x3f5   :  { %v5518_v39 = vpop.eup %5517  ;;  %v2828_v58 = vcombine.high %v2826_v40, %v2826_v40  ;;  %v7293_v7 = vrot.slane %v2827_v59, %v6332_v1  ;;  %v3907_v61 = vrot.slane %v8092_v15, %v6332_v1  ;;  %v8093_v59 = vcombine.low %v6867_v23, %v6888_v53 }
 0x3f6   :  { %v1615_v4 = vmul.f32 %v5518_v39, %v7212_v52  ;;  %v2730_v46 = vcombine.high %v2728_v36, %v2728_v36  ;;  %v3921_v41 = vrot.slane %v8094_v26, %v6332_v1  ;;  %v7315_v31 = vpop.eup %5519  ;;  %v7318_v15 = vrot.slane %v2826_v40, %v6332_v1 }
 0x3f7   :  { %v7305_v50 = vrot.slane %v2828_v58, %v6332_v1  ;;  %v3914_v44 = vrot.slane %v8093_v59, %v6332_v1  ;;  %v7321_v52 = vrot.slane %v2721_v14, %v6332_v1  ;;  %v7324_v48 = vrot.slane %v2729_v10, %v6332_v1  ;;  %v1316_v59 = vpop.xlane.xlu1 %1315  ;;  %v7328_v20 = vpop.eup %5521 }
 0x3f8   :  { %v1647_v58 = vsel %vm1583_vm11, %v5518_v39, %v1615_v4  ;;  %v3922_v26 = vcombine.low %v3900_v37, %v3907_v61  ;;  %v7337_v10 = vrot.slane %v2728_v36, %v6332_v1  ;;  %v1517_v39 = vadd.f32 1.0, %v7315_v31 }
 0x3f9   :  { %v2959_v40 = vcombine.high %v1647_v58, %v1647_v58  ;;  %v2966_v29 = vrot.slane %v1647_v58, %v6332_v1  ;;  %v7344_v23 = vrot.slane %v2730_v46, %v6332_v1  ;;  %v1520_v61 = vadd.f32 1.0, %v7328_v20 }
 0x3fa   :  { %5525 = vrcp.f32 %v1517_v39  ;;  %v3923_v36 = vcombine.low %v3914_v44, %v3921_v41  ;;  %v3930_v4 = vrot.slane %v3922_v26, %v6332_v1  ;;  %v7361_v37 = vadd.f32 %v6964_v6, %v1316_v59 }
 0x3fb   :  { %v2973_v53 = vrot.slane %v2959_v40, %v6332_v1  ;;  %v2974_v14 = vcombine.high %v2966_v29, %v2966_v29  ;;  %5527 = vrcp.f32 %v1520_v61  ;;  %v1319_v39 = vpop.xlane.xlu1 %1318  ;;  %v7366_v41 = vrot.slane %v2966_v29, %v6332_v1 }
 0x3fc   :  { %v3937_v40 = vrot.slane %v3923_v36, %v6332_v1  ;;  %v8095_v26 = vcombine.low %v6996_v16, %v6978_v33  ;;  %v4152_v61 = vrot.slane %v8096_v54, %v6332_v1  ;;  %v1395_v29 = vand.u32 2147483647, %v7358_v32 }
 0x3fd   :  { %v2975_v56 = vcombine.high %v2973_v53, %v2973_v53  ;;  %v7354_v46 = vrot.slane %v2974_v14, %v6332_v1  ;;  %v8097_v58 = vcombine.low %v7002_v9, %v6999_v49  ;;  %v7387_v18 = vrot.slane %v2973_v53, %v6332_v1 }
 0x3fe   :  { %v4145_v14 = vrot.slane %v8095_v26, %v6332_v1  ;;  %v7376_v36 = vpop.eup %5523  ;;  %v3938_v44 = vcombine.low %v3930_v4, %v3937_v40  ;;  %vm1584_vm13 = vcmp.ge.f32.partialorder %v7195_v25, 0.0  ;;  %v1427_v54 = vsub.f32 0.0, %v1395_v29 }
 0x3ff   :  { %v4159_v26 = vrot.slane %v8097_v58, %v6332_v1  ;;  %v7390_v33 = vrot.slane %v2975_v56, %v6332_v1  ;;  %v1518_v4 = vadd.f32 1.0, %v7376_v36  ;;  %v1393_v58 = vand.u32 2147483647, %v7361_v37 }
 0x400   :  { %4861 = vperm.xlu1 %5417, %v3938_v44   ;;  %v8098_v53 = vcombine.high %v7002_v9, %v6999_v49  ;;  %v4167_v59 = vcombine.low %v4145_v14, %v4152_v61  ;;  %v7404_v16 = vadd.f32 %v6964_v6, %v1319_v39  ;;  %v8099_v0 = vcombine.low %v7070_v21, %v7091_v17  ;;  %v1325_v49 = vpop.xlane.xlu1 %1324 }
 0x401   :  { %5529 = vrcp.f32 %v1518_v4  ;;  %v1489_v40 = vmul.f32 1.442695, %v1427_v54  ;;  %v1425_v44 = vsub.f32 0.0, %v1393_v58  ;;  %v8100_v8 = vcombine.high %v7070_v21, %v7091_v17 }
 0x402   :  { %v4166_v56 = vrot.slane %v8098_v53, %v6332_v1  ;;  %v4047_v62 = vrot.slane %v8099_v0, %v6332_v1  ;;  %v4529_v9 = vcombine.low %v7387_v18, %v7390_v33  ;;  %v4175_v39 = vrot.slane %v4167_v59, %v6332_v1 }
 0x403   :  { %v4054_v34 = vrot.slane %v8100_v8, %v6332_v1  ;;  %v1394_v14 = vand.u32 2147483647, %v7404_v16  ;;  %v8101_v0 = vcombine.low %v7118_v27, %v7121_v35  ;;  %5531 = vpow2.f32 %v1489_v40 }
 0x404   :  { %v4168_v29 = vcombine.low %v4159_v26, %v4166_v56  ;;  %v5526_v4 = vpop.eup %5525  ;;  %v1485_v26 = vmul.f32 1.442695, %v1425_v44  ;;  %v8102_v8 = vcombine.high %v7118_v27, %v7121_v35  ;;  %vm1582_vm14 = vcmp.ge.f32.partialorder %v7257_v3, 0.0 }
 0x405   :  { %v4061_v61 = vrot.slane %v8101_v0, %v6332_v1  ;;  %v5528_v17 = vpop.eup %5527  ;;  %v1613_v59 = vmul.f32 %v5526_v4, %v7315_v31  ;;  %v1426_v58 = vsub.f32 0.0, %v1394_v14  ;;  %v4069_v53 = vcombine.low %v4047_v62, %v4054_v34 }
 0x406   :  { %v4182_v54 = vrot.slane %v4168_v29, %v6332_v1  ;;  %v4068_v21 = vrot.slane %v8102_v8, %v6332_v1  ;;  %v7430_v56 = vadd.f32 %v6964_v6, %v1325_v49  ;;  %v1616_v40 = vmul.f32 %v5528_v17, %v7328_v20 }
 0x407   :  { %5533 = vpow2.f32 %v1485_v26  ;;  %v1645_v0 = vsel %vm1581_vm12, %v5526_v4, %v1613_v59  ;;  %v1487_v27 = vmul.f32 1.442695, %v1426_v58  ;;  %v4077_v35 = vrot.slane %v4069_v53, %v6332_v1 }
 0x408   :  { %v4183_v44 = vcombine.low %v4175_v39, %v4182_v54  ;;  %v4070_v29 = vcombine.low %v4061_v61, %v4068_v21  ;;  %v1396_v31 = vand.u32 2147483647, %v7430_v56  ;;  %v2861_v8 = vcombine.high %v1645_v0, %v1645_v0 }
 0x409   :  { %v2868_v14 = vrot.slane %v1645_v0, %v6332_v1  ;;  %v1648_v34 = vsel %vm1584_vm13, %v5528_v17, %v1616_v40  ;;  %5535 = vpow2.f32 %v1487_v27  ;;  %v5215_v49 = vcombine.high %v7387_v18, %v7390_v33 }
 0x40a   :  { %4876 = vperm.xlu1 %5417, %v4183_v44   ;;  %v4084_v62 = vrot.slane %v4070_v29, %v6332_v1  ;;  %v3008_v6 = vcombine.high %v1648_v34, %v1648_v34  ;;  %v3015_v20 = vrot.slane %v1648_v34, %v6332_v1  ;;  %v1428_v55 = vsub.f32 0.0, %v1396_v31 }
 0x40b   :  { %v2875_v39 = vrot.slane %v2861_v8, %v6332_v1  ;;  %v2876_v61 = vcombine.high %v2868_v14, %v2868_v14  ;;  %v5530_v26 = vpop.eup %5529  ;;  %v7446_v54 = vrot.slane %v2868_v14, %v6332_v1  ;;  %vm1587_vm15 = vcmp.ge.f32.partialorder %v7358_v32, 0.0 }
 0x40c   :  { %v4085_v4 = vcombine.low %v4077_v35, %v4084_v62  ;;  %v3022_v25 = vrot.slane %v3008_v6, %v6332_v1  ;;  %v3023_v21 = vcombine.high %v3015_v20, %v3015_v20  ;;  %v1491_v17 = vmul.f32 1.442695, %v1428_v55 }
 0x40d   :  { %v2877_v59 = vcombine.high %v2875_v39, %v2875_v39  ;;  %v7450_v58 = vrot.slane %v2876_v61, %v6332_v1  ;;  %v7453_v53 = vrot.slane %v3015_v20, %v6332_v1  ;;  %v1614_v40 = vmul.f32 %v5530_v26, %v7376_v36  ;;  %v7462_v27 = vpop.eup %5531 }
 0x40e   :  { %4870 = vperm.xlu1 %5417, %v4085_v4   ;;  %v7457_v44 = vrot.slane %v2875_v39, %v6332_v1  ;;  %v3024_v29 = vcombine.high %v3022_v25, %v3022_v25  ;;  %v7460_v0 = vrot.slane %v3023_v21, %v6332_v1  ;;  %5537 = vpow2.f32 %v1491_v17 }
 0x40f   :  { %v7465_v35 = vrot.slane %v2877_v59, %v6332_v1  ;;  %v4429_v31 = vcombine.low %v7446_v54, %v7450_v58  ;;  %v7470_v8 = vrot.slane %v3022_v25, %v6332_v1  ;;  %v1646_v36 = vsel %vm1582_vm14, %v5530_v26, %v1614_v40 }
 0x410   :  { %v7477_v34 = vrot.slane %v3024_v29, %v6332_v1  ;;  %v2910_v6 = vcombine.high %v1646_v36, %v1646_v36  ;;  %v2917_v3 = vrot.slane %v1646_v36, %v6332_v1  ;;  %v1523_v61 = vadd.f32 1.0, %v7462_v27 }
 0x411   :  { %v7481_v20 = vpop.eup %5533  ;;  %v8107_v55 = vcombine.low %v7171_v57, %v7178_v47  ;;  %vm1585_vm0 = vcmp.ge.f32.partialorder %v7361_v37, 0.0  ;;  %vm1586_vm1 = vcmp.ge.f32.partialorder %v7404_v16, 0.0  ;;  %v8122_v37 = vcombine.high %v7318_v15, %v7305_v50 }
 0x412   :  { %v2924_v25 = vrot.slane %v2910_v6, %v6332_v1  ;;  %v1521_v21 = vadd.f32 1.0, %v7481_v20  ;;  %v2925_v59 = vcombine.high %v2917_v3, %v2917_v3  ;;  %v7498_v40 = vrot.slane %v2917_v3, %v6332_v1 }
 0x413   :  { %5539 = vrcp.f32 %v1523_v61  ;;  %v7500_v29 = vpop.eup %5535  ;;  %v8103_v6 = vcombine.low %v7150_v30, %v7142_v42  ;;  %v8104_v3 = vcombine.high %v7150_v30, %v7142_v42  ;;  %v4096_v14 = vrot.slane %v8107_v55, %v6332_v1 }
 0x414   :  { %v2926_v36 = vcombine.high %v2924_v25, %v2924_v25  ;;  %v7503_v39 = vrot.slane %v2924_v25, %v6332_v1  ;;  %5541 = vrcp.f32 %v1521_v21  ;;  %v7510_v62 = vrot.slane %v2925_v59, %v6332_v1 }
 0x415   :  { %v4194_v26 = vrot.slane %v8103_v6, %v6332_v1  ;;  %v1522_v17 = vadd.f32 1.0, %v7500_v29  ;;  %v4201_v61 = vrot.slane %v8104_v3, %v6332_v1  ;;  %v8105_v25 = vcombine.low %v7155_v63, %v7158_v22 }
 0x416   :  { %v7522_v4 = vrot.slane %v2926_v36, %v6332_v1  ;;  %v8106_v59 = vcombine.high %v7155_v63, %v7158_v22  ;;  %v8108_v42 = vcombine.high %v7171_v57, %v7178_v47  ;;  %v8109_v47 = vcombine.low %v7175_v19, %v7188_v13 }
 0x417   :  { %v4208_v21 = vrot.slane %v8105_v25, %v6332_v1  ;;  %5543 = vrcp.f32 %v1522_v17  ;;  %v4216_v63 = vcombine.low %v4194_v26, %v4201_v61  ;;  %v8110_v17 = vcombine.high %v7175_v19, %v7188_v13 }
 0x418   :  { %v4215_v6 = vrot.slane %v8106_v59, %v6332_v1  ;;  %v4103_v30 = vrot.slane %v8108_v42, %v6332_v1  ;;  %v7541_v22 = vpop.eup %5537  ;;  %v4110_v59 = vrot.slane %v8109_v47, %v6332_v1  ;;  %v8112_v47 = vcombine.high %v7202_v38, %v7207_v24 }
 0x419   :  { %v1524_v42 = vadd.f32 1.0, %v7541_v22  ;;  %v4224_v26 = vrot.slane %v4216_v63, %v6332_v1  ;;  %v4117_v61 = vrot.slane %v8110_v17, %v6332_v1  ;;  %v8113_v63 = vcombine.low %v7219_v43, %v7223_v5 }
 0x41a   :  { %v4217_v57 = vcombine.low %v4208_v21, %v4215_v6  ;;  %v4118_v55 = vcombine.low %v4096_v14, %v4103_v30  ;;  %v8111_v21 = vcombine.low %v7202_v38, %v7207_v24  ;;  %v4348_v36 = vrot.slane %v8112_v47, %v6332_v1 }
 0x41b   :  { %v4355_v3 = vrot.slane %v8113_v63, %v6332_v1  ;;  %5545 = vrcp.f32 %v1524_v42  ;;  %v4119_v13 = vcombine.low %v4110_v59, %v4117_v61  ;;  %v8114_v14 = vcombine.high %v7219_v43, %v7223_v5 }
 0x41c   :  { %v4231_v25 = vrot.slane %v4217_v57, %v6332_v1  ;;  %v4341_v6 = vrot.slane %v8111_v21, %v6332_v1  ;;  %v4126_v19 = vrot.slane %v4118_v55, %v6332_v1  ;;  %v8115_v38 = vcombine.low %v7260_v12, %v7253_v11 }
 0x41d   :  { %v4362_v30 = vrot.slane %v8114_v14, %v6332_v1  ;;  %v8116_v21 = vcombine.high %v7260_v12, %v7253_v11  ;;  %v5540_v59 = vpop.eup %5539  ;;  %v4133_v55 = vrot.slane %v4119_v13, %v6332_v1  ;;  %v8117_v43 = vcombine.low %v7273_v28, %v7263_v2 }
 0x41e   :  { %v4232_v57 = vcombine.low %v4224_v26, %v4231_v25  ;;  %v4363_v17 = vcombine.low %v4341_v6, %v4348_v36  ;;  %v4243_v24 = vrot.slane %v8115_v38, %v6332_v1  ;;  %v8118_v36 = vcombine.high %v7273_v28, %v7263_v2  ;;  %v5542_v26 = vpop.eup %5541 }
 0x41f   :  { %v4250_v42 = vrot.slane %v8116_v21, %v6332_v1  ;;  %v4364_v61 = vcombine.low %v4355_v3, %v4362_v30  ;;  %v4257_v5 = vrot.slane %v8117_v43, %v6332_v1  ;;  %v1619_v6 = vmul.f32 %v5540_v59, %v7462_v27 }
 0x420   :  { %v4264_v25 = vrot.slane %v8118_v36, %v6332_v1  ;;  %4879 = vperm.xlu0 %5418, %v4232_v57   ;;  %v4371_v11 = vrot.slane %v4363_v17, %v6332_v1  ;;  %v8119_v3 = vcombine.low %v7301_v45, %v7293_v7  ;;  %v1617_v63 = vmul.f32 %v5542_v26, %v7481_v20 }
 0x421   :  { %v4265_v12 = vcombine.low %v4243_v24, %v4250_v42  ;;  %v4134_v13 = vcombine.low %v4126_v19, %v4133_v55  ;;  %v4378_v14 = vrot.slane %v4364_v61, %v6332_v1  ;;  %v1651_v28 = vsel %vm1587_vm15, %v5540_v59, %v1619_v6  ;;  %v5544_v20 = vpop.eup %5543 }
 0x422   :  { %v7600_v47 = vrot.slane %v8119_v3, %v6332_v1  ;;  %v4266_v2 = vcombine.low %v4257_v5, %v4264_v25  ;;  %v8120_v30 = vcombine.high %v7301_v45, %v7293_v7  ;;  %v8121_v17 = vcombine.low %v7318_v15, %v7305_v50 }
 0x423   :  { %v4273_v27 = vrot.slane %v4265_v12, %v6332_v1  ;;  %v3155_v19 = vcombine.high %v1651_v28, %v1651_v28  ;;  %v3162_v24 = vrot.slane %v1651_v28, %v6332_v1  ;;  %v1649_v32 = vsel %vm1585_vm0, %v5542_v26, %v1617_v63 }
 0x424   :  { %v4397_v57 = vrot.slane %v8120_v30, %v6332_v1  ;;  %v4404_v38 = vrot.slane %v8121_v17, %v6332_v1  ;;  %v4379_v21 = vcombine.low %v4371_v11, %v4378_v14  ;;  %v3057_v42 = vcombine.high %v1649_v32, %v1649_v32  ;;  %4873 = vperm.xlu0 %5418, %v4134_v13  }
 0x425   :  { %v3064_v59 = vrot.slane %v1649_v32, %v6332_v1  ;;  %v1618_v55 = vmul.f32 %v5544_v20, %v7500_v29  ;;  %v4280_v7 = vrot.slane %v4266_v2, %v6332_v1  ;;  %v3169_v45 = vrot.slane %v3155_v19, %v6332_v1  ;;  %v5546_v6 = vpop.eup %5545 }
 0x426   :  { %v3170_v61 = vcombine.high %v3162_v24, %v3162_v24  ;;  %v7623_v43 = vrot.slane %v3162_v24, %v6332_v1  ;;  %4888 = vperm.xlu1 %5417, %v4379_v21   ;;  %v4411_v5 = vrot.slane %v8122_v37, %v6332_v1  ;;  %v3071_v36 = vrot.slane %v3057_v42, %v6332_v1 }
 0x427   :  { %v3072_v25 = vcombine.high %v3064_v59, %v3064_v59  ;;  %v7631_v29 = vrot.slane %v3064_v59, %v6332_v1  ;;  %v1650_v26 = vsel %vm1586_vm1, %v5544_v20, %v1618_v55  ;;  %vm1588_vm2 = vcmp.ge.f32.partialorder %v7430_v56, 0.0 }
 0x428   :  { %v3171_v11 = vcombine.high %v3169_v45, %v3169_v45  ;;  %v7637_v12 = vrot.slane %v3169_v45, %v6332_v1  ;;  %v7640_v3 = vrot.slane %v3170_v61, %v6332_v1  ;;  %v3106_v50 = vcombine.high %v1650_v26, %v1650_v26 }
 0x429   :  { %v3073_v15 = vcombine.high %v3071_v36, %v3071_v36  ;;  %v7643_v63 = vrot.slane %v3071_v36, %v6332_v1  ;;  %v7646_v13 = vrot.slane %v3072_v25, %v6332_v1  ;;  %v3113_v16 = vrot.slane %v1650_v26, %v6332_v1 }
 0x42a   :  { %v7650_v14 = vrot.slane %v3171_v11, %v6332_v1  ;;  %v4723_v2 = vcombine.low %v7623_v43, %v7640_v3  ;;  %v5222_v28 = vcombine.high %v7623_v43, %v7640_v3  ;;  %v3120_v30 = vrot.slane %v3106_v50, %v6332_v1 }
 0x42b   :  { %v7658_v17 = vrot.slane %v3073_v15, %v6332_v1  ;;  %v4625_v20 = vcombine.low %v7631_v29, %v7646_v13  ;;  %v5218_v19 = vcombine.high %v7631_v29, %v7646_v13  ;;  %v3121_v24 = vcombine.high %v3113_v16, %v3113_v16 }
 0x42c   :  { %v4725_v32 = vcombine.low %v7637_v12, %v7650_v14  ;;  %v5223_v21 = vcombine.high %v7637_v12, %v7650_v14  ;;  %v3122_v42 = vcombine.high %v3120_v30, %v3120_v30  ;;  %v7669_v59 = vrot.slane %v3113_v16, %v6332_v1 }
 0x42d   :  { %v4627_v55 = vcombine.low %v7643_v63, %v7658_v17  ;;  %v5219_v45 = vcombine.high %v7643_v63, %v7658_v17  ;;  %v7676_v61 = vrot.slane %v3120_v30, %v6332_v1  ;;  %v7679_v37 = vrot.slane %v3121_v24, %v6332_v1 }
 0x42e   :  { %v7682_v36 = vrot.slane %v3122_v42, %v6332_v1  ;;  %v1620_v25 = vmul.f32 %v5546_v6, %v7541_v22  ;;  %v4281_v26 = vcombine.low %v4273_v27, %v4280_v7  ;;  %v4412_v11 = vcombine.low %v7600_v47, %v4397_v57 }
 0x42f   :  { %v4674_v50 = vcombine.low %v7669_v59, %v7679_v37  ;;  %v5220_v15 = vcombine.high %v7669_v59, %v7679_v37  ;;  %v4413_v16 = vcombine.low %v4404_v38, %v4411_v5  ;;  %v8123_v30 = vcombine.low %v7321_v52, %v7324_v48 }
 0x430   :  { %v1652_v47 = vsel %vm1588_vm2, %v5546_v6, %v1620_v25  ;;  %4882 = vperm.xlu1 %5417, %v4281_v26   ;;  %v4420_v27 = vrot.slane %v4412_v11, %v6332_v1  ;;  %v8124_v5 = vcombine.high %v7321_v52, %v7324_v48  ;;  %v8125_v22 = vcombine.low %v7337_v10, %v7344_v23 }
 0x431   :  { %v4292_v24 = vrot.slane %v8123_v30, %v6332_v1  ;;  %v3204_v57 = vcombine.high %v1652_v47, %v1652_v47  ;;  %v3211_v38 = vrot.slane %v1652_v47, %v6332_v1  ;;  %v4427_v7 = vrot.slane %v4413_v16, %v6332_v1 }
 0x432   :  { %v4299_v30 = vrot.slane %v8124_v5, %v6332_v1  ;;  %v4306_v42 = vrot.slane %v8125_v22, %v6332_v1  ;;  %v8126_v56 = vcombine.high %v7337_v10, %v7344_v23  ;;  %v8127_v25 = vcombine.low %v7366_v41, %v7354_v46 }
 0x433   :  { %v8128_v52 = vcombine.high %v7366_v41, %v7354_v46  ;;  %v3218_v11 = vrot.slane %v3204_v57, %v6332_v1  ;;  %v3219_v16 = vcombine.high %v3211_v38, %v3211_v38  ;;  %v7725_v22 = vrot.slane %v3211_v38, %v6332_v1 }
 0x434   :  { %v4313_v6 = vrot.slane %v8126_v56, %v6332_v1  ;;  %v4537_v26 = vrot.slane %v8127_v25, %v6332_v1  ;;  %v4428_v47 = vcombine.low %v4420_v27, %v4427_v7  ;;  %v4314_v5 = vcombine.low %v4292_v24, %v4299_v30 }
 0x435   :  { %v4544_v48 = vrot.slane %v8128_v52, %v6332_v1  ;;  %v4551_v10 = vrot.slane %v4529_v9, %v6332_v1  ;;  %v4558_v46 = vrot.slane %v5215_v49, %v6332_v1  ;;  %v3220_v41 = vcombine.high %v3218_v11, %v3218_v11 }
 0x436   :  { %v4315_v23 = vcombine.low %v4306_v42, %v4313_v6  ;;  %v7736_v57 = vrot.slane %v3218_v11, %v6332_v1  ;;  %v7739_v38 = vrot.slane %v3219_v16, %v6332_v1  ;;  %4891 = vperm.xlu0 %5418, %v4428_v47   ;;  %v4322_v42 = vrot.slane %v4314_v5, %v6332_v1 }
 0x437   :  { %v4559_v24 = vcombine.low %v4537_v26, %v4544_v48  ;;  %v4560_v7 = vcombine.low %v4551_v10, %v4558_v46  ;;  %v4439_v18 = vrot.slane %v4429_v31, %v6332_v1  ;;  %v7748_v33 = vrot.slane %v3220_v41, %v6332_v1 }
 0x438   :  { %v4329_v27 = vrot.slane %v4315_v23, %v6332_v1  ;;  %v4772_v9 = vcombine.low %v7725_v22, %v7739_v38  ;;  %v5224_v49 = vcombine.high %v7725_v22, %v7739_v38  ;;  %v8129_v25 = vcombine.high %v7446_v54, %v7450_v58 }
 0x439   :  { %v4567_v30 = vrot.slane %v4559_v24, %v6332_v1  ;;  %v4574_v6 = vrot.slane %v4560_v7, %v6332_v1  ;;  %v8130_v31 = vcombine.low %v7457_v44, %v7465_v35  ;;  %v4774_v48 = vcombine.low %v7736_v57, %v7748_v33 }
 0x43a   :  { %v4330_v56 = vcombine.low %v4322_v42, %v4329_v27  ;;  %v4446_v26 = vrot.slane %v8129_v25, %v6332_v1  ;;  %v5225_v11 = vcombine.high %v7736_v57, %v7748_v33  ;;  %v8131_v16 = vcombine.high %v7457_v44, %v7465_v35 }
 0x43b   :  { %v4453_v52 = vrot.slane %v8130_v31, %v6332_v1  ;;  %v8132_v54 = vcombine.low %v7453_v53, %v7460_v0  ;;  %v4575_v5 = vcombine.low %v4567_v30, %v4574_v6  ;;  %v8133_v10 = vcombine.high %v7453_v53, %v7460_v0  ;;  %v8139_v6 = vld [vmem:[#allocation8_spill] sm:$0xff] }
 0x43c   :  { %v4460_v47 = vrot.slane %v8131_v16, %v6332_v1  ;;  %4885 = vperm.xlu0 %5418, %v4330_v56   ;;  %v4461_v23 = vcombine.low %v4439_v18, %v4446_v26  ;;  %v8134_v41 = vcombine.low %v7470_v8, %v7477_v34  ;;  %v8135_v35 = vcombine.high %v7470_v8, %v7477_v34  ;;  %v8138_v56 = vld [vmem:[#allocation7_spill] sm:$0xff] }
 0x43d   :  { %v4586_v58 = vrot.slane %v8132_v54, %v6332_v1  ;;  %v4593_v46 = vrot.slane %v8133_v10, %v6332_v1  ;;  %v8136_v27 = vcombine.low %v6802_v60, %v6786_v51  ;;  %v8137_v53 = vcombine.high %v6802_v60, %v6786_v51 }
 0x43e   :  { %v4600_v24 = vrot.slane %v8134_v41, %v6332_v1  ;;  %v4462_v44 = vcombine.low %v4453_v52, %v4460_v47  ;;  %v4607_v42 = vrot.slane %v8135_v35, %v6332_v1  ;;  %v4469_v18 = vrot.slane %v4461_v23, %v6332_v1 }
 0x43f   :  { %v3949_v7 = vrot.slane %v8136_v27, %v6332_v1  ;;  %v3956_v0 = vrot.slane %v8137_v53, %v6332_v1  ;;  %v4608_v30 = vcombine.low %v4586_v58, %v4593_v46  ;;  %v8140_v25 = vcombine.low %v8138_v56, %v8139_v6 }
 0x440   :  { %v8141_v8 = vcombine.high %v8138_v56, %v8139_v6  ;;  %v4476_v31 = vrot.slane %v4462_v44, %v6332_v1  ;;  %v4609_v52 = vcombine.low %v4600_v24, %v4607_v42  ;;  %v8142_v51 = vcombine.low %v7498_v40, %v7510_v62  ;;  %4900 = vperm.xlu0 %5418, %v4575_v5   ;;  %v8150_v6 = vld [vmem:[#allocation12_spill] sm:$0xff] }
 0x441   :  { %v3963_v26 = vrot.slane %v8140_v25, %v6332_v1  ;;  %v3971_v16 = vcombine.low %v3949_v7, %v3956_v0  ;;  %v4616_v47 = vrot.slane %v4608_v30, %v6332_v1  ;;  %v8143_v58 = vcombine.high %v7498_v40, %v7510_v62  ;;  %v8146_v62 = vld [vmem:[#allocation9_spill] sm:$0xff]  ;;  %v8147_v40 = vld [vmem:[#allocation10_spill] sm:$0xff] }
 0x442   :  { %v3970_v34 = vrot.slane %v8141_v8, %v6332_v1  ;;  %v4488_v60 = vrot.slane %v8142_v51, %v6332_v1  ;;  %v8144_v10 = vcombine.low %v7503_v39, %v7522_v4  ;;  %v4477_v41 = vcombine.low %v4469_v18, %v4476_v31 }
 0x443   :  { %v4495_v23 = vrot.slane %v8143_v58, %v6332_v1  ;;  %v4623_v24 = vrot.slane %v4609_v52, %v6332_v1  ;;  %v3979_v44 = vrot.slane %v3971_v16, %v6332_v1  ;;  %v8145_v5 = vcombine.high %v7503_v39, %v7522_v4  ;;  %v8151_v39 = vld [vmem:[#allocation11_spill] sm:$0xff] }
 0x444   :  { %v3972_v54 = vcombine.low %v3963_v26, %v3970_v34  ;;  %v4502_v46 = vrot.slane %v8144_v10, %v6332_v1  ;;  %v8148_v7 = vcombine.low %v8146_v62, %v8147_v40  ;;  %v8149_v0 = vcombine.high %v8146_v62, %v8147_v40  ;;  %4894 = vperm.xlu1 %5417, %v4477_v41   ;;  %v4829_v40 = vpop.permute.xlu1 %4828 }
 0x445   :  { %v4509_v35 = vrot.slane %v8145_v5, %v6332_v1  ;;  %v4510_v27 = vcombine.low %v4488_v60, %v4495_v23  ;;  %v4624_v30 = vcombine.low %v4616_v47, %v4623_v24  ;;  %v8152_v4 = vcombine.low %v8150_v6, %v8151_v39 }
 0x446   :  { %v3986_v42 = vrot.slane %v3972_v54, %v6332_v1  ;;  %v3998_v53 = vrot.slane %v8148_v7, %v6332_v1  ;;  %v4005_v18 = vrot.slane %v8149_v0, %v6332_v1  ;;  %v8153_v26 = vcombine.high %v8150_v6, %v8151_v39  ;;  %v4823_v6 = vpop.permute.xlu0 %4822 }
 0x447   :  { %v4511_v56 = vcombine.low %v4502_v46, %v4509_v35  ;;  %v4012_v25 = vrot.slane %v8152_v4, %v6332_v1  ;;  %v4518_v31 = vrot.slane %v4510_v27, %v6332_v1  ;;  %v4733_v16 = vrot.slane %v4723_v2, %v6332_v1  ;;  %4903 = vperm.xlu0 %5418, %v4624_v30  }
 0x448   :  { %v4019_v8 = vrot.slane %v8153_v26, %v6332_v1  ;;  %v3987_v34 = vcombine.low %v3979_v44, %v3986_v42  ;;  %v4020_v52 = vcombine.low %v3998_v53, %v4005_v18  ;;  %v4740_v47 = vrot.slane %v5222_v28, %v6332_v1  ;;  %v7918_v57 = vpop.permute.xlu1 %4831 }
 0x449   :  { %v4525_v51 = vrot.slane %v4511_v56, %v6332_v1  ;;  %v4747_v54 = vrot.slane %v4725_v32, %v6332_v1  ;;  %v4754_v2 = vrot.slane %v5223_v21, %v6332_v1  ;;  %v4635_v23 = vrot.slane %v4625_v20, %v6332_v1 }
 0x44a   :  { %v4021_v60 = vcombine.low %v4012_v25, %v4019_v8  ;;  %v4028_v58 = vrot.slane %v4020_v52, %v6332_v1  ;;  %v4642_v43 = vrot.slane %v5218_v19, %v6332_v1  ;;  %4864 = vperm.xlu1 %5417, %v3987_v34   ;;  %v4755_v32 = vcombine.low %v4733_v16, %v4740_v47  ;;  %v8157_v47 = vld [vmem:[#allocation6_spill] sm:$0xff] }
 0x44b   :  { %v4526_v3 = vcombine.low %v4518_v31, %v4525_v51  ;;  %v4649_v12 = vrot.slane %v4627_v55, %v6332_v1  ;;  %v4756_v14 = vcombine.low %v4747_v54, %v4754_v2  ;;  %v4656_v20 = vrot.slane %v5219_v45, %v6332_v1 }
 0x44c   :  { %v4035_v28 = vrot.slane %v4021_v60, %v6332_v1  ;;  %v4657_v21 = vcombine.low %v4635_v23, %v4642_v43  ;;  %v4684_v29 = vrot.slane %v4674_v50, %v6332_v1  ;;  %v4763_v19 = vrot.slane %v4755_v32, %v6332_v1  ;;  %v4826_v33 = vpop.permute.xlu1 %4825 }
 0x44d   :  { %4897 = vperm.xlu0 %5418, %v4526_v3   ;;  %v4691_v55 = vrot.slane %v5220_v15, %v6332_v1  ;;  %v8154_v63 = vcombine.low %v7676_v61, %v7682_v36  ;;  %v4770_v45 = vrot.slane %v4756_v14, %v6332_v1  ;;  %v4658_v10 = vcombine.low %v4649_v12, %v4656_v20 }
 0x44e   :  { %v4036_v13 = vcombine.low %v4028_v58, %v4035_v28  ;;  %v4665_v46 = vrot.slane %v4657_v21, %v6332_v1  ;;  %v8155_v50 = vcombine.high %v7676_v61, %v7682_v36  ;;  %v4782_v59 = vrot.slane %v4772_v9, %v6332_v1 }
 0x44f   :  { %v4698_v17 = vrot.slane %v8154_v63, %v6332_v1  ;;  %v4706_v24 = vcombine.low %v4684_v29, %v4691_v55  ;;  %v4789_v37 = vrot.slane %v5224_v49, %v6332_v1  ;;  %v4796_v15 = vrot.slane %v4774_v48, %v6332_v1 }
 0x450   :  { %v4705_v41 = vrot.slane %v8155_v50, %v6332_v1  ;;  %4867 = vperm.xlu1 %5417, %v4036_v13   ;;  %v4771_v44 = vcombine.low %v4763_v19, %v4770_v45  ;;  %v4672_v61 = vrot.slane %v4658_v10, %v6332_v1  ;;  %v4803_v5 = vrot.slane %v5225_v11, %v6332_v1  ;;  %v7920_v11 = vpop.permute.xlu1 %4840 }
 0x451   :  { %v4714_v38 = vrot.slane %v4706_v24, %v6332_v1  ;;  %v4804_v49 = vcombine.low %v4782_v59, %v4789_v37  ;;  %v8156_v31 = vlaneseq  ;;  %vm4928_vm3 = vcmask 130112  }
 0x452   :  { %v4707_v36 = vcombine.low %v4698_v17, %v4705_v41  ;;  %4912 = vperm.xlu0 %5418, %v4771_v44   ;;  %v4673_v9 = vcombine.low %v4665_v46, %v4672_v61  ;;  %v4805_v22 = vcombine.low %v4796_v15, %v4803_v5  ;;  %vm4935_vm4 = vcmask 195712  }
 0x453   :  { %v4812_v27 = vrot.slane %v4804_v49, %v6332_v1  ;;  %v7941_v52 = vand.u32 127, %v8156_v31  ;;  %vm4942_vm5 = vcmask 261312   ;;  %vm4949_vm6 = vcmask 326912  }
 0x454   :  { %v4721_v35 = vrot.slane %v4707_v36, %v6332_v1  ;;  %v4819_v48 = vrot.slane %v4805_v22, %v6332_v1  ;;  %v7922_v7 = vpop.permute.xlu1 %4834  ;;  %vm4956_vm7 = vcmask 392512   ;;  %vm4963_vm8 = vcmask 458112  }
 0x455   :  { %v4923_v16 = vadd.s32 4294967288, %v7941_v52  ;;  %v4930_v2 = vadd.s32 4294967280, %v7941_v52  ;;  %v4921_v43 = vsub.s32 %v7941_v52, %v8157_v47  ;;  %v4937_v28 = vadd.s32 4294967272, %v7941_v52 }
 0x456   :  { %4906 = vperm.xlu0 %5418, %v4673_v9   ;;  %v4722_v42 = vcombine.low %v4714_v38, %v4721_v35  ;;  %v4820_v62 = vcombine.low %v4812_v27, %v4819_v48  ;;  %v4944_v32 = vadd.s32 4294967264, %v7941_v52  ;;  %v4951_v14 = vadd.s32 4294967256, %v7941_v52 }
 0x457   :  { %v4926_v54 = vsub.s32 %v4923_v16, %v8157_v47  ;;  %v4933_v21 = vsub.s32 %v4930_v2, %v8157_v47  ;;  %v4922_v29 = vrot.slane %v4823_v6, %v4921_v43  ;;  %v4940_v63 = vsub.s32 %v4937_v28, %v8157_v47 }
 0x458   :  { %v7924_v53 = vpop.permute.xlu1 %4843  ;;  %v4947_v17 = vsub.s32 %v4944_v32, %v8157_v47  ;;  %v4954_v46 = vsub.s32 %v4951_v14, %v8157_v47  ;;  %v4958_v41 = vadd.s32 4294967248, %v7941_v52  ;;  %v4965_v37 = vadd.s32 4294967240, %v7941_v52 }
 0x459   :  { %v4927_v12 = vrot.slane %v4826_v33, %v4926_v54  ;;  %v4934_v50 = vrot.slane %v4829_v40, %v4933_v21  ;;  %v4941_v36 = vrot.slane %v7918_v57, %v4940_v63  ;;  %v4972_v35 = vadd.s32 4294967232, %v7941_v52 }
 0x45a   :  { %4909 = vperm.xlu0 %5418, %v4722_v42   ;;  %v4948_v9 = vrot.slane %v7922_v7, %v4947_v17  ;;  %v4979_v38 = vadd.s32 4294967224, %v7941_v52  ;;  %v4961_v42 = vsub.s32 %v4958_v41, %v8157_v47  ;;  %v4986_v16 = vadd.s32 4294967216, %v7941_v52 }
 0x45b   :  { %v4929_v10 = vsel %vm4928_vm3, %v4927_v12, %v4922_v29  ;;  %v4975_v6 = vsub.s32 %v4972_v35, %v8157_v47  ;;  %vm4970_vm9 = vcmask 523712   ;;  %vm4977_vm10 = vcmask 589312  }
 0x45c   :  { %v7926_v0 = vpop.permute.xlu1 %4837  ;;  %v4936_v5 = vsel %vm4935_vm4, %v4934_v50, %v4929_v10  ;;  %v5000_v28 = vadd.s32 4294967200, %v7941_v52  ;;  %v4993_v12 = vadd.s32 4294967208, %v7941_v52  ;;  %v5007_v14 = vadd.s32 4294967192, %v7941_v52 }
 0x45d   :  { %v4955_v22 = vrot.slane %v7926_v0, %v4954_v46  ;;  %v4943_v27 = vsel %vm4942_vm5, %v4941_v36, %v4936_v5  ;;  %vm4984_vm11 = vcmask 654912   ;;  %vm4991_vm12 = vcmask 720512  }
 0x45e   :  { %4915 = vperm.xlu0 %5418, %v4820_v62   ;;  %v4968_v62 = vsub.s32 %v4965_v37, %v8157_v47  ;;  %v4950_v7 = vsel %vm4949_vm6, %v4948_v9, %v4943_v27  ;;  %v4996_v10 = vsub.s32 %v4993_v12, %v8157_v47  ;;  %v5010_v50 = vsub.s32 %v5007_v14, %v8157_v47 }
 0x45f   :  { %v4957_v0 = vsel %vm4956_vm7, %v4955_v22, %v4950_v7  ;;  %vm4998_vm13 = vcmask 786112   ;;  %vm5005_vm14 = vcmask 851712   ;;  %vm5012_vm15 = vcmask 917312  }
 0x460   :  { %v7928_v18 = vpop.permute.xlu1 %4852  ;;  %v4969_v2 = vrot.slane %v7924_v53, %v4968_v62  ;;  %v4989_v53 = vsub.s32 %v4986_v16, %v8157_v47  ;;  %vm5019_vm0 = vcmask 982912   ;;  %vm5026_vm1 = vcmask 1048512  }
 0x461   :  { %vm5125_vm2 = vcmp.lt.s32.totalorder %v8156_v31, 256 }
 0x462   :  { %v4990_v41 = vrot.slane %v7928_v18, %v4989_v53 }
 0x464   :  { %v7930_v30 = vpop.permute.xlu1 %4846  ;;  %v7936_v4 = vpop.permute.xlu0 %4849 }
 0x468   :  { %v7932_v56 = vpop.permute.xlu1 %4855 }
 0x469   :  { %v4997_v9 = vrot.slane %v7932_v56, %v4996_v10 }
 0x473   :  { %v7934_v39 = vpop.permute.xlu1 %4858 }
 0x47f   :  { %v7938_v25 = vpop.permute.xlu1 %4861 }
 0x480   :  { %v5011_v35 = vrot.slane %v7938_v25, %v5010_v50 }
 0x489   :  { %v4877_v8 = vpop.permute.xlu1 %4876 }
 0x48a   :  { %v5040_v45 = vrot.slane %v4877_v8, %v4933_v21  ;;  %v4982_v8 = vsub.s32 %v4979_v38, %v8157_v47  ;;  %v5014_v21 = vadd.s32 4294967184, %v7941_v52 }
 0x48d   :  { %v4871_v51 = vpop.permute.xlu1 %4870 }
 0x48e   :  { %v5031_v20 = vrot.slane %v4871_v51, %v4921_v43 }
 0x49f   :  { %v4880_v26 = vpop.permute.xlu0 %4879 }
 0x4a0   :  { %v5045_v15 = vrot.slane %v4880_v26, %v4940_v63 }
 0x4a3   :  { %v4874_v34 = vpop.permute.xlu0 %4873 }
 0x4a4   :  { %v5035_v3 = vrot.slane %v4874_v34, %v4926_v54  ;;  %v4962_v34 = vrot.slane %v7920_v11, %v4961_v42  ;;  %v4983_v11 = vrot.slane %v7936_v4, %v4982_v8  ;;  %v5003_v4 = vsub.s32 %v5000_v28, %v8157_v47 }
 0x4a5   :  { %v4889_v58 = vpop.permute.xlu1 %4888 }
 0x4a6   :  { %v5036_v13 = vsel %vm4928_vm3, %v5035_v3, %v5031_v20  ;;  %v5060_v26 = vrot.slane %v4889_v58, %v4961_v42  ;;  %v4964_v3 = vsel %vm4963_vm8, %v4962_v34, %v4957_v0  ;;  %v4976_v58 = vrot.slane %v7930_v30, %v4975_v6 }
 0x4a7   :  { %v5041_v24 = vsel %vm4935_vm4, %v5040_v45, %v5036_v13  ;;  %v4971_v30 = vsel %vm4970_vm9, %v4969_v2, %v4964_v3  ;;  %v5021_v13 = vadd.s32 4294967176, %v7941_v52 }
 0x4a8   :  { %v5046_v49 = vsel %vm4942_vm5, %v5045_v15, %v5041_v24  ;;  %v4978_v63 = vsel %vm4977_vm10, %v4976_v58, %v4971_v30  ;;  %v5017_v24 = vsub.s32 %v5014_v21, %v8157_v47 }
 0x4a9   :  { %v5024_v15 = vsub.s32 %v5021_v13, %v8157_v47 }
 0x4af   :  { %v4883_v19 = vpop.permute.xlu1 %4882 }
 0x4b0   :  { %v5050_v59 = vrot.slane %v4883_v19, %v4947_v17 }
 0x4b2   :  { %v5051_v48 = vsel %vm4949_vm6, %v5050_v59, %v5046_v49 }
 0x4b5   :  { %v7944_v60 = vpop.permute.xlu0 %4891 }
 0x4bb   :  { %v4886_v23 = vpop.permute.xlu0 %4885 }
 0x4bc   :  { %v5055_v44 = vrot.slane %v4886_v23, %v4954_v46  ;;  %v5065_v23 = vrot.slane %v7944_v60, %v4968_v62  ;;  %v4985_v46 = vsel %vm4984_vm11, %v4983_v11, %v4978_v63 }
 0x4be   :  { %v5056_v40 = vsel %vm4956_vm7, %v5055_v44, %v5051_v48  ;;  %v4992_v44 = vsel %vm4991_vm12, %v4990_v41, %v4985_v46 }
 0x4bf   :  { %v7954_v55 = vpop.permute.xlu0 %4900  ;;  %v5061_v51 = vsel %vm4963_vm8, %v5060_v26, %v5056_v40  ;;  %v4999_v42 = vsel %vm4998_vm13, %v4997_v9, %v4992_v44 }
 0x4c0   :  { %v5066_v20 = vsel %vm4970_vm9, %v5065_v23, %v5061_v51  ;;  %v5080_v17 = vrot.slane %v7954_v55, %v4989_v53  ;;  %v5004_v55 = vrot.slane %v7934_v39, %v5003_v4 }
 0x4c2   :  { %v5006_v48 = vsel %vm5005_vm14, %v5004_v55, %v4999_v42 }
 0x4c3   :  { %v4895_v57 = vpop.permute.xlu1 %4894  ;;  %v5013_v39 = vsel %vm5012_vm15, %v5011_v35, %v5006_v48 }
 0x4c4   :  { %v5070_v54 = vrot.slane %v4895_v57, %v4975_v6 }
 0x4c6   :  { %v7961_v61 = vpop.permute.xlu0 %4903  ;;  %v5071_v60 = vsel %vm4977_vm10, %v5070_v54, %v5066_v20 }
 0x4c7   :  { %v5085_v37 = vrot.slane %v7961_v61, %v4996_v10 }
 0x4c9   :  { %v4865_v29 = vpop.permute.xlu1 %4864 }
 0x4ca   :  { %v5018_v38 = vrot.slane %v4865_v29, %v5017_v24 }
 0x4cc   :  { %v4898_v33 = vpop.permute.xlu0 %4897  ;;  %v5020_v57 = vsel %vm5019_vm0, %v5018_v38, %v5013_v39 }
 0x4cd   :  { %v5075_v43 = vrot.slane %v4898_v33, %v4982_v8 }
 0x4cf   :  { %v5076_v19 = vsel %vm4984_vm11, %v5075_v43, %v5071_v60  ;;  %v4868_v36 = vpop.permute.xlu1 %4867 }
 0x4d0   :  { %v5081_v59 = vsel %vm4991_vm12, %v5080_v17, %v5076_v19  ;;  %v5025_v61 = vrot.slane %v4868_v36, %v5024_v15 }
 0x4d1   :  { %v4913_v32 = vpop.permute.xlu0 %4912  ;;  %v5086_v18 = vsel %vm4998_vm13, %v5085_v37, %v5081_v59 }
 0x4d2   :  { %v5100_v27 = vrot.slane %v4913_v32, %v5017_v24  ;;  %v5027_v56 = vsel %vm5026_vm1, %v5025_v61, %v5020_v57 }
 0x4d5   :  { %v4907_v45 = vpop.permute.xlu0 %4906 }
 0x4d6   :  { %v5090_v52 = vrot.slane %v4907_v45, %v5003_v4 }
 0x4d8   :  { %v5091_v49 = vsel %vm5005_vm14, %v5090_v52, %v5086_v18 }
 0x4d9   :  { %v4910_v5 = vpop.permute.xlu0 %4909 }
 0x4da   :  { %v5095_v22 = vrot.slane %v4910_v5, %v5010_v50 }
 0x4dc   :  { %v5096_v47 = vsel %vm5012_vm15, %v5095_v22, %v5091_v49 }
 0x4dd   :  { %v4916_v62 = vpop.permute.xlu0 %4915  ;;  %v5101_v33 = vsel %vm5019_vm0, %v5100_v27, %v5096_v47 }
 0x4de   :  { %v5105_v40 = vrot.slane %v4916_v62, %v5024_v15 }
 0x4e0   :  { %v5106_v7 = vsel %vm5026_vm1, %v5105_v40, %v5101_v33 }
 0x4e1   :  { %v5107_v25 = vcombine.low %v5027_v56, %v5106_v7 }
 0x4e3   :  { %v5114_v6 = vrot.slane %v5107_v25, %v6332_v1 }
 0x4e5   :  { %v5121_v26 = vrot.slane %v5114_v6, %v6332_v1 }
 0x4e7   :  { %5127 = vst.msk [vmem:[#allocation3] sm:$0x3] %vm5125_vm2, %v5121_v26 }
 0x4e8   :  { %5559 = shalt.err (!%p5556_p4)
}
 0x4e9   :  { %s5560_s27 = scalar_lea.hbm %s8025_s9, 32 }
 0x4ea   :  { %p5561_p5 = scmp.ne.s32.totalorder %s8025_s9, %s5560_s27  ;;  %p5564_p6 = scmp.lt.u32.totalorder %s5560_s27, %s8025_s9 }
 0x4ec   :  { %p5566_p7 = pnand %p5564_p6, %p5561_p5 }
 0x4ee   :  { %5569 = shalt.err (!%p5566_p7)
}
 0x4ef   :  { %5137 = dma.vmem_to_hbm [thread:$0]  %s5135_s7, 32, %s8025_s9, [#allocation4]  }
 0x4f0   :  { %5570 = dma.done.wait [#allocation4], 32  }
 0x4f1   :  { %5571 = vsyncadd [#allocation4], 4294967264 }
 0x4f2   :  { %5141 = vsyncpa [#allocation4], 1 }

</bundles_post_ra>
